<compile_context>
chip_gen: v6e
topology: v6e:2x2x1
jax: 0.10.0
libtpu: 0.0.40
codegen_flags: <defaults>
</compile_context>

<pallas_src>
import jax
import jax.numpy as jnp
import numpy as np
from jax import lax
from jax.experimental import pallas as pl
from jax.experimental.pallas import tpu as pltpu

_EPS = 1e-5  # nn.BatchNorm2d default


# ---------------------------------------------------------------- fused Pallas kernel
def _down_kernel(x_ref, w1_ref, g1_ref, beta1_ref,
                 w2_ref, g2_ref, beta2_ref, o_ref):
    # x_ref    : (N, H, W, Cin)          NHWC (channels on the 128-lane axis)
    # w1_ref   : (9*Cin,  Cout)          im2col-reshaped conv1 weight
    # w2_ref   : (9*Cout, Cout)          im2col-reshaped conv2 weight
    # g*, beta*: (1, Cout)               BatchNorm affine params
    # o_ref    : (N, H//2, W//2, Cout)
    n, h, w, _ = x_ref.shape
    h2, w2 = h // 2, w // 2

    x = x_ref[...]

    # ---- MaxPool2d(kernel=2, stride=2) --------------------------------------
    # H pairs: split a *leading* dim (free retiling) then VPU-max the two slabs.
    hp = jnp.max(x.reshape(n, h2, 2, w, x.shape[-1]), axis=2)       # (N,H2,W,Cin)
    # W pairs: split the sublane dim and max the pair.
    xp = jnp.max(hp.reshape(n, h2, w2, 2, x.shape[-1]), axis=3)     # (N,H2,W2,Cin)

    def conv3x3_bn_relu(y, w_mat, gamma, beta):
        # y: (N, H2, W2, C)  ->  (N, H2, W2, Cout)
        c = y.shape[-1]
        # Zero-pad H and W by 1 entirely in VMEM via concatenation (no HBM pad copy).
        zr = jnp.zeros((n, 1, w2, c), y.dtype)
        yp = jnp.concatenate([zr, y, zr], axis=1)                   # (N,H2+2,W2,C)
        zc = jnp.zeros((n, h2 + 2, 1, c), y.dtype)
        yp = jnp.concatenate([zc, yp, zc], axis=2)                  # (N,H2+2,W2+2,C)

        # im2col: 9 shifted windows concatenated on the lane axis -> ONE MXU matmul
        # with K = 9*C. Tap order (dy, dx, c) matches the wrapper's weight reshape.
        taps = [yp[:, dy:dy + h2, dx:dx + w2, :]
                for dy in range(3) for dx in range(3)]
        patches = jnp.concatenate(taps, axis=-1).reshape(n * h2 * w2, 9 * c)
        acc = jnp.dot(patches, w_mat, preferred_element_type=jnp.float32)
        # NOTE: the conv bias is intentionally omitted — BatchNorm with batch
        # statistics subtracts the per-channel mean, which cancels any constant
        # per-channel offset, so the forward output is unchanged.

        # BatchNorm2d, training-mode batch stats (biased variance), single pass.
        m1 = jnp.mean(acc, axis=0, keepdims=True)                   # (1, Cout)
        m2 = jnp.mean(acc * acc, axis=0, keepdims=True)             # (1, Cout)
        var = m2 - m1 * m1
        out = (acc - m1) * lax.rsqrt(var + _EPS) * gamma + beta
        out = jnp.maximum(out, 0.0)                                 # ReLU
        return out.reshape(n, h2, w2, -1)

    y1 = conv3x3_bn_relu(xp, w1_ref[...], g1_ref[...], beta1_ref[...])
    y2 = conv3x3_bn_relu(y1, w2_ref[...], g2_ref[...], beta2_ref[...])
    o_ref[...] = y2


# ---------------------------------------------------------------- wrapper
def _full_spec(shape):
    nd = len(shape)
    return pl.BlockSpec(shape, lambda i: (0,) * nd)


def _im2col_weight(w_oihw):
    # PyTorch (Cout, Cin, 3, 3) -> (9*Cin, Cout), row order (dy, dx, cin).
    cout, cin = w_oihw.shape[0], w_oihw.shape[1]
    return jnp.transpose(w_oihw, (2, 3, 1, 0)).reshape(9 * cin, cout)


@jax.jit
def down_forward(x_nchw, params):
    # (N, Cin, H, W) -> (N, Cout, H//2, W//2); matches torch Down.forward (train-mode BN).
    n, _, h, w = x_nchw.shape
    cout = params["w1"].shape[0]
    h2, w2 = h // 2, w // 2

    x = jnp.transpose(x_nchw, (0, 2, 3, 1))                         # NCHW -> NHWC
    args = (
        x,
        _im2col_weight(params["w1"]),
        params["g1"].reshape(1, cout), params["beta1"].reshape(1, cout),
        _im2col_weight(params["w2"]),
        params["g2"].reshape(1, cout), params["beta2"].reshape(1, cout),
    )
    out_nhwc = pl.pallas_call(
        _down_kernel,
        out_shape=jax.ShapeDtypeStruct((n, h2, w2, cout), jnp.float32),
        grid=(1,),
        in_specs=[_full_spec(a.shape) for a in args],
        out_specs=_full_spec((n, h2, w2, cout)),
        compiler_params=pltpu.CompilerParams(
            dimension_semantics=("arbitrary",)),
    )(*args)
    return jnp.transpose(out_nhwc, (0, 3, 1, 2))                    # NHWC -> NCHW


# ---------------------------------------------------------------- pure-JAX reference
def _ref_conv_bn_relu_nchw(x, w, b, g, beta):
    y = lax.conv_general_dilated(x, w, (1, 1), "SAME",
                                 dimension_numbers=("NCHW", "OIHW", "NCHW"))
    y = y + b[None, :, None, None]
    mean = jnp.mean(y, axis=(0, 2, 3), keepdims=True)
    var = jnp.mean((y - mean) ** 2, axis=(0, 2, 3), keepdims=True)
    y = (y - mean) * lax.rsqrt(var + _EPS)
    y = y * g[None, :, None, None] + beta[None, :, None, None]
    return jnp.maximum(y, 0.0)


def ref_down(x, p):
    n, c, h, w = x.shape
    x = x.reshape(n, c, h // 2, 2, w // 2, 2).max(axis=(3, 5))
    x = _ref_conv_bn_relu_nchw(x, p["w1"], p["b1"], p["g1"], p["beta1"])
    x = _ref_conv_bn_relu_nchw(x, p["w2"], p["b2"], p["g2"], p["beta2"])
    return x


# ---------------------------------------------------------------- main
if __name__ == "__main__":
    key = jax.random.PRNGKey(0)
    in_ch, out_ch = 4, 8
    N, H, W = 2, 16, 16

    k = jax.random.split(key, 8)
    x = jax.random.normal(k[0], (N, in_ch, H, W), jnp.float32)
    params = {
        "w1": 0.2 * jax.random.normal(k[1], (out_ch, in_ch, 3, 3), jnp.float32),
        "b1": 0.1 * jax.random.normal(k[2], (out_ch,), jnp.float32),
        "g1": 1.0 + 0.1 * jax.random.normal(k[3], (out_ch,), jnp.float32),
        "beta1": 0.1 * jax.random.normal(k[4], (out_ch,), jnp.float32),
        "w2": 0.2 * jax.random.normal(k[5], (out_ch, out_ch, 3, 3), jnp.float32),
        "b2": 0.1 * jax.random.normal(k[6], (out_ch,), jnp.float32),
        "g2": 1.0 + 0.1 * jax.random.normal(k[7], (out_ch,), jnp.float32),
        "beta2": jnp.zeros((out_ch,), jnp.float32),
    }

    out = jax.block_until_ready(down_forward(x, params))
    ref = jax.block_until_ready(ref_down(x, params))

    assert out.shape == (N, out_ch, H // 2, W // 2), out.shape
    np.testing.assert_allclose(np.asarray(out), np.asarray(ref),
                               rtol=1e-4, atol=1e-4)
    print("KERNEL_OK")
</pallas_src>

<mosaic_0001>
module attributes {stable_mosaic.version = 11 : i64} {
  func.func @_down_kernel(%arg0: i32, %arg1: memref<2x16x16x4xf32, #tpu.memory_space<vmem>>, %arg2: memref<36x8xf32, #tpu.memory_space<vmem>>, %arg3: memref<1x8xf32, #tpu.memory_space<vmem>>, %arg4: memref<1x8xf32, #tpu.memory_space<vmem>>, %arg5: memref<72x8xf32, #tpu.memory_space<vmem>>, %arg6: memref<1x8xf32, #tpu.memory_space<vmem>>, %arg7: memref<1x8xf32, #tpu.memory_space<vmem>>, %arg8: memref<2x8x8x8xf32, #tpu.memory_space<vmem>>) attributes {dimension_semantics = [#tpu.dimension_semantics<arbitrary>], iteration_bounds = array<i64: 1>, scalar_prefetch = 0 : i64, scratch_operands = 0 : i64, tpu.core_type = #tpu.core_type<tc>, window_params = [{pipeline_mode = #tpu.pipeline_mode<synchronous>, transform_indices = @transform_0, window_bounds = array<i64: 2, 16, 16, 4>}, {pipeline_mode = #tpu.pipeline_mode<synchronous>, transform_indices = @transform_1, window_bounds = array<i64: 36, 8>}, {pipeline_mode = #tpu.pipeline_mode<synchronous>, transform_indices = @transform_2, window_bounds = array<i64: 1, 8>}, {pipeline_mode = #tpu.pipeline_mode<synchronous>, transform_indices = @transform_3, window_bounds = array<i64: 1, 8>}, {pipeline_mode = #tpu.pipeline_mode<synchronous>, transform_indices = @transform_4, window_bounds = array<i64: 72, 8>}, {pipeline_mode = #tpu.pipeline_mode<synchronous>, transform_indices = @transform_5, window_bounds = array<i64: 1, 8>}, {pipeline_mode = #tpu.pipeline_mode<synchronous>, transform_indices = @transform_6, window_bounds = array<i64: 1, 8>}, {pipeline_mode = #tpu.pipeline_mode<synchronous>, transform_indices = @transform_7, window_bounds = array<i64: 2, 8, 8, 8>}]} {
    %c0 = arith.constant 0 : index
    %c0_0 = arith.constant 0 : index
    %c0_1 = arith.constant 0 : index
    %c0_2 = arith.constant 0 : index
    %0 = vector.load %arg1[%c0, %c0_0, %c0_1, %c0_2] : memref<2x16x16x4xf32, #tpu.memory_space<vmem>>, vector<2x16x16x4xf32>
    %1 = vector.shape_cast %0 : vector<2x16x16x4xf32> to vector<2x8x2x16x4xf32>
    %cst = arith.constant dense<0xFF800000> : vector<2x8x16x4xf32>
    %2 = vector.multi_reduction <maximumf>, %1, %cst [2] : vector<2x8x2x16x4xf32> to vector<2x8x16x4xf32>
    %3 = vector.shape_cast %2 : vector<2x8x16x4xf32> to vector<2x8x8x2x4xf32>
    %cst_3 = arith.constant dense<0xFF800000> : vector<2x8x8x4xf32>
    %4 = vector.multi_reduction <maximumf>, %3, %cst_3 [3] : vector<2x8x8x2x4xf32> to vector<2x8x8x4xf32>
    %c0_4 = arith.constant 0 : index
    %c0_5 = arith.constant 0 : index
    %5 = vector.load %arg2[%c0_4, %c0_5] : memref<36x8xf32, #tpu.memory_space<vmem>>, vector<36x8xf32>
    %c0_6 = arith.constant 0 : index
    %c0_7 = arith.constant 0 : index
    %6 = vector.load %arg3[%c0_6, %c0_7] : memref<1x8xf32, #tpu.memory_space<vmem>>, vector<1x8xf32>
    %c0_8 = arith.constant 0 : index
    %c0_9 = arith.constant 0 : index
    %7 = vector.load %arg4[%c0_8, %c0_9] : memref<1x8xf32, #tpu.memory_space<vmem>>, vector<1x8xf32>
    %cst_10 = arith.constant 0.000000e+00 : f32
    %8 = vector.broadcast %cst_10 : f32 to vector<2x1x8x4xf32>
    %9 = tpu.concatenate %8, %4, %8 in 1 : vector<2x1x8x4xf32>, vector<2x8x8x4xf32>, vector<2x1x8x4xf32> -> vector<2x10x8x4xf32>
    %cst_11 = arith.constant 0.000000e+00 : f32
    %10 = vector.broadcast %cst_11 : f32 to vector<2x10x1x4xf32>
    %11 = tpu.concatenate %10, %9, %10 in 2 : vector<2x10x1x4xf32>, vector<2x10x8x4xf32>, vector<2x10x1x4xf32> -> vector<2x10x10x4xf32>
    %12 = vector.extract_strided_slice %11 {offsets = [0, 0, 0, 0], sizes = [2, 8, 8, 4], strides = [1, 1, 1, 1]} : vector<2x10x10x4xf32> to vector<2x8x8x4xf32>
    %13 = vector.extract_strided_slice %11 {offsets = [0, 0, 1, 0], sizes = [2, 8, 8, 4], strides = [1, 1, 1, 1]} : vector<2x10x10x4xf32> to vector<2x8x8x4xf32>
    %14 = vector.extract_strided_slice %11 {offsets = [0, 0, 2, 0], sizes = [2, 8, 8, 4], strides = [1, 1, 1, 1]} : vector<2x10x10x4xf32> to vector<2x8x8x4xf32>
    %15 = vector.extract_strided_slice %11 {offsets = [0, 1, 0, 0], sizes = [2, 8, 8, 4], strides = [1, 1, 1, 1]} : vector<2x10x10x4xf32> to vector<2x8x8x4xf32>
    %16 = vector.extract_strided_slice %11 {offsets = [0, 1, 1, 0], sizes = [2, 8, 8, 4], strides = [1, 1, 1, 1]} : vector<2x10x10x4xf32> to vector<2x8x8x4xf32>
    %17 = vector.extract_strided_slice %11 {offsets = [0, 1, 2, 0], sizes = [2, 8, 8, 4], strides = [1, 1, 1, 1]} : vector<2x10x10x4xf32> to vector<2x8x8x4xf32>
    %18 = vector.extract_strided_slice %11 {offsets = [0, 2, 0, 0], sizes = [2, 8, 8, 4], strides = [1, 1, 1, 1]} : vector<2x10x10x4xf32> to vector<2x8x8x4xf32>
    %19 = vector.extract_strided_slice %11 {offsets = [0, 2, 1, 0], sizes = [2, 8, 8, 4], strides = [1, 1, 1, 1]} : vector<2x10x10x4xf32> to vector<2x8x8x4xf32>
    %20 = vector.extract_strided_slice %11 {offsets = [0, 2, 2, 0], sizes = [2, 8, 8, 4], strides = [1, 1, 1, 1]} : vector<2x10x10x4xf32> to vector<2x8x8x4xf32>
    %21 = tpu.concatenate %12, %13, %14, %15, %16, %17, %18, %19, %20 in 3 : vector<2x8x8x4xf32>, vector<2x8x8x4xf32>, vector<2x8x8x4xf32>, vector<2x8x8x4xf32>, vector<2x8x8x4xf32>, vector<2x8x8x4xf32>, vector<2x8x8x4xf32>, vector<2x8x8x4xf32>, vector<2x8x8x4xf32> -> vector<2x8x8x36xf32>
    %22 = vector.shape_cast %21 : vector<2x8x8x36xf32> to vector<128x36xf32>
    %cst_12 = arith.constant dense<0.000000e+00> : vector<128x8xf32>
    %23 = tpu.matmul %22, %5, %cst_12 {dimension_numbers = #tpu.dot_dimension_numbers<[1], [0], [0], [1], [0, 0, 1, 1], [], []>} : vector<128x36xf32>, vector<36x8xf32>, vector<128x8xf32> -> vector<128x8xf32>
    %cst_13 = arith.constant dense<0.000000e+00> : vector<8xf32>
    %24 = vector.multi_reduction <add>, %23, %cst_13 [0] : vector<128x8xf32> to vector<8xf32>
    %25 = vector.shape_cast %24 : vector<8xf32> to vector<1x8xf32>
    %cst_14 = arith.constant 1.280000e+02 : f32
    %26 = vector.broadcast %cst_14 : f32 to vector<1x8xf32>
    %27 = arith.divf %25, %26 : vector<1x8xf32>
    %28 = arith.mulf %23, %23 : vector<128x8xf32>
    %cst_15 = arith.constant dense<0.000000e+00> : vector<8xf32>
    %29 = vector.multi_reduction <add>, %28, %cst_15 [0] : vector<128x8xf32> to vector<8xf32>
    %30 = vector.shape_cast %29 : vector<8xf32> to vector<1x8xf32>
    %cst_16 = arith.constant 1.280000e+02 : f32
    %31 = vector.broadcast %cst_16 : f32 to vector<1x8xf32>
    %32 = arith.divf %30, %31 : vector<1x8xf32>
    %33 = arith.mulf %27, %27 : vector<1x8xf32>
    %34 = arith.subf %32, %33 : vector<1x8xf32>
    %35 = vector.broadcast %27 : vector<1x8xf32> to vector<128x8xf32>
    %36 = arith.subf %23, %35 : vector<128x8xf32>
    %cst_17 = arith.constant 9.99999974E-6 : f32
    %37 = vector.broadcast %cst_17 : f32 to vector<1x8xf32>
    %38 = arith.addf %34, %37 : vector<1x8xf32>
    %39 = math.rsqrt %38 : vector<1x8xf32>
    %40 = vector.broadcast %39 : vector<1x8xf32> to vector<128x8xf32>
    %41 = arith.mulf %36, %40 : vector<128x8xf32>
    %42 = vector.broadcast %6 : vector<1x8xf32> to vector<128x8xf32>
    %43 = arith.mulf %41, %42 : vector<128x8xf32>
    %44 = vector.broadcast %7 : vector<1x8xf32> to vector<128x8xf32>
    %45 = arith.addf %43, %44 : vector<128x8xf32>
    %cst_18 = arith.constant 0.000000e+00 : f32
    %46 = vector.broadcast %cst_18 : f32 to vector<128x8xf32>
    %47 = arith.maximumf %45, %46 : vector<128x8xf32>
    %48 = vector.shape_cast %47 : vector<128x8xf32> to vector<2x8x8x8xf32>
    %c0_19 = arith.constant 0 : index
    %c0_20 = arith.constant 0 : index
    %49 = vector.load %arg5[%c0_19, %c0_20] : memref<72x8xf32, #tpu.memory_space<vmem>>, vector<72x8xf32>
    %c0_21 = arith.constant 0 : index
    %c0_22 = arith.constant 0 : index
    %50 = vector.load %arg6[%c0_21, %c0_22] : memref<1x8xf32, #tpu.memory_space<vmem>>, vector<1x8xf32>
    %c0_23 = arith.constant 0 : index
    %c0_24 = arith.constant 0 : index
    %51 = vector.load %arg7[%c0_23, %c0_24] : memref<1x8xf32, #tpu.memory_space<vmem>>, vector<1x8xf32>
    %cst_25 = arith.constant 0.000000e+00 : f32
    %52 = vector.broadcast %cst_25 : f32 to vector<2x1x8x8xf32>
    %53 = tpu.concatenate %52, %48, %52 in 1 : vector<2x1x8x8xf32>, vector<2x8x8x8xf32>, vector<2x1x8x8xf32> -> vector<2x10x8x8xf32>
    %cst_26 = arith.constant 0.000000e+00 : f32
    %54 = vector.broadcast %cst_26 : f32 to vector<2x10x1x8xf32>
    %55 = tpu.concatenate %54, %53, %54 in 2 : vector<2x10x1x8xf32>, vector<2x10x8x8xf32>, vector<2x10x1x8xf32> -> vector<2x10x10x8xf32>
    %56 = vector.extract_strided_slice %55 {offsets = [0, 0, 0, 0], sizes = [2, 8, 8, 8], strides = [1, 1, 1, 1]} : vector<2x10x10x8xf32> to vector<2x8x8x8xf32>
    %57 = vector.extract_strided_slice %55 {offsets = [0, 0, 1, 0], sizes = [2, 8, 8, 8], strides = [1, 1, 1, 1]} : vector<2x10x10x8xf32> to vector<2x8x8x8xf32>
    %58 = vector.extract_strided_slice %55 {offsets = [0, 0, 2, 0], sizes = [2, 8, 8, 8], strides = [1, 1, 1, 1]} : vector<2x10x10x8xf32> to vector<2x8x8x8xf32>
    %59 = vector.extract_strided_slice %55 {offsets = [0, 1, 0, 0], sizes = [2, 8, 8, 8], strides = [1, 1, 1, 1]} : vector<2x10x10x8xf32> to vector<2x8x8x8xf32>
    %60 = vector.extract_strided_slice %55 {offsets = [0, 1, 1, 0], sizes = [2, 8, 8, 8], strides = [1, 1, 1, 1]} : vector<2x10x10x8xf32> to vector<2x8x8x8xf32>
    %61 = vector.extract_strided_slice %55 {offsets = [0, 1, 2, 0], sizes = [2, 8, 8, 8], strides = [1, 1, 1, 1]} : vector<2x10x10x8xf32> to vector<2x8x8x8xf32>
    %62 = vector.extract_strided_slice %55 {offsets = [0, 2, 0, 0], sizes = [2, 8, 8, 8], strides = [1, 1, 1, 1]} : vector<2x10x10x8xf32> to vector<2x8x8x8xf32>
    %63 = vector.extract_strided_slice %55 {offsets = [0, 2, 1, 0], sizes = [2, 8, 8, 8], strides = [1, 1, 1, 1]} : vector<2x10x10x8xf32> to vector<2x8x8x8xf32>
    %64 = vector.extract_strided_slice %55 {offsets = [0, 2, 2, 0], sizes = [2, 8, 8, 8], strides = [1, 1, 1, 1]} : vector<2x10x10x8xf32> to vector<2x8x8x8xf32>
    %65 = tpu.concatenate %56, %57, %58, %59, %60, %61, %62, %63, %64 in 3 : vector<2x8x8x8xf32>, vector<2x8x8x8xf32>, vector<2x8x8x8xf32>, vector<2x8x8x8xf32>, vector<2x8x8x8xf32>, vector<2x8x8x8xf32>, vector<2x8x8x8xf32>, vector<2x8x8x8xf32>, vector<2x8x8x8xf32> -> vector<2x8x8x72xf32>
    %66 = vector.shape_cast %65 : vector<2x8x8x72xf32> to vector<128x72xf32>
    %cst_27 = arith.constant dense<0.000000e+00> : vector<128x8xf32>
    %67 = tpu.matmul %66, %49, %cst_27 {dimension_numbers = #tpu.dot_dimension_numbers<[1], [0], [0], [1], [0, 0, 1, 1], [], []>} : vector<128x72xf32>, vector<72x8xf32>, vector<128x8xf32> -> vector<128x8xf32>
    %cst_28 = arith.constant dense<0.000000e+00> : vector<8xf32>
    %68 = vector.multi_reduction <add>, %67, %cst_28 [0] : vector<128x8xf32> to vector<8xf32>
    %69 = vector.shape_cast %68 : vector<8xf32> to vector<1x8xf32>
    %cst_29 = arith.constant 1.280000e+02 : f32
    %70 = vector.broadcast %cst_29 : f32 to vector<1x8xf32>
    %71 = arith.divf %69, %70 : vector<1x8xf32>
    %72 = arith.mulf %67, %67 : vector<128x8xf32>
    %cst_30 = arith.constant dense<0.000000e+00> : vector<8xf32>
    %73 = vector.multi_reduction <add>, %72, %cst_30 [0] : vector<128x8xf32> to vector<8xf32>
    %74 = vector.shape_cast %73 : vector<8xf32> to vector<1x8xf32>
    %cst_31 = arith.constant 1.280000e+02 : f32
    %75 = vector.broadcast %cst_31 : f32 to vector<1x8xf32>
    %76 = arith.divf %74, %75 : vector<1x8xf32>
    %77 = arith.mulf %71, %71 : vector<1x8xf32>
    %78 = arith.subf %76, %77 : vector<1x8xf32>
    %79 = vector.broadcast %71 : vector<1x8xf32> to vector<128x8xf32>
    %80 = arith.subf %67, %79 : vector<128x8xf32>
    %cst_32 = arith.constant 9.99999974E-6 : f32
    %81 = vector.broadcast %cst_32 : f32 to vector<1x8xf32>
    %82 = arith.addf %78, %81 : vector<1x8xf32>
    %83 = math.rsqrt %82 : vector<1x8xf32>
    %84 = vector.broadcast %83 : vector<1x8xf32> to vector<128x8xf32>
    %85 = arith.mulf %80, %84 : vector<128x8xf32>
    %86 = vector.broadcast %50 : vector<1x8xf32> to vector<128x8xf32>
    %87 = arith.mulf %85, %86 : vector<128x8xf32>
    %88 = vector.broadcast %51 : vector<1x8xf32> to vector<128x8xf32>
    %89 = arith.addf %87, %88 : vector<128x8xf32>
    %cst_33 = arith.constant 0.000000e+00 : f32
    %90 = vector.broadcast %cst_33 : f32 to vector<128x8xf32>
    %91 = arith.maximumf %89, %90 : vector<128x8xf32>
    %92 = vector.shape_cast %91 : vector<128x8xf32> to vector<2x8x8x8xf32>
    %c0_34 = arith.constant 0 : index
    %c0_35 = arith.constant 0 : index
    %c0_36 = arith.constant 0 : index
    %c0_37 = arith.constant 0 : index
    %93 = vector.load %arg8[%c0_34, %c0_35, %c0_36, %c0_37] : memref<2x8x8x8xf32, #tpu.memory_space<vmem>>, vector<2x8x8x8xf32>
    tpu.vector_store %arg8[%c0_34, %c0_35, %c0_36, %c0_37], %92 {strides = array<i32>} : memref<2x8x8x8xf32, #tpu.memory_space<vmem>>, vector<2x8x8x8xf32>,
    return
  }
  func.func @transform_0(%arg0: i32) -> (i32, i32, i32, i32) {
    %c0_i32 = arith.constant 0 : i32
    %c0_i32_0 = arith.constant 0 : i32
    %c0_i32_1 = arith.constant 0 : i32
    %c0_i32_2 = arith.constant 0 : i32
    %c0_i32_3 = arith.constant 0 : i32
    return %c0_i32, %c0_i32_0, %c0_i32_1, %c0_i32_2 : i32, i32, i32, i32
  }
  func.func @transform_1(%arg0: i32) -> (i32, i32) {
    %c0_i32 = arith.constant 0 : i32
    %c0_i32_0 = arith.constant 0 : i32
    %c0_i32_1 = arith.constant 0 : i32
    return %c0_i32, %c0_i32_0 : i32, i32
  }
  func.func @transform_2(%arg0: i32) -> (i32, i32) {
    %c0_i32 = arith.constant 0 : i32
    %c0_i32_0 = arith.constant 0 : i32
    %c0_i32_1 = arith.constant 0 : i32
    return %c0_i32, %c0_i32_0 : i32, i32
  }
  func.func @transform_3(%arg0: i32) -> (i32, i32) {
    %c0_i32 = arith.constant 0 : i32
    %c0_i32_0 = arith.constant 0 : i32
    %c0_i32_1 = arith.constant 0 : i32
    return %c0_i32, %c0_i32_0 : i32, i32
  }
  func.func @transform_4(%arg0: i32) -> (i32, i32) {
    %c0_i32 = arith.constant 0 : i32
    %c0_i32_0 = arith.constant 0 : i32
    %c0_i32_1 = arith.constant 0 : i32
    return %c0_i32, %c0_i32_0 : i32, i32
  }
  func.func @transform_5(%arg0: i32) -> (i32, i32) {
    %c0_i32 = arith.constant 0 : i32
    %c0_i32_0 = arith.constant 0 : i32
    %c0_i32_1 = arith.constant 0 : i32
    return %c0_i32, %c0_i32_0 : i32, i32
  }
  func.func @transform_6(%arg0: i32) -> (i32, i32) {
    %c0_i32 = arith.constant 0 : i32
    %c0_i32_0 = arith.constant 0 : i32
    %c0_i32_1 = arith.constant 0 : i32
    return %c0_i32, %c0_i32_0 : i32, i32
  }
  func.func @transform_7(%arg0: i32) -> (i32, i32, i32, i32) {
    %c0_i32 = arith.constant 0 : i32
    %c0_i32_0 = arith.constant 0 : i32
    %c0_i32_1 = arith.constant 0 : i32
    %c0_i32_2 = arith.constant 0 : i32
    %c0_i32_3 = arith.constant 0 : i32
    return %c0_i32, %c0_i32_0, %c0_i32_1, %c0_i32_2 : i32, i32, i32, i32
  }
}

</mosaic_0001>

<bundles_post_ra>
// kernel: down_forward.1
= control target key start
LH: loop header
LB: loop body
LE: loop exit
PB: predicated region body
PF: predicated region fallthrough
CT: control target
= control target key end

     0   :  { %vm2077_vm0 = vcmask 1040384   ;;  %vm7127_vm1 = vcmask 1045504   ;;  %v4454_v0 = vmov 0.0   ;;  %vm7134_vm2 = vcmask 1046528   ;;  %s4456_s17 = smov 8   ;;  %s4457_s18 = smov 4   ;;  %s7118_s0 = inlined_call_operand.vmem [shape: f32[2,16,16,4], index: 0, kind: input, shape index: {}]   ;;  %s7119_s1 = inlined_call_operand.vmem [shape: f32[36,8], index: 1, kind: input, shape index: {}]   ;;  %s7120_s2 = inlined_call_operand.vmem [shape: f32[1,8], index: 2, kind: input, shape index: {}]   ;;  %s7121_s3 = inlined_call_operand.vmem [shape: f32[1,8], index: 3, kind: input, shape index: {}]   ;;  %s7122_s4 = inlined_call_operand.vmem [shape: f32[72,8], index: 4, kind: input, shape index: {}]   ;;  %s7123_s5 = inlined_call_operand.vmem [shape: f32[1,8], index: 5, kind: input, shape index: {}]   ;;  %s7124_s6 = inlined_call_operand.vmem [shape: f32[1,8], index: 6, kind: input, shape index: {}]   ;;  %s7125_s7 = inlined_call_operand.vmem [shape: f32[2,8,8,8], index: 7, kind: output, shape index: {}]  }
   0x1   :  { %v2043_v1 = vrot.slane %v4454_v0, 7  ;;  %v30_v2 = vld [vmem:[%s7118_s0 + $0x20] sm:$0xff]  ;;  %v31_v3 = vld [vmem:[%s7118_s0 + $0x28] sm:$0xff]  ;;  %v32_v4 = vld [vmem:[%s7118_s0 + $0x30] sm:$0xff]  ;;  %vm90_vm3 = vcmask 31744   ;;  %v223_v5 = vlaneseq  ;;  %vm7128_vm4 = vcmask 25600  }
   0x2   :  { %v33_v6 = vld [vmem:[%s7118_s0 + $0x38] sm:$0xff]  ;;  %v97_v7 = vsel %vm90_vm3, %v30_v2, -inf  ;;  %v98_v8 = vsel %vm90_vm3, %v32_v4, -inf  ;;  %v100_v9 = vsel %vm90_vm3, %v31_v3, -inf  ;;  %v4455_v19 = vmov 1983009808  }
   0x3   :  { %v4524_v10 = vsel %vm2077_vm0, 0.0, %v2043_v1  ;;  %v2095_v11 = vsel %vm2077_vm0, %v2043_v1, 0.0  ;;  %v99_v12 = vmax.f32 %v97_v7, %v98_v8  ;;  %v101_v13 = vsel %vm90_vm3, %v33_v6, -inf  ;;  %v26_v22 = vld [vmem:[%s7118_s0] sm:$0xff]  ;;  %v27_v25 = vld [vmem:[%s7118_s0 + $0x8] sm:$0xff]  ;;  %v28_v26 = vld [vmem:[%s7118_s0 + $0x10] sm:$0xff] }
   0x4   :  { %v2234_v14 = vrot.slane %v4524_v10, 2  ;;  %v2235_v15 = vrot.slane %v2095_v11, 2  ;;  %v2143_v16 = vrot.slane %v4524_v10, 1  ;;  %v2144_v17 = vrot.slane %v2095_v11, 1  ;;  %v29_v27 = vld [vmem:[%s7118_s0 + $0x18] sm:$0xff]  ;;  %v34_v31 = vld [vmem:[%s7118_s0 + $0x40] sm:$0xff] }
   0x5   :  { %v102_v18 = vmax.f32 %v100_v9, %v101_v13  ;;  %v221_v20 = vunpack.c.l.s4 %v4455_v19  ;;  %v224_v21 = vshrl.u32 %v223_v5, 7  ;;  %v253_v29 = vcombine.high %v99_v12, %v99_v12  ;;  %v36_v32 = vld [vmem:[%s7118_s0 + $0x50] sm:$0xff]  ;;  %s4458_s23 = smov 12   ;;  %s4459_s28 = smov 24  }
   0x6   :  { %v4534_v23 = vsel %vm7127_vm1, %v2234_v14, %v2235_v15  ;;  %v4537_v24 = vsel %vm7134_vm2, %v2143_v16, %v2144_v17  ;;  %v91_v33 = vsel %vm90_vm3, %v26_v22, -inf  ;;  %v92_v35 = vsel %vm90_vm3, %v28_v26, -inf  ;;  %s4460_s30 = smov 20   ;;  %s4461_s10 = smov 16  }
   0x7   :  { %2279 = vrot.lane.b32.xlu1 %v4534_v23, %s4456_s17  ;;  %2188 = vrot.lane.b32.xlu0 %v4537_v24, %s4457_s18  ;;  %v222_v28 = vunpack.c.0.s8 %v221_v20  ;;  %v270_v30 = vcombine.high %v102_v18, %v102_v18  ;;  %v94_v36 = vsel %vm90_vm3, %v27_v25, -inf  ;;  %v95_v37 = vsel %vm90_vm3, %v29_v27, -inf  ;;  %s4462_s11 = smov 28   ;;  %s4463_s14 = smov 32  }
   0x8   :  { %v4564_v38 = vmax.f32 %v91_v33, %v92_v35  ;;  %v4566_v39 = vmax.f32 %v94_v36, %v95_v37  ;;  %v4569_v40 = vsel %vm90_vm3, %v34_v31, -inf  ;;  %v4572_v41 = vsel %vm90_vm3, %v36_v32, -inf }
   0x9   :  { %v4559_v34 = vsub.s32 %v222_v28, %v224_v21  ;;  %vm7129_vm5 = vcmask 1041409   ;;  %vm1925_vm6 = vcmask 1042434   ;;  %vm7130_vm7 = vcmask 1043459  }
   0xa   :  { %v219_v46 = vcombine.high %v4564_v38, %v4564_v38  ;;  %v236_v48 = vcombine.high %v4566_v39, %v4566_v39  ;;  %vm7126_vm8 = vcmask 1044484   ;;  %vm1931_vm9 = vcmask 1045509  }
   0xb   :  { %v260_v42 = vrot.slane %v99_v12, %v4559_v34  ;;  %v267_v43 = vrot.slane %v253_v29, %v4559_v34  ;;  %v277_v44 = vrot.slane %v102_v18, %v4559_v34  ;;  %v284_v45 = vrot.slane %v270_v30, %v4559_v34 }
   0xc   :  { %v4582_v47 = vrot.slane %v4564_v38, %v4559_v34  ;;  %v4588_v49 = vrot.slane %v4566_v39, %v4559_v34  ;;  %vm1933_vm10 = vcmask 1046534   ;;  %vm1935_vm11 = vcmask 1047559  }
   0xd   :  { %v268_v50 = vcombine.high %v260_v42, %v260_v42  ;;  %v269_v51 = vcombine.high %v267_v43, %v267_v43  ;;  %v285_v52 = vcombine.high %v277_v44, %v277_v44  ;;  %v286_v53 = vcombine.high %v284_v45, %v284_v45 }
   0xe   :  { %v948_v54 = vsel %vm7128_vm4, %v260_v42, -inf  ;;  %v962_v55 = vsel %vm7128_vm4, %v267_v43, -inf  ;;  %v976_v56 = vsel %vm7128_vm4, %v277_v44, -inf  ;;  %v990_v57 = vsel %vm7128_vm4, %v284_v45, -inf }
   0xf   :  { %v949_v58 = vrot.slane %v948_v54, 4  ;;  %v955_v59 = vsel %vm7128_vm4, %v268_v50, -inf  ;;  %v963_v60 = vrot.slane %v962_v55, 4  ;;  %v969_v61 = vsel %vm7128_vm4, %v269_v51, -inf }
  0x10   :  { %v956_v62 = vrot.slane %v955_v59, 4  ;;  %v970_v63 = vrot.slane %v969_v61, 4  ;;  %v977_v0 = vrot.slane %v976_v56, 4  ;;  %v983_v1 = vsel %vm7128_vm4, %v285_v52, -inf }
  0x11   :  { %v950_v2 = vmax.f32 %v948_v54, %v949_v58  ;;  %v964_v3 = vmax.f32 %v962_v55, %v963_v60  ;;  %v984_v4 = vrot.slane %v983_v1, 4  ;;  %v991_v5 = vrot.slane %v990_v57, 4 }
  0x12   :  { %v957_v6 = vmax.f32 %v955_v59, %v956_v62  ;;  %v971_v7 = vmax.f32 %v969_v61, %v970_v63  ;;  %v978_v8 = vmax.f32 %v976_v56, %v977_v0  ;;  %v997_v9 = vsel %vm7128_vm4, %v286_v53, -inf }
  0x13   :  { %v951_v11 = vrot.slane %v950_v2, 2  ;;  %v965_v12 = vrot.slane %v964_v3, 2  ;;  %v985_v13 = vmax.f32 %v983_v1, %v984_v4  ;;  %v992_v14 = vmax.f32 %v990_v57, %v991_v5 }
  0x14   :  { %v958_v15 = vrot.slane %v957_v6, 2  ;;  %v972_v16 = vrot.slane %v971_v7, 2  ;;  %v979_v17 = vrot.slane %v978_v8, 2  ;;  %v998_v18 = vrot.slane %v997_v9, 4 }
  0x15   :  { %v952_v19 = vmax.f32 %v950_v2, %v951_v11  ;;  %v966_v20 = vmax.f32 %v964_v3, %v965_v12  ;;  %v986_v21 = vrot.slane %v985_v13, 2  ;;  %v993_v22 = vrot.slane %v992_v14, 2 }
  0x16   :  { %v959_v25 = vmax.f32 %v957_v6, %v958_v15  ;;  %v973_v26 = vmax.f32 %v971_v7, %v972_v16  ;;  %v980_v27 = vmax.f32 %v978_v8, %v979_v17  ;;  %v999_v28 = vmax.f32 %v997_v9, %v998_v18 }
  0x17   :  { %v953_v29 = vrot.slane %v952_v19, 1  ;;  %v967_v30 = vrot.slane %v966_v20, 1  ;;  %v987_v31 = vmax.f32 %v985_v13, %v986_v21  ;;  %v994_v32 = vmax.f32 %v992_v14, %v993_v22 }
  0x18   :  { %v960_v33 = vrot.slane %v959_v25, 1  ;;  %v974_v35 = vrot.slane %v973_v26, 1  ;;  %v981_v36 = vrot.slane %v980_v27, 1  ;;  %v1000_v37 = vrot.slane %v999_v28, 2 }
  0x19   :  { %v954_v42 = vmax.f32 %v952_v19, %v953_v29  ;;  %v968_v43 = vmax.f32 %v966_v20, %v967_v30  ;;  %v988_v44 = vrot.slane %v987_v31, 1  ;;  %v995_v45 = vrot.slane %v994_v32, 1 }
  0x1a   :  { %v961_v50 = vmax.f32 %v959_v25, %v960_v33  ;;  %v975_v51 = vmax.f32 %v973_v26, %v974_v35  ;;  %v982_v52 = vmax.f32 %v980_v27, %v981_v36  ;;  %v1001_v53 = vmax.f32 %v999_v28, %v1000_v37 }
  0x1b   :  { %v989_v54 = vmax.f32 %v987_v31, %v988_v44  ;;  %v996_v55 = vmax.f32 %v994_v32, %v995_v45  ;;  %v233_v56 = vrot.slane %v219_v46, %v4559_v34  ;;  %v234_v57 = vcombine.high %v4582_v47, %v4582_v47 }
  0x1c   :  { %v1002_v58 = vrot.slane %v1001_v53, 1  ;;  %v1937_v59 = vsel %vm7129_vm5, %v961_v50, %v954_v42  ;;  %v250_v60 = vrot.slane %v236_v48, %v4559_v34  ;;  %v251_v61 = vcombine.high %v4588_v49, %v4588_v49 }
  0x1d   :  { %v1938_v62 = vsel %vm1925_vm6, %v968_v43, %v1937_v59  ;;  %v235_v63 = vcombine.high %v233_v56, %v233_v56  ;;  %v892_v38 = vsel %vm7128_vm4, %v4582_v47, -inf  ;;  %v899_v46 = vsel %vm7128_vm4, %v234_v57, -inf  ;;  %v37_v57 = vld [vmem:[%s7118_s0 + $0x58] sm:$0xff] }
  0x1e   :  { %v1003_v0 = vmax.f32 %v1001_v53, %v1002_v58  ;;  %v1939_v1 = vsel %vm7130_vm7, %v975_v51, %v1938_v62  ;;  %v252_v2 = vcombine.high %v250_v60, %v250_v60  ;;  %v893_v3 = vrot.slane %v892_v38, 4 }
  0x1f   :  { %v1940_v4 = vsel %vm7126_vm8, %v982_v52, %v1939_v1  ;;  %v900_v39 = vrot.slane %v899_v46, 4  ;;  %v906_v48 = vsel %vm7128_vm4, %v233_v56, -inf  ;;  %v913_v5 = vsel %vm7128_vm4, %v235_v63, -inf  ;;  %v35_v56 = vld [vmem:[%s7118_s0 + $0x48] sm:$0xff] }
  0x20   :  { %v1941_v6 = vsel %vm1931_vm9, %v989_v54, %v1940_v4  ;;  %v894_v7 = vmax.f32 %v892_v38, %v893_v3  ;;  %v907_v8 = vrot.slane %v906_v48, 4  ;;  %v914_v9 = vrot.slane %v913_v5, 4  ;;  %v38_v4 = vld [vmem:[%s7118_s0 + $0x60] sm:$0xff] }
  0x21   :  { %v1942_v47 = vsel %vm1933_vm10, %v996_v55, %v1941_v6  ;;  %v901_v11 = vmax.f32 %v899_v46, %v900_v39  ;;  %v920_v12 = vsel %vm7128_vm4, %v4588_v49, -inf  ;;  %v927_v13 = vsel %vm7128_vm4, %v251_v61, -inf }
  0x22   :  { %v4625_v14 = vsel %vm1935_vm11, %v1003_v0, %v1942_v47  ;;  %v895_v15 = vrot.slane %v894_v7, 2  ;;  %v908_v16 = vmax.f32 %v906_v48, %v907_v8  ;;  %v915_v17 = vmax.f32 %v913_v5, %v914_v9 }
  0x23   :  { %v2045_v18 = vrot.slane %v4625_v14, 7  ;;  %v902_v19 = vrot.slane %v901_v11, 2  ;;  %v921_v20 = vrot.slane %v920_v12, 4  ;;  %v928_v21 = vrot.slane %v927_v13, 4 }
  0x24   :  { %v896_v22 = vmax.f32 %v894_v7, %v895_v15  ;;  %v909_v25 = vrot.slane %v908_v16, 2  ;;  %v916_v26 = vrot.slane %v915_v17, 2  ;;  %v934_v27 = vsel %vm7128_vm4, %v250_v60, -inf }
  0x25   :  { %v4632_v49 = vsel %vm2077_vm0, 0.0, %v2045_v18  ;;  %v903_v28 = vmax.f32 %v901_v11, %v902_v19  ;;  %v922_v29 = vmax.f32 %v920_v12, %v921_v20  ;;  %v929_v30 = vmax.f32 %v927_v13, %v928_v21 }
  0x26   :  { %2328 = vrot.lane.b32.xlu1 %v4632_v49, %s4458_s23  ;;  %v897_v31 = vrot.slane %v896_v22, 1  ;;  %v910_v32 = vmax.f32 %v908_v16, %v909_v25  ;;  %v917_v33 = vmax.f32 %v915_v17, %v916_v26  ;;  %v935_v35 = vrot.slane %v934_v27, 4 }
  0x27   :  { %v904_v36 = vrot.slane %v903_v28, 1  ;;  %v923_v37 = vrot.slane %v922_v29, 2  ;;  %v930_v42 = vrot.slane %v929_v30, 2  ;;  %v941_v43 = vsel %vm7128_vm4, %v252_v2, -inf }
  0x28   :  { %v898_v44 = vmax.f32 %v896_v22, %v897_v31  ;;  %v911_v45 = vrot.slane %v910_v32, 1  ;;  %v918_v50 = vrot.slane %v917_v33, 1  ;;  %v936_v51 = vmax.f32 %v934_v27, %v935_v35 }
  0x29   :  { %v905_v52 = vmax.f32 %v903_v28, %v904_v36  ;;  %v924_v53 = vmax.f32 %v922_v29, %v923_v37  ;;  %v931_v54 = vmax.f32 %v929_v30, %v930_v42  ;;  %v942_v55 = vrot.slane %v941_v43, 4 }
  0x2a   :  { %v912_v58 = vmax.f32 %v910_v32, %v911_v45  ;;  %v919_v59 = vmax.f32 %v917_v33, %v918_v50  ;;  %v937_v60 = vrot.slane %v936_v51, 2  ;;  %2484 = vrot.lane.b32.xlu1 %v4632_v49, %s4459_s28  ;;  %v105_v61 = vmax.f32 %v4569_v40, %v4572_v41  ;;  %v40_v40 = vld [vmem:[%s7118_s0 + $0x70] sm:$0xff] }
  0x2b   :  { %v925_v62 = vrot.slane %v924_v53, 1  ;;  %v932_v63 = vrot.slane %v931_v54, 1  ;;  %v943_v38 = vmax.f32 %v941_v43, %v942_v55  ;;  %v1924_v46 = vsel %vm7129_vm5, %v905_v52, %v898_v44 }
  0x2c   :  { %v938_v0 = vmax.f32 %v936_v51, %v937_v60  ;;  %v1926_v1 = vsel %vm1925_vm6, %v912_v58, %v1924_v46  ;;  %v106_v2 = vsel %vm90_vm3, %v35_v56, -inf  ;;  %v107_v3 = vsel %vm90_vm3, %v37_v57, -inf }
  0x2d   :  { %v926_v41 = vmax.f32 %v924_v53, %v925_v62  ;;  %v933_v39 = vmax.f32 %v931_v54, %v932_v63  ;;  %v944_v48 = vrot.slane %v943_v38, 2  ;;  %v1928_v5 = vsel %vm7130_vm7, %v919_v59, %v1926_v1 }
  0x2e   :  { %v939_v6 = vrot.slane %v938_v0, 1  ;;  %v108_v7 = vmax.f32 %v106_v2, %v107_v3  ;;  %v287_v8 = vcombine.high %v105_v61, %v105_v61  ;;  %v294_v9 = vrot.slane %v105_v61, %v4559_v34 }
  0x2f   :  { %v945_v47 = vmax.f32 %v943_v38, %v944_v48  ;;  %v1930_v11 = vsel %vm7126_vm8, %v926_v41, %v1928_v5  ;;  %v4661_v12 = vsel %vm90_vm3, %v38_v4, -inf  ;;  %v4664_v13 = vsel %vm90_vm3, %v40_v40, -inf }
  0x30   :  { %v940_v15 = vmax.f32 %v938_v0, %v939_v6  ;;  %v1932_v16 = vsel %vm1931_vm9, %v933_v39, %v1930_v11  ;;  %v301_v17 = vrot.slane %v287_v8, %v4559_v34  ;;  %v302_v19 = vcombine.high %v294_v9, %v294_v9 }
  0x31   :  { %v946_v20 = vrot.slane %v945_v47, 1  ;;  %v304_v21 = vcombine.high %v108_v7, %v108_v7  ;;  %v311_v22 = vrot.slane %v108_v7, %v4559_v34  ;;  %v1004_v25 = vsel %vm7128_vm4, %v294_v9, -inf }
  0x32   :  { %v1934_v26 = vsel %vm1933_vm10, %v940_v15, %v1932_v16  ;;  %v303_v27 = vcombine.high %v301_v17, %v301_v17  ;;  %v1005_v28 = vrot.slane %v1004_v25, 4  ;;  %v1011_v29 = vsel %vm7128_vm4, %v302_v19, -inf  ;;  %v39_v16 = vld [vmem:[%s7118_s0 + $0x68] sm:$0xff] }
  0x33   :  { %v947_v30 = vmax.f32 %v945_v47, %v946_v20  ;;  %v318_v31 = vrot.slane %v304_v21, %v4559_v34  ;;  %v319_v32 = vcombine.high %v311_v22, %v311_v22  ;;  %v1012_v33 = vrot.slane %v1011_v29, 4  ;;  %v41_v21 = vld [vmem:[%s7118_s0 + $0x78] sm:$0xff] }
  0x34   :  { %v1006_v35 = vmax.f32 %v1004_v25, %v1005_v28  ;;  %v1018_v36 = vsel %vm7128_vm4, %v301_v17, -inf  ;;  %v1025_v37 = vsel %vm7128_vm4, %v303_v27, -inf  ;;  %v1032_v42 = vsel %vm7128_vm4, %v311_v22, -inf }
  0x35   :  { %v4677_v43 = vsel %vm1935_vm11, %v947_v30, %v1934_v26  ;;  %v320_v44 = vcombine.high %v318_v31, %v318_v31  ;;  %v1013_v45 = vmax.f32 %v1011_v29, %v1012_v33  ;;  %v1019_v50 = vrot.slane %v1018_v36, 4 }
  0x36   :  { %v2044_v51 = vrot.slane %v4677_v43, 7  ;;  %v1007_v52 = vrot.slane %v1006_v35, 2  ;;  %v1026_v53 = vrot.slane %v1025_v37, 4  ;;  %v1033_v54 = vrot.slane %v1032_v42, 4 }
  0x37   :  { %v1014_v55 = vrot.slane %v1013_v45, 2  ;;  %v1020_v56 = vmax.f32 %v1018_v36, %v1019_v50  ;;  %v1039_v57 = vsel %vm7128_vm4, %v319_v32, -inf  ;;  %v1046_v58 = vsel %vm7128_vm4, %v318_v31, -inf }
  0x38   :  { %v4685_v59 = vsel %vm2077_vm0, 0.0, %v2044_v51  ;;  %v1008_v60 = vmax.f32 %v1006_v35, %v1007_v52  ;;  %v1027_v61 = vmax.f32 %v1025_v37, %v1026_v53  ;;  %v1034_v62 = vmax.f32 %v1032_v42, %v1033_v54 }
  0x39   :  { %2326 = vrot.lane.b32.xlu0 %v4685_v59, %s4458_s23  ;;  %v1015_v63 = vmax.f32 %v1013_v45, %v1014_v55  ;;  %v1021_v38 = vrot.slane %v1020_v56, 2  ;;  %v1040_v46 = vrot.slane %v1039_v57, 4  ;;  %v1047_v0 = vrot.slane %v1046_v58, 4 }
  0x3a   :  { %v1009_v1 = vrot.slane %v1008_v60, 1  ;;  %v1028_v2 = vrot.slane %v1027_v61, 2  ;;  %v1035_v3 = vrot.slane %v1034_v62, 2  ;;  %v1053_v4 = vsel %vm7128_vm4, %v320_v44, -inf }
  0x3b   :  { %v1016_v40 = vrot.slane %v1015_v63, 1  ;;  %v1022_v41 = vmax.f32 %v1020_v56, %v1021_v38  ;;  %v1041_v39 = vmax.f32 %v1039_v57, %v1040_v46  ;;  %v1048_v48 = vmax.f32 %v1046_v58, %v1047_v0 }
  0x3c   :  { %v1010_v5 = vmax.f32 %v1008_v60, %v1009_v1  ;;  %v1029_v6 = vmax.f32 %v1027_v61, %v1028_v2  ;;  %v1036_v7 = vmax.f32 %v1034_v62, %v1035_v3  ;;  %v1054_v8 = vrot.slane %v1053_v4, 4 }
  0x3d   :  { %v1017_v9 = vmax.f32 %v1015_v63, %v1016_v40  ;;  %v1023_v47 = vrot.slane %v1022_v41, 1  ;;  %v1042_v11 = vrot.slane %v1041_v39, 2  ;;  %v1049_v15 = vrot.slane %v1048_v48, 2 }
  0x3e   :  { %v1030_v17 = vrot.slane %v1029_v6, 1  ;;  %v1037_v19 = vrot.slane %v1036_v7, 1  ;;  %v1055_v20 = vmax.f32 %v1053_v4, %v1054_v8  ;;  %v111_v22 = vmax.f32 %v4661_v12, %v4664_v13 }
  0x3f   :  { %v1024_v25 = vmax.f32 %v1022_v41, %v1023_v47  ;;  %v1043_v26 = vmax.f32 %v1041_v39, %v1042_v11  ;;  %v1050_v27 = vmax.f32 %v1048_v48, %v1049_v15  ;;  %v1944_v28 = vsel %vm7129_vm5, %v1017_v9, %v1010_v5 }
  0x40   :  { %v1031_v29 = vmax.f32 %v1029_v6, %v1030_v17  ;;  %v1038_v30 = vmax.f32 %v1036_v7, %v1037_v19  ;;  %v1056_v31 = vrot.slane %v1055_v20, 2  ;;  %v112_v32 = vsel %vm90_vm3, %v39_v16, -inf }
  0x41   :  { %v1044_v33 = vrot.slane %v1043_v26, 1  ;;  %v1051_v35 = vrot.slane %v1050_v27, 1  ;;  %v1945_v36 = vsel %vm1925_vm6, %v1024_v25, %v1944_v28  ;;  %v113_v37 = vsel %vm90_vm3, %v41_v21, -inf }
  0x42   :  { %v1057_v42 = vmax.f32 %v1055_v20, %v1056_v31  ;;  %v1946_v44 = vsel %vm7130_vm7, %v1031_v29, %v1945_v36  ;;  %v114_v12 = vmax.f32 %v112_v32, %v113_v37  ;;  %v321_v13 = vcombine.high %v111_v22, %v111_v22 }
  0x43   :  { %v1045_v45 = vmax.f32 %v1043_v26, %v1044_v33  ;;  %v1052_v50 = vmax.f32 %v1050_v27, %v1051_v35  ;;  %v1947_v52 = vsel %vm7126_vm8, %v1038_v30, %v1946_v44  ;;  %v328_v53 = vrot.slane %v111_v22, %v4559_v34 }
  0x44   :  { %v1058_v54 = vrot.slane %v1057_v42, 1  ;;  %v335_v55 = vrot.slane %v321_v13, %v4559_v34  ;;  %v338_v56 = vcombine.high %v114_v12, %v114_v12  ;;  %v345_v57 = vrot.slane %v114_v12, %v4559_v34 }
  0x45   :  { %v1948_v58 = vsel %vm1931_vm9, %v1045_v45, %v1947_v52  ;;  %v336_v60 = vcombine.high %v328_v53, %v328_v53  ;;  %v1060_v61 = vsel %vm7128_vm4, %v328_v53, -inf  ;;  %v4712_v62 = vsel %vm2077_vm0, %v2044_v51, 0.0 }
  0x46   :  { %v1059_v63 = vmax.f32 %v1057_v42, %v1058_v54  ;;  %v1949_v38 = vsel %vm1933_vm10, %v1052_v50, %v1948_v58  ;;  %v337_v46 = vcombine.high %v335_v55, %v335_v55  ;;  %v352_v0 = vrot.slane %v338_v56, %v4559_v34 }
  0x47   :  { %v353_v1 = vcombine.high %v345_v57, %v345_v57  ;;  %v1061_v2 = vrot.slane %v1060_v61, 4  ;;  %v1067_v3 = vsel %vm7128_vm4, %v336_v60, -inf  ;;  %v1074_v4 = vsel %vm7128_vm4, %v335_v55, -inf }
  0x48   :  { %v4719_v40 = vsel %vm1935_vm11, %v1059_v63, %v1949_v38  ;;  %v354_v41 = vcombine.high %v352_v0, %v352_v0  ;;  %v1068_v43 = vrot.slane %v1067_v3, 4  ;;  %v1075_v39 = vrot.slane %v1074_v4, 4 }
  0x49   :  { %v2046_v51 = vrot.slane %v4719_v40, 7  ;;  %v1062_v48 = vmax.f32 %v1060_v61, %v1061_v2  ;;  %v1081_v5 = vsel %vm7128_vm4, %v337_v46, -inf  ;;  %v1088_v6 = vsel %vm7128_vm4, %v345_v57, -inf }
  0x4a   :  { %v1069_v7 = vmax.f32 %v1067_v3, %v1068_v43  ;;  %v1076_v8 = vmax.f32 %v1074_v4, %v1075_v39  ;;  %v1082_v9 = vrot.slane %v1081_v5, 4  ;;  %v1089_v47 = vrot.slane %v1088_v6, 4 }
  0x4b   :  { %v4727_v11 = vsel %vm2077_vm0, 0.0, %v2046_v51  ;;  %v1063_v15 = vrot.slane %v1062_v48, 2  ;;  %v1095_v16 = vsel %vm7128_vm4, %v353_v1, -inf  ;;  %v1102_v17 = vsel %vm7128_vm4, %v352_v0, -inf }
  0x4c   :  { %2486 = vrot.lane.b32.xlu0 %v4727_v11, %s4459_s28  ;;  %2330 = vrot.lane.b32.xlu1 %v4727_v11, %s4458_s23  ;;  %v1070_v19 = vrot.slane %v1069_v7, 2  ;;  %v1077_v20 = vrot.slane %v1076_v8, 2  ;;  %v1083_v21 = vmax.f32 %v1081_v5, %v1082_v9  ;;  %v1090_v22 = vmax.f32 %v1088_v6, %v1089_v47 }
  0x4d   :  { %v1064_v25 = vmax.f32 %v1062_v48, %v1063_v15  ;;  %v1096_v26 = vrot.slane %v1095_v16, 4  ;;  %v1103_v27 = vrot.slane %v1102_v17, 4  ;;  %v1109_v28 = vsel %vm7128_vm4, %v354_v41, -inf }
  0x4e   :  { %v1071_v29 = vmax.f32 %v1069_v7, %v1070_v19  ;;  %v1078_v30 = vmax.f32 %v1076_v8, %v1077_v20  ;;  %v1084_v31 = vrot.slane %v1083_v21, 2  ;;  %v1091_v32 = vrot.slane %v1090_v22, 2 }
  0x4f   :  { %v1065_v33 = vrot.slane %v1064_v25, 1  ;;  %v1097_v35 = vmax.f32 %v1095_v16, %v1096_v26  ;;  %v1104_v36 = vmax.f32 %v1102_v17, %v1103_v27  ;;  %v1110_v37 = vrot.slane %v1109_v28, 4 }
  0x50   :  { %v1072_v42 = vrot.slane %v1071_v29, 1  ;;  %v1079_v44 = vrot.slane %v1078_v30, 1  ;;  %v1085_v12 = vmax.f32 %v1083_v21, %v1084_v31  ;;  %v1092_v13 = vmax.f32 %v1090_v22, %v1091_v32  ;;  %v42_v22 = vld [vmem:[%s7118_s0 + $0x80] sm:$0xff] }
  0x51   :  { %v1066_v45 = vmax.f32 %v1064_v25, %v1065_v33  ;;  %v1098_v50 = vrot.slane %v1097_v35, 2  ;;  %v1105_v52 = vrot.slane %v1104_v36, 2  ;;  %v1111_v53 = vmax.f32 %v1109_v28, %v1110_v37  ;;  %v44_v25 = vld [vmem:[%s7118_s0 + $0x90] sm:$0xff]  ;;  %v43_v28 = vld [vmem:[%s7118_s0 + $0x88] sm:$0xff] }
  0x52   :  { %v1073_v54 = vmax.f32 %v1071_v29, %v1072_v42  ;;  %v1080_v55 = vmax.f32 %v1078_v30, %v1079_v44  ;;  %v1086_v56 = vrot.slane %v1085_v12, 1  ;;  %v1093_v57 = vrot.slane %v1092_v13, 1  ;;  %v45_v29 = vld [vmem:[%s7118_s0 + $0x98] sm:$0xff] }
  0x53   :  { %v1099_v58 = vmax.f32 %v1097_v35, %v1098_v50  ;;  %v1106_v60 = vmax.f32 %v1104_v36, %v1105_v52  ;;  %v1112_v61 = vrot.slane %v1111_v53, 2  ;;  %v2237_v63 = vrot.slane %v4685_v59, 2 }
  0x54   :  { %v1087_v38 = vmax.f32 %v1085_v12, %v1086_v56  ;;  %v1094_v46 = vmax.f32 %v1092_v13, %v1093_v57  ;;  %v1951_v0 = vsel %vm7129_vm5, %v1073_v54, %v1066_v45  ;;  %v2238_v1 = vrot.slane %v4712_v62, 2  ;;  %v48_v54 = vld [vmem:[%s7118_s0 + $0xb0] sm:$0xff] }
  0x55   :  { %v1100_v2 = vrot.slane %v1099_v58, 1  ;;  %v1107_v3 = vrot.slane %v1106_v60, 1  ;;  %v1113_v4 = vmax.f32 %v1111_v53, %v1112_v61  ;;  %v1952_v41 = vsel %vm1925_vm6, %v1080_v55, %v1951_v0  ;;  %v46_v53 = vld [vmem:[%s7118_s0 + $0xa0] sm:$0xff] }
  0x56   :  { %v1953_v43 = vsel %vm7130_vm7, %v1087_v38, %v1952_v41  ;;  %v2239_v39 = vsel %vm7127_vm1, %v2237_v63, %v2238_v1  ;;  %v2146_v48 = vrot.slane %v4685_v59, 1  ;;  %v2147_v5 = vrot.slane %v4712_v62, 1 }
  0x57   :  { %v1101_v6 = vmax.f32 %v1099_v58, %v1100_v2  ;;  %v1108_v7 = vmax.f32 %v1106_v60, %v1107_v3  ;;  %v1114_v8 = vrot.slane %v1113_v4, 1  ;;  %v1954_v9 = vsel %vm7126_vm8, %v1094_v46, %v1953_v43  ;;  %2281 = vrot.lane.b32.xlu1 %v2239_v39, %s4456_s17  ;;  %v47_v46 = vld [vmem:[%s7118_s0 + $0xa8] sm:$0xff] }
  0x58   :  { %v4747_v47 = vsel %vm7134_vm2, %v2146_v48, %v2147_v5  ;;  %v2097_v15 = vsel %vm2077_vm0, %v2045_v18, 0.0  ;;  %v2149_v16 = vrot.slane %v4632_v49, 1  ;;  %v2240_v17 = vrot.slane %v4632_v49, 2 }
  0x59   :  { %v1115_v19 = vmax.f32 %v1113_v4, %v1114_v8  ;;  %v1955_v62 = vsel %vm1931_vm9, %v1101_v6, %v1954_v9  ;;  %v2150_v20 = vrot.slane %v2097_v15, 1  ;;  %v2241_v21 = vrot.slane %v2097_v15, 2 }
  0x5a   :  { %v1956_v14 = vsel %vm1933_vm10, %v1108_v7, %v1955_v62  ;;  %v2098_v18 = vsel %vm2077_vm0, %v2046_v51, 0.0  ;;  %v2152_v26 = vrot.slane %v4727_v11, 1  ;;  %v2243_v27 = vrot.slane %v4727_v11, 2 }
  0x5b   :  { %v1957_v30 = vsel %vm1935_vm11, %v1115_v19, %v1956_v14  ;;  %v4775_v31 = vsel %vm7134_vm2, %v2149_v16, %v2150_v20  ;;  %v4778_v40 = vsel %vm7127_vm1, %v2240_v17, %v2241_v21  ;;  %v2153_v51 = vrot.slane %v2098_v18, 1 }
  0x5c   :  { %v2047_v32 = vrot.slane %v1957_v30, 7  ;;  %2192 = vrot.lane.b32.xlu1 %v4775_v31, %s4457_s18  ;;  %v2244_v33 = vrot.slane %v2098_v18, 2  ;;  %v115_v35 = vsel %vm90_vm3, %v42_v22, -inf  ;;  %v116_v36 = vsel %vm90_vm3, %v44_v25, -inf }
  0x5d   :  { %v4785_v37 = vsel %vm7134_vm2, %v2152_v26, %v2153_v51  ;;  %v117_v42 = vmax.f32 %v115_v35, %v116_v36  ;;  %v118_v44 = vsel %vm90_vm3, %v43_v28, -inf  ;;  %v119_v12 = vsel %vm90_vm3, %v45_v29, -inf }
  0x5e   :  { %v4790_v13 = vsel %vm2077_vm0, 0.0, %v2047_v32  ;;  %v4793_v45 = vsel %vm7127_vm1, %v2243_v27, %v2244_v33  ;;  %v2099_v50 = vsel %vm2077_vm0, %v2047_v32, 0.0  ;;  %v120_v52 = vmax.f32 %v118_v44, %v119_v12 }
  0x5f   :  { %2332 = vrot.lane.b32.xlu0 %v4790_v13, %s4458_s23  ;;  %v2155_v55 = vrot.slane %v4790_v13, 1  ;;  %v2156_v56 = vrot.slane %v2099_v50, 1  ;;  %v2246_v57 = vrot.slane %v4790_v13, 2  ;;  %v2247_v58 = vrot.slane %v2099_v50, 2 }
  0x60   :  { %2436 = vrot.lane.b32.xlu1 %v2239_v39, %s4460_s30  ;;  %v355_v60 = vcombine.high %v117_v42, %v117_v42  ;;  %v362_v61 = vrot.slane %v117_v42, %v4559_v34  ;;  %v372_v63 = vcombine.high %v120_v52, %v120_v52  ;;  %v379_v38 = vrot.slane %v120_v52, %v4559_v34 }
  0x61   :  { %v4813_v0 = vsel %vm7134_vm2, %v2155_v55, %v2156_v56  ;;  %v4816_v1 = vsel %vm7127_vm1, %v2246_v57, %v2247_v58  ;;  %v121_v2 = vsel %vm90_vm3, %v46_v53, -inf  ;;  %v122_v3 = vsel %vm90_vm3, %v48_v54, -inf }
  0x62   :  { %v369_v4 = vrot.slane %v355_v60, %v4559_v34  ;;  %v370_v41 = vcombine.high %v362_v61, %v362_v61  ;;  %v386_v43 = vrot.slane %v372_v63, %v4559_v34  ;;  %v387_v39 = vcombine.high %v379_v38, %v379_v38 }
  0x63   :  { %2190 = vrot.lane.b32.xlu0 %v4747_v47, %s4457_s18  ;;  %v1116_v48 = vsel %vm7128_vm4, %v362_v61, -inf  ;;  %v1144_v5 = vsel %vm7128_vm4, %v379_v38, -inf  ;;  %v4826_v6 = vmax.f32 %v121_v2, %v122_v3  ;;  %v4829_v7 = vsel %vm90_vm3, %v47_v46, -inf  ;;  %v49_v2 = vld [vmem:[%s7118_s0 + $0xb8] sm:$0xff] }
  0x64   :  { %2283 = vrot.lane.b32.xlu1 %v4778_v40, %s4456_s17  ;;  %v371_v8 = vcombine.high %v369_v4, %v369_v4  ;;  %v388_v9 = vcombine.high %v386_v43, %v386_v43  ;;  %v1117_v15 = vrot.slane %v1116_v48, 4  ;;  %v1123_v16 = vsel %vm7128_vm4, %v370_v41, -inf }
  0x65   :  { %v1124_v17 = vrot.slane %v1123_v16, 4  ;;  %v1130_v19 = vsel %vm7128_vm4, %v369_v4, -inf  ;;  %v1145_v62 = vrot.slane %v1144_v5, 4  ;;  %v1151_v20 = vsel %vm7128_vm4, %v387_v39, -inf }
  0x66   :  { %v1118_v21 = vmax.f32 %v1116_v48, %v1117_v15  ;;  %v1131_v22 = vrot.slane %v1130_v19, 4  ;;  %v1137_v25 = vsel %vm7128_vm4, %v371_v8, -inf  ;;  %v1152_v14 = vrot.slane %v1151_v20, 4 }
  0x67   :  { %2382 = vrot.lane.b32.xlu0 %v4747_v47, %s4461_s10  ;;  %v1125_v18 = vmax.f32 %v1123_v16, %v1124_v17  ;;  %v1138_v26 = vrot.slane %v1137_v25, 4  ;;  %v1146_v27 = vmax.f32 %v1144_v5, %v1145_v62  ;;  %v1158_v28 = vsel %vm7128_vm4, %v386_v43, -inf }
  0x68   :  { %2529 = vrot.lane.b32.xlu1 %v4775_v31, %s4462_s11  ;;  %v1119_v29 = vrot.slane %v1118_v21, 2  ;;  %v1132_v30 = vmax.f32 %v1130_v19, %v1131_v22  ;;  %v1153_v51 = vmax.f32 %v1151_v20, %v1152_v14  ;;  %v1159_v32 = vrot.slane %v1158_v28, 4 }
  0x69   :  { %v1126_v33 = vrot.slane %v1125_v18, 2  ;;  %v1139_v35 = vmax.f32 %v1137_v25, %v1138_v26  ;;  %v1147_v36 = vrot.slane %v1146_v27, 2  ;;  %v1165_v42 = vsel %vm7128_vm4, %v388_v9, -inf }
  0x6a   :  { %v1120_v44 = vmax.f32 %v1118_v21, %v1119_v29  ;;  %v1133_v47 = vrot.slane %v1132_v30, 2  ;;  %v1154_v12 = vrot.slane %v1153_v51, 2  ;;  %v1160_v50 = vmax.f32 %v1158_v28, %v1159_v32 }
  0x6b   :  { %2384 = vrot.lane.b32.xlu0 %v4775_v31, %s4461_s10  ;;  %v1127_v52 = vmax.f32 %v1125_v18, %v1126_v33  ;;  %v1140_v53 = vrot.slane %v1139_v35, 2  ;;  %v1148_v54 = vmax.f32 %v1146_v27, %v1147_v36  ;;  %v1166_v55 = vrot.slane %v1165_v42, 4 }
  0x6c   :  { %2386 = vrot.lane.b32.xlu1 %v4785_v37, %s4461_s10  ;;  %v1121_v56 = vrot.slane %v1120_v44, 1  ;;  %v1134_v57 = vmax.f32 %v1132_v30, %v1133_v47  ;;  %v1155_v58 = vmax.f32 %v1153_v51, %v1154_v12  ;;  %v1161_v60 = vrot.slane %v1160_v50, 2 }
  0x6d   :  { %v1128_v61 = vrot.slane %v1127_v52, 1  ;;  %v1141_v63 = vmax.f32 %v1139_v35, %v1140_v53  ;;  %v1149_v38 = vrot.slane %v1148_v54, 1  ;;  %v1167_v46 = vmax.f32 %v1165_v42, %v1166_v55 }
  0x6e   :  { %v1122_v31 = vmax.f32 %v1120_v44, %v1121_v56  ;;  %v1135_v3 = vrot.slane %v1134_v57, 1  ;;  %v1156_v4 = vrot.slane %v1155_v58, 1  ;;  %v1162_v41 = vmax.f32 %v1160_v50, %v1161_v60 }
  0x6f   :  { %2194 = vrot.lane.b32.xlu0 %v4785_v37, %s4457_s18  ;;  %v1129_v43 = vmax.f32 %v1127_v52, %v1128_v61  ;;  %v1142_v39 = vrot.slane %v1141_v63, 1  ;;  %v1150_v48 = vmax.f32 %v1148_v54, %v1149_v38  ;;  %v1168_v5 = vrot.slane %v1167_v46, 2 }
  0x70   :  { %2574 = vrot.lane.b32.xlu1 %v4778_v40, %s4463_s14  ;;  %v1136_v8 = vmax.f32 %v1134_v57, %v1135_v3  ;;  %v1157_v9 = vmax.f32 %v1155_v58, %v1156_v4  ;;  %v1163_v15 = vrot.slane %v1162_v41, 1  ;;  %v125_v16 = vsel %vm90_vm3, %v49_v2, -inf }
  0x71   :  { %v1143_v17 = vmax.f32 %v1141_v63, %v1142_v39  ;;  %v1169_v19 = vmax.f32 %v1167_v46, %v1168_v5  ;;  %v1958_v62 = vsel %vm7129_vm5, %v1129_v43, %v1122_v31  ;;  %v126_v20 = vmax.f32 %v4829_v7, %v125_v16 }
  0x72   :  { %v1164_v21 = vmax.f32 %v1162_v41, %v1163_v15  ;;  %v1959_v22 = vsel %vm1925_vm6, %v1136_v8, %v1958_v62  ;;  %v389_v25 = vcombine.high %v4826_v6, %v4826_v6  ;;  %v396_v14 = vrot.slane %v4826_v6, %v4559_v34 }
  0x73   :  { %2438 = vrot.lane.b32.xlu0 %v4778_v40, %s4460_s30  ;;  %v1170_v18 = vrot.slane %v1169_v19, 1  ;;  %v1960_v26 = vsel %vm7130_vm7, %v1143_v17, %v1959_v22  ;;  %v406_v27 = vcombine.high %v126_v20, %v126_v20  ;;  %v413_v28 = vrot.slane %v126_v20, %v4559_v34 }
  0x74   :  { %2388 = vrot.lane.b32.xlu1 %v4813_v0, %s4461_s10  ;;  %v1961_v7 = vsel %vm7126_vm8, %v1150_v48, %v1960_v26  ;;  %v403_v29 = vrot.slane %v389_v25, %v4559_v34  ;;  %v404_v30 = vcombine.high %v396_v14, %v396_v14  ;;  %v1172_v51 = vsel %vm7128_vm4, %v396_v14, -inf  ;;  %v50_v14 = vld [vmem:[%s7118_s0 + $0xc0] sm:$0xff] }
  0x75   :  { %v1171_v6 = vmax.f32 %v1169_v19, %v1170_v18  ;;  %v1962_v32 = vsel %vm1931_vm9, %v1157_v9, %v1961_v7  ;;  %v420_v40 = vrot.slane %v406_v27, %v4559_v34  ;;  %v421_v33 = vcombine.high %v413_v28, %v413_v28 }
  0x76   :  { %v1963_v35 = vsel %vm1933_vm10, %v1164_v21, %v1962_v32  ;;  %v405_v36 = vcombine.high %v403_v29, %v403_v29  ;;  %v1173_v42 = vrot.slane %v1172_v51, 4  ;;  %v1179_v44 = vsel %vm7128_vm4, %v404_v30, -inf  ;;  %v52_v32 = vld [vmem:[%s7118_s0 + $0xd0] sm:$0xff] }
  0x77   :  { %2285 = vrot.lane.b32.xlu0 %v4793_v45, %s4456_s17  ;;  %v1964_v47 = vsel %vm1935_vm11, %v1171_v6, %v1963_v35  ;;  %v422_v12 = vcombine.high %v420_v40, %v420_v40  ;;  %v1180_v50 = vrot.slane %v1179_v44, 4  ;;  %v1186_v52 = vsel %vm7128_vm4, %v403_v29, -inf  ;;  %v51_v6 = vld [vmem:[%s7118_s0 + $0xc8] sm:$0xff] }
  0x78   :  { %2576 = vrot.lane.b32.xlu1 %v4793_v45, %s4463_s14  ;;  %v2048_v53 = vrot.slane %v1964_v47, 7  ;;  %v1174_v54 = vmax.f32 %v1172_v51, %v1173_v42  ;;  %v1187_v55 = vrot.slane %v1186_v52, 4  ;;  %v1193_v56 = vsel %vm7128_vm4, %v405_v36, -inf }
  0x79   :  { %v1181_v57 = vmax.f32 %v1179_v44, %v1180_v50  ;;  %v1194_v58 = vrot.slane %v1193_v56, 4  ;;  %v1200_v60 = vsel %vm7128_vm4, %v413_v28, -inf  ;;  %v1207_v61 = vsel %vm7128_vm4, %v421_v33, -inf  ;;  %v53_v50 = vld [vmem:[%s7118_s0 + $0xd8] sm:$0xff] }
  0x7a   :  { %v4885_v63 = vsel %vm2077_vm0, 0.0, %v2048_v53  ;;  %v2100_v38 = vsel %vm2077_vm0, %v2048_v53, 0.0  ;;  %v1175_v46 = vrot.slane %v1174_v54, 2  ;;  %v1188_v2 = vmax.f32 %v1186_v52, %v1187_v55  ;;  %v54_v52 = vld [vmem:[%s7118_s0 + $0xe0] sm:$0xff] }
  0x7b   :  { %2531 = vrot.lane.b32.xlu0 %v4785_v37, %s4462_s11  ;;  %v2158_v31 = vrot.slane %v4885_v63, 1  ;;  %v2159_v3 = vrot.slane %v2100_v38, 1  ;;  %v2249_v4 = vrot.slane %v4885_v63, 2  ;;  %v2250_v41 = vrot.slane %v2100_v38, 2 }
  0x7c   :  { %2287 = vrot.lane.b32.xlu1 %v4816_v1, %s4456_s17  ;;  %v1176_v43 = vmax.f32 %v1174_v54, %v1175_v46  ;;  %v1182_v39 = vrot.slane %v1181_v57, 2  ;;  %v1189_v48 = vrot.slane %v1188_v2, 2  ;;  %v1195_v5 = vmax.f32 %v1193_v56, %v1194_v58 }
  0x7d   :  { %v4895_v8 = vsel %vm7134_vm2, %v2158_v31, %v2159_v3  ;;  %v4898_v9 = vsel %vm7127_vm1, %v2249_v4, %v2250_v41  ;;  %v1201_v37 = vrot.slane %v1200_v60, 4  ;;  %v1208_v15 = vrot.slane %v1207_v61, 4 }
  0x7e   :  { %v1177_v16 = vrot.slane %v1176_v43, 1  ;;  %v1183_v17 = vmax.f32 %v1181_v57, %v1182_v39  ;;  %v1190_v19 = vmax.f32 %v1188_v2, %v1189_v48  ;;  %v1196_v62 = vrot.slane %v1195_v5, 2  ;;  %v56_v2 = vld [vmem:[%s7118_s0 + $0xf0] sm:$0xff] }
  0x7f   :  { %2196 = vrot.lane.b32.xlu0 %v4813_v0, %s4457_s18  ;;  %v1202_v20 = vmax.f32 %v1200_v60, %v1201_v37  ;;  %v1209_v21 = vmax.f32 %v1207_v61, %v1208_v15  ;;  %v1214_v22 = vsel %vm7128_vm4, %v420_v40, -inf  ;;  %v1221_v25 = vsel %vm7128_vm4, %v422_v12, -inf }
  0x80   :  { %2488 = vrot.lane.b32.xlu1 %v4790_v13, %s4459_s28  ;;  %v1178_v18 = vmax.f32 %v1176_v43, %v1177_v16  ;;  %v1184_v26 = vrot.slane %v1183_v17, 1  ;;  %v1191_v27 = vrot.slane %v1190_v19, 1  ;;  %v1197_v28 = vmax.f32 %v1195_v5, %v1196_v62 }
  0x81   :  { %v1203_v7 = vrot.slane %v1202_v20, 2  ;;  %v1210_v29 = vrot.slane %v1209_v21, 2  ;;  %v1215_v30 = vrot.slane %v1214_v22, 4  ;;  %v1222_v51 = vrot.slane %v1221_v25, 4 }
  0x82   :  { %v1185_v40 = vmax.f32 %v1183_v17, %v1184_v26  ;;  %v1192_v33 = vmax.f32 %v1190_v19, %v1191_v27  ;;  %v1198_v35 = vrot.slane %v1197_v28, 1  ;;  %v127_v36 = vsel %vm90_vm3, %v50_v14, -inf }
  0x83   :  { %2440 = vrot.lane.b32.xlu0 %v4793_v45, %s4460_s30  ;;  %v1204_v42 = vmax.f32 %v1202_v20, %v1203_v7  ;;  %v1211_v44 = vmax.f32 %v1209_v21, %v1210_v29  ;;  %v1216_v47 = vmax.f32 %v1214_v22, %v1215_v30  ;;  %v1223_v12 = vmax.f32 %v1221_v25, %v1222_v51 }
  0x84   :  { %2334 = vrot.lane.b32.xlu1 %v4885_v63, %s4458_s23  ;;  %v1199_v53 = vmax.f32 %v1197_v28, %v1198_v35  ;;  %v1965_v54 = vsel %vm7129_vm5, %v1185_v40, %v1178_v18  ;;  %v128_v45 = vsel %vm90_vm3, %v52_v32, -inf  ;;  %v130_v55 = vsel %vm90_vm3, %v51_v6, -inf }
  0x85   :  { %v1205_v56 = vrot.slane %v1204_v42, 1  ;;  %v1212_v57 = vrot.slane %v1211_v44, 1  ;;  %v1217_v58 = vrot.slane %v1216_v47, 2  ;;  %v1224_v60 = vrot.slane %v1223_v12, 2 }
  0x86   :  { %v1966_v61 = vsel %vm1925_vm6, %v1192_v33, %v1965_v54  ;;  %v129_v38 = vmax.f32 %v127_v36, %v128_v45  ;;  %v131_v46 = vsel %vm90_vm3, %v53_v50, -inf  ;;  %v4935_v31 = vsel %vm90_vm3, %v54_v52, -inf }
  0x87   :  { %2198 = vrot.lane.b32.xlu0 %v4895_v8, %s4457_s18  ;;  %v1206_v3 = vmax.f32 %v1204_v42, %v1205_v56  ;;  %v1213_v4 = vmax.f32 %v1211_v44, %v1212_v57  ;;  %v1218_v41 = vmax.f32 %v1216_v47, %v1217_v58  ;;  %v1225_v43 = vmax.f32 %v1223_v12, %v1224_v60 }
  0x88   :  { %2533 = vrot.lane.b32.xlu1 %v4813_v0, %s4462_s11  ;;  %v1967_v39 = vsel %vm7130_vm7, %v1199_v53, %v1966_v61  ;;  %v132_v48 = vmax.f32 %v130_v55, %v131_v46  ;;  %v423_v5 = vcombine.high %v129_v38, %v129_v38  ;;  %v430_v37 = vrot.slane %v129_v38, %v4559_v34 }
  0x89   :  { %v1219_v15 = vrot.slane %v1218_v41, 1  ;;  %v1226_v16 = vrot.slane %v1225_v43, 1  ;;  %v1968_v17 = vsel %vm7126_vm8, %v1206_v3, %v1967_v39  ;;  %v4945_v19 = vsel %vm90_vm3, %v56_v2, -inf }
  0x8a   :  { %v1969_v62 = vsel %vm1931_vm9, %v1213_v4, %v1968_v17  ;;  %v437_v20 = vrot.slane %v423_v5, %v4559_v34  ;;  %v438_v21 = vcombine.high %v430_v37, %v430_v37  ;;  %v440_v22 = vcombine.high %v132_v48, %v132_v48 }
  0x8b   :  { %2442 = vrot.lane.b32.xlu0 %v4816_v1, %s4460_s30  ;;  %v1220_v0 = vmax.f32 %v1218_v41, %v1219_v15  ;;  %v1227_v25 = vmax.f32 %v1225_v43, %v1226_v16  ;;  %v447_v14 = vrot.slane %v132_v48, %v4559_v34  ;;  %v1228_v18 = vsel %vm7128_vm4, %v430_v37, -inf }
  0x8c   :  { %2390 = vrot.lane.b32.xlu1 %v4895_v8, %s4461_s10  ;;  %v439_v26 = vcombine.high %v437_v20, %v437_v20  ;;  %v454_v27 = vrot.slane %v440_v22, %v4559_v34  ;;  %v1229_v28 = vrot.slane %v1228_v18, 4  ;;  %v1235_v7 = vsel %vm7128_vm4, %v438_v21, -inf }
  0x8d   :  { %v1970_v29 = vsel %vm1933_vm10, %v1220_v0, %v1969_v62  ;;  %v455_v30 = vcombine.high %v447_v14, %v447_v14  ;;  %v1236_v51 = vrot.slane %v1235_v7, 4  ;;  %v1242_v6 = vsel %vm7128_vm4, %v437_v20, -inf }
  0x8e   :  { %v1971_v32 = vsel %vm1935_vm11, %v1227_v25, %v1970_v29  ;;  %v456_v40 = vcombine.high %v454_v27, %v454_v27  ;;  %v1230_v33 = vmax.f32 %v1228_v18, %v1229_v28  ;;  %v1243_v35 = vrot.slane %v1242_v6, 4  ;;  %v55_v28 = vld [vmem:[%s7118_s0 + $0xe8] sm:$0xff] }
  0x8f   :  { %2289 = vrot.lane.b32.xlu0 %v4898_v9, %s4456_s17  ;;  %v2049_v36 = vrot.slane %v1971_v32, 7  ;;  %v1237_v42 = vmax.f32 %v1235_v7, %v1236_v51  ;;  %v1249_v44 = vsel %vm7128_vm4, %v439_v26, -inf  ;;  %v1256_v47 = vsel %vm7128_vm4, %v447_v14, -inf }
  0x90   :  { %2578 = vrot.lane.b32.xlu1 %v4816_v1, %s4463_s14  ;;  %v1231_v12 = vrot.slane %v1230_v33, 2  ;;  %v1244_v50 = vmax.f32 %v1242_v6, %v1243_v35  ;;  %v1250_v52 = vrot.slane %v1249_v44, 4  ;;  %v1257_v53 = vrot.slane %v1256_v47, 4 }
  0x91   :  { %v4967_v54 = vsel %vm2077_vm0, 0.0, %v2049_v36  ;;  %v2101_v45 = vsel %vm2077_vm0, %v2049_v36, 0.0  ;;  %v1238_v55 = vrot.slane %v1237_v42, 2  ;;  %v1263_v56 = vsel %vm7128_vm4, %v455_v30, -inf }
  0x92   :  { %v2161_v57 = vrot.slane %v4967_v54, 1  ;;  %v2162_v58 = vrot.slane %v2101_v45, 1  ;;  %v2252_v60 = vrot.slane %v4967_v54, 2  ;;  %v2253_v61 = vrot.slane %v2101_v45, 2 }
  0x93   :  { %2490 = vrot.lane.b32.xlu0 %v4885_v63, %s4459_s28  ;;  %v1232_v1 = vmax.f32 %v1230_v33, %v1231_v12  ;;  %v1239_v38 = vmax.f32 %v1237_v42, %v1238_v55  ;;  %v1245_v46 = vrot.slane %v1244_v50, 2  ;;  %v1251_v2 = vmax.f32 %v1249_v44, %v1250_v52 }
  0x94   :  { %v4976_v3 = vsel %vm7134_vm2, %v2161_v57, %v2162_v58  ;;  %v4979_v4 = vsel %vm7127_vm1, %v2252_v60, %v2253_v61  ;;  %v1258_v41 = vmax.f32 %v1256_v47, %v1257_v53  ;;  %v1264_v43 = vrot.slane %v1263_v56, 4 }
  0x95   :  { %2392 = vrot.lane.b32.xlu1 %v4976_v3, %s4461_s10  ;;  %v1233_v39 = vrot.slane %v1232_v1, 1  ;;  %v1240_v48 = vrot.slane %v1239_v38, 1  ;;  %v1246_v5 = vmax.f32 %v1244_v50, %v1245_v46  ;;  %v1252_v37 = vrot.slane %v1251_v2, 2 }
  0x96   :  { %v1259_v15 = vrot.slane %v1258_v41, 2  ;;  %v1265_v16 = vmax.f32 %v1263_v56, %v1264_v43  ;;  %v1270_v17 = vsel %vm7128_vm4, %v454_v27, -inf  ;;  %v1277_v62 = vsel %vm7128_vm4, %v456_v40, -inf  ;;  %v57_v27 = vld [vmem:[%s7118_s0 + $0xf8] sm:$0xff] }
  0x97   :  { %2336 = vrot.lane.b32.xlu0 %v4967_v54, %s4458_s23  ;;  %v1234_v20 = vmax.f32 %v1232_v1, %v1233_v39  ;;  %v1241_v21 = vmax.f32 %v1239_v38, %v1240_v48  ;;  %v1247_v22 = vrot.slane %v1246_v5, 1  ;;  %v1253_v0 = vmax.f32 %v1251_v2, %v1252_v37 }
  0x98   :  { %v1260_v25 = vmax.f32 %v1258_v41, %v1259_v15  ;;  %v1266_v14 = vrot.slane %v1265_v16, 2  ;;  %v1271_v18 = vrot.slane %v1270_v17, 4  ;;  %v1278_v26 = vrot.slane %v1277_v62, 4 }
  0x99   :  { %2580 = vrot.lane.b32.xlu1 %v4898_v9, %s4463_s14  ;;  %v1248_v7 = vmax.f32 %v1246_v5, %v1247_v22  ;;  %v1254_v29 = vrot.slane %v1253_v0, 1  ;;  %v1972_v30 = vsel %vm7129_vm5, %v1241_v21, %v1234_v20  ;;  %v135_v51 = vmax.f32 %v4935_v31, %v4945_v19 }
  0x9a   :  { %v1261_v6 = vrot.slane %v1260_v25, 1  ;;  %v1267_v32 = vmax.f32 %v1265_v16, %v1266_v14  ;;  %v1272_v40 = vmax.f32 %v1270_v17, %v1271_v18  ;;  %v1279_v33 = vmax.f32 %v1277_v62, %v1278_v26 }
  0x9b   :  { %2535 = vrot.lane.b32.xlu0 %v4895_v8, %s4462_s11  ;;  %v1255_v35 = vmax.f32 %v1253_v0, %v1254_v29  ;;  %v1973_v36 = vsel %vm1925_vm6, %v1248_v7, %v1972_v30  ;;  %v136_v42 = vsel %vm90_vm3, %v55_v28, -inf  ;;  %v137_v44 = vsel %vm90_vm3, %v57_v27, -inf }
  0x9c   :  { %v1262_v47 = vmax.f32 %v1260_v25, %v1261_v6  ;;  %v1268_v12 = vrot.slane %v1267_v32, 1  ;;  %v1273_v50 = vrot.slane %v1272_v40, 2  ;;  %v1280_v52 = vrot.slane %v1279_v33, 2 }
  0x9d   :  { %2291 = vrot.lane.b32.xlu1 %v4979_v4, %s4456_s17  ;;  %v1974_v31 = vsel %vm7130_vm7, %v1255_v35, %v1973_v36  ;;  %v138_v19 = vmax.f32 %v136_v42, %v137_v44  ;;  %v457_v53 = vcombine.high %v135_v51, %v135_v51  ;;  %v464_v8 = vrot.slane %v135_v51, %v4559_v34 }
  0x9e   :  { %v1269_v45 = vmax.f32 %v1267_v32, %v1268_v12  ;;  %v1274_v55 = vmax.f32 %v1272_v40, %v1273_v50  ;;  %v1281_v56 = vmax.f32 %v1279_v33, %v1280_v52  ;;  %v1975_v57 = vsel %vm7126_vm8, %v1262_v47, %v1974_v31 }
  0x9f   :  { %2200 = vrot.lane.b32.xlu0 %v4976_v3, %s4457_s18  ;;  %v471_v58 = vrot.slane %v457_v53, %v4559_v34  ;;  %v472_v60 = vcombine.high %v464_v8, %v464_v8  ;;  %v474_v61 = vcombine.high %v138_v19, %v138_v19  ;;  %v481_v1 = vrot.slane %v138_v19, %v4559_v34 }
  0xa0   :  { %v1275_v38 = vrot.slane %v1274_v55, 1  ;;  %v1282_v46 = vrot.slane %v1281_v56, 1  ;;  %v1976_v2 = vsel %vm1931_vm9, %v1269_v45, %v1975_v57  ;;  %v1284_v41 = vsel %vm7128_vm4, %v464_v8, -inf }
  0xa1   :  { %2492 = vrot.lane.b32.xlu1 %v4967_v54, %s4459_s28  ;;  %v473_v43 = vcombine.high %v471_v58, %v471_v58  ;;  %v488_v39 = vrot.slane %v474_v61, %v4559_v34  ;;  %v489_v48 = vcombine.high %v481_v1, %v481_v1  ;;  %v1285_v5 = vrot.slane %v1284_v41, 4 }
  0xa2   :  { %v1276_v37 = vmax.f32 %v1274_v55, %v1275_v38  ;;  %v1283_v15 = vmax.f32 %v1281_v56, %v1282_v46  ;;  %v1291_v16 = vsel %vm7128_vm4, %v472_v60, -inf  ;;  %v1298_v17 = vsel %vm7128_vm4, %v471_v58, -inf  ;;  %v58_v38 = vld [vmem:[%s7118_s0 + $0x100] sm:$0xff] }
  0xa3   :  { %2444 = vrot.lane.b32.xlu0 %v4898_v9, %s4460_s30  ;;  %v490_v62 = vcombine.high %v488_v39, %v488_v39  ;;  %v1286_v20 = vmax.f32 %v1284_v41, %v1285_v5  ;;  %v1292_v21 = vrot.slane %v1291_v16, 4  ;;  %v1299_v22 = vrot.slane %v1298_v17, 4 }
  0xa4   :  { %v1977_v0 = vsel %vm1933_vm10, %v1276_v37, %v1976_v2  ;;  %v1305_v25 = vsel %vm7128_vm4, %v473_v43, -inf  ;;  %v1312_v14 = vsel %vm7128_vm4, %v481_v1, -inf  ;;  %v1319_v18 = vsel %vm7128_vm4, %v489_v48, -inf }
  0xa5   :  { %v1978_v26 = vsel %vm1935_vm11, %v1283_v15, %v1977_v0  ;;  %v1287_v28 = vrot.slane %v1286_v20, 2  ;;  %v1293_v27 = vmax.f32 %v1291_v16, %v1292_v21  ;;  %v1300_v7 = vmax.f32 %v1298_v17, %v1299_v22 }
  0xa6   :  { %v2050_v29 = vrot.slane %v1978_v26, 7  ;;  %v1306_v30 = vrot.slane %v1305_v25, 4  ;;  %v1313_v9 = vrot.slane %v1312_v14, 4  ;;  %v1320_v51 = vrot.slane %v1319_v18, 4 }
  0xa7   :  { %v1288_v6 = vmax.f32 %v1286_v20, %v1287_v28  ;;  %v1294_v32 = vrot.slane %v1293_v27, 2  ;;  %v1301_v40 = vrot.slane %v1300_v7, 2  ;;  %v1326_v33 = vsel %vm7128_vm4, %v488_v39, -inf  ;;  %v60_v39 = vld [vmem:[%s7118_s0 + $0x110] sm:$0xff] }
  0xa8   :  { %v5028_v35 = vsel %vm2077_vm0, 0.0, %v2050_v29  ;;  %v2102_v36 = vsel %vm2077_vm0, %v2050_v29, 0.0  ;;  %v1307_v42 = vmax.f32 %v1305_v25, %v1306_v30  ;;  %v1314_v44 = vmax.f32 %v1312_v14, %v1313_v9  ;;  %v61_v25 = vld [vmem:[%s7118_s0 + $0x118] sm:$0xff] }
  0xa9   :  { %v2164_v47 = vrot.slane %v5028_v35, 1  ;;  %v2165_v12 = vrot.slane %v2102_v36, 1  ;;  %2338 = vrot.lane.b32.xlu1 %v5028_v35, %s4458_s23  ;;  %v2255_v50 = vrot.slane %v5028_v35, 2  ;;  %v2256_v52 = vrot.slane %v2102_v36, 2 }
  0xaa   :  { %v1289_v31 = vrot.slane %v1288_v6, 1  ;;  %v1295_v19 = vmax.f32 %v1293_v27, %v1294_v32  ;;  %v1302_v53 = vmax.f32 %v1300_v7, %v1301_v40  ;;  %v1308_v8 = vrot.slane %v1307_v42, 2  ;;  %v5066_v7 = vpop.permute.xlu1 %2279 }
  0xab   :  { %v5036_v45 = vsel %vm7134_vm2, %v2164_v47, %v2165_v12  ;;  %v5039_v55 = vsel %vm7127_vm1, %v2255_v50, %v2256_v52  ;;  %v1315_v56 = vrot.slane %v1314_v44, 2  ;;  %v1321_v57 = vmax.f32 %v1319_v18, %v1320_v51 }
  0xac   :  { %2202 = vrot.lane.b32.xlu0 %v5036_v45, %s4457_s18  ;;  %v1290_v58 = vmax.f32 %v1288_v6, %v1289_v31  ;;  %v1296_v60 = vrot.slane %v1295_v19, 1  ;;  %v1303_v61 = vrot.slane %v1302_v53, 1  ;;  %v1309_v1 = vmax.f32 %v1307_v42, %v1308_v8 }
  0xad   :  { %2537 = vrot.lane.b32.xlu1 %v4976_v3, %s4462_s11  ;;  %v1316_v46 = vmax.f32 %v1314_v44, %v1315_v56  ;;  %v1322_v2 = vrot.slane %v1321_v57, 2  ;;  %v1327_v41 = vrot.slane %v1326_v33, 4  ;;  %v1333_v43 = vsel %vm7128_vm4, %v490_v62, -inf  ;;  %v59_v3 = vld [vmem:[%s7118_s0 + $0x108] sm:$0xff] }
  0xae   :  { %v1297_v48 = vmax.f32 %v1295_v19, %v1296_v60  ;;  %v1304_v5 = vmax.f32 %v1302_v53, %v1303_v61  ;;  %v1310_v37 = vrot.slane %v1309_v1, 1  ;;  %v1334_v15 = vrot.slane %v1333_v43, 4 }
  0xaf   :  { %v1317_v16 = vrot.slane %v1316_v46, 1  ;;  %v1323_v17 = vmax.f32 %v1321_v57, %v1322_v2  ;;  %v1328_v20 = vmax.f32 %v1326_v33, %v1327_v41  ;;  %v139_v21 = vsel %vm90_vm3, %v58_v38, -inf }
  0xb0   :  { %2446 = vrot.lane.b32.xlu0 %v4979_v4, %s4460_s30  ;;  %v1311_v62 = vmax.f32 %v1309_v1, %v1310_v37  ;;  %v1335_v22 = vmax.f32 %v1333_v43, %v1334_v15  ;;  %v1979_v0 = vsel %vm7129_vm5, %v1297_v48, %v1290_v58  ;;  %v140_v14 = vsel %vm90_vm3, %v60_v39, -inf  ;;  %v5081_v58 = vpop.permute.xlu1 %2328 }
  0xb1   :  { %2394 = vrot.lane.b32.xlu1 %v5036_v45, %s4461_s10  ;;  %v1318_v18 = vmax.f32 %v1316_v46, %v1317_v16  ;;  %v1324_v26 = vrot.slane %v1323_v17, 1  ;;  %v1329_v28 = vrot.slane %v1328_v20, 2  ;;  %v1980_v27 = vsel %vm1925_vm6, %v1304_v5, %v1979_v0 }
  0xb2   :  { %v1336_v29 = vrot.slane %v1335_v22, 2  ;;  %v1981_v30 = vsel %vm7130_vm7, %v1311_v62, %v1980_v27  ;;  %v141_v9 = vmax.f32 %v139_v21, %v140_v14  ;;  %v142_v51 = vsel %vm90_vm3, %v59_v3, -inf }
  0xb3   :  { %v1325_v6 = vmax.f32 %v1323_v17, %v1324_v26  ;;  %v1330_v32 = vmax.f32 %v1328_v20, %v1329_v28  ;;  %v1982_v40 = vsel %vm7126_vm8, %v1318_v18, %v1981_v30  ;;  %v143_v33 = vsel %vm90_vm3, %v61_v25, -inf }
  0xb4   :  { %2293 = vrot.lane.b32.xlu0 %v5039_v55, %s4456_s17  ;;  %v1337_v36 = vmax.f32 %v1335_v22, %v1336_v29  ;;  %v144_v42 = vmax.f32 %v142_v51, %v143_v33  ;;  %v491_v44 = vcombine.high %v141_v9, %v141_v9  ;;  %v498_v47 = vrot.slane %v141_v9, %v4559_v34  ;;  %v5099_v18 = vpop.permute.xlu1 %2484 }
  0xb5   :  { %v1331_v12 = vrot.slane %v1330_v32, 1  ;;  %v1983_v50 = vsel %vm1931_vm9, %v1325_v6, %v1982_v40  ;;  %2582 = vrot.lane.b32.xlu1 %v4979_v4, %s4463_s14  ;;  %vm2634_vm12 = vcmask 64512   ;;  %vm7132_vm13 = vcmask 97280  }
  0xb6   :  { %v1338_v52 = vrot.slane %v1337_v36, 1  ;;  %v505_v31 = vrot.slane %v491_v44, %v4559_v34  ;;  %v506_v19 = vcombine.high %v498_v47, %v498_v47  ;;  %v508_v53 = vcombine.high %v144_v42, %v144_v42 }
  0xb7   :  { %v1332_v8 = vmax.f32 %v1330_v32, %v1331_v12  ;;  %v515_v56 = vrot.slane %v144_v42, %v4559_v34  ;;  %v1340_v57 = vsel %vm7128_vm4, %v498_v47, -inf  ;;  %v2189_v32 = vpop.permute.xlu0 %2188  ;;  %vm7131_vm14 = vcmask 130048  }
  0xb8   :  { %2494 = vrot.lane.b32.xlu0 %v5028_v35, %s4459_s28  ;;  %v1339_v60 = vmax.f32 %v1337_v36, %v1338_v52  ;;  %v507_v61 = vcombine.high %v505_v31, %v505_v31  ;;  %v522_v1 = vrot.slane %v508_v53, %v4559_v34  ;;  %v1341_v4 = vrot.slane %v1340_v57, 4 }
  0xb9   :  { %v1984_v38 = vsel %vm1933_vm10, %v1332_v8, %v1983_v50  ;;  %2448 = vrot.lane.b32.xlu1 %v5039_v55, %s4460_s30  ;;  %v523_v46 = vcombine.high %v515_v56, %v515_v56  ;;  %v1347_v2 = vsel %vm7128_vm4, %v506_v19, -inf  ;;  %v1354_v41 = vsel %vm7128_vm4, %v505_v31, -inf }
  0xba   :  { %v1985_v43 = vsel %vm1935_vm11, %v1339_v60, %v1984_v38  ;;  %v524_v39 = vcombine.high %v522_v1, %v522_v1  ;;  %v1342_v48 = vmax.f32 %v1340_v57, %v1341_v4  ;;  %v1348_v5 = vrot.slane %v1347_v2, 4 }
  0xbb   :  { %v2051_v37 = vrot.slane %v1985_v43, 7  ;;  %v1355_v15 = vrot.slane %v1354_v41, 4  ;;  %v1361_v16 = vsel %vm7128_vm4, %v507_v61, -inf  ;;  %v1368_v17 = vsel %vm7128_vm4, %v515_v56, -inf }
  0xbc   :  { %v1343_v20 = vrot.slane %v1342_v48, 2  ;;  %v1349_v3 = vmax.f32 %v1347_v2, %v1348_v5  ;;  %v1362_v21 = vrot.slane %v1361_v16, 4  ;;  %v1369_v62 = vrot.slane %v1368_v17, 4 }
  0xbd   :  { %v5095_v22 = vsel %vm2077_vm0, 0.0, %v2051_v37  ;;  %v2103_v0 = vsel %vm2077_vm0, %v2051_v37, 0.0  ;;  %v1356_v25 = vmax.f32 %v1354_v41, %v1355_v15  ;;  %v1375_v14 = vsel %vm7128_vm4, %v523_v46, -inf }
  0xbe   :  { %2340 = vrot.lane.b32.xlu0 %v5095_v22, %s4458_s23  ;;  %v2376_v26 = vrot.slane %v5095_v22, 1  ;;  %v2377_v28 = vrot.slane %v2103_v0, 1  ;;  %v1344_v27 = vmax.f32 %v1342_v48, %v1343_v20  ;;  %v1350_v29 = vrot.slane %v1349_v3, 2  ;;  %v5111_v61 = vpop.permute.xlu1 %2330  ;;  %v5114_v48 = vpop.permute.xlu0 %2326 }
  0xbf   :  { %v1357_v30 = vrot.slane %v1356_v25, 2  ;;  %v1363_v9 = vmax.f32 %v1361_v16, %v1362_v21  ;;  %v1370_v51 = vmax.f32 %v1368_v17, %v1369_v62  ;;  %v1376_v6 = vrot.slane %v1375_v14, 4  ;;  %v62_v16 = vld [vmem:[%s7118_s0 + $0x120] sm:$0xff]  ;;  %v64_v62 = vld [vmem:[%s7118_s0 + $0x130] sm:$0xff] }
  0xc0   :  { %v5105_v40 = vsel %vm7134_vm2, %v2376_v26, %v2377_v28  ;;  %v1345_v33 = vrot.slane %v1344_v27, 1  ;;  %v1351_v36 = vmax.f32 %v1349_v3, %v1350_v29  ;;  %v1382_v42 = vsel %vm7128_vm4, %v522_v1, -inf  ;;  %v65_v28 = vld [vmem:[%s7118_s0 + $0x138] sm:$0xff] }
  0xc1   :  { %v1358_v44 = vmax.f32 %v1356_v25, %v1357_v30  ;;  %v1364_v47 = vrot.slane %v1363_v9, 2  ;;  %v1371_v12 = vrot.slane %v1370_v51, 2  ;;  %v1377_v50 = vmax.f32 %v1375_v14, %v1376_v6 }
  0xc2   :  { %2539 = vrot.lane.b32.xlu0 %v5036_v45, %s4462_s11  ;;  %v1346_v52 = vmax.f32 %v1344_v27, %v1345_v33  ;;  %v1352_v31 = vrot.slane %v1351_v36, 1  ;;  %v1383_v19 = vrot.slane %v1382_v42, 4  ;;  %v1389_v53 = vsel %vm7128_vm4, %v524_v39, -inf }
  0xc3   :  { %v1359_v8 = vrot.slane %v1358_v44, 1  ;;  %v1365_v56 = vmax.f32 %v1363_v9, %v1364_v47  ;;  %v1372_v57 = vmax.f32 %v1370_v51, %v1371_v12  ;;  %v1378_v60 = vrot.slane %v1377_v50, 2 }
  0xc4   :  { %v1353_v4 = vmax.f32 %v1351_v36, %v1352_v31  ;;  %v1384_v1 = vmax.f32 %v1382_v42, %v1383_v19  ;;  %v1390_v38 = vrot.slane %v1389_v53, 4  ;;  %v2430_v46 = vrot.slane %v5095_v22, 2 }
  0xc5   :  { %v1360_v2 = vmax.f32 %v1358_v44, %v1359_v8  ;;  %v1366_v41 = vrot.slane %v1365_v56, 1  ;;  %v1373_v43 = vrot.slane %v1372_v57, 1  ;;  %v1379_v45 = vmax.f32 %v1377_v50, %v1378_v60  ;;  %v5146_v44 = vpop.permute.xlu0 %2486 }
  0xc6   :  { %2396 = vrot.lane.b32.xlu0 %v5105_v40, %s4461_s10  ;;  %v1385_v39 = vrot.slane %v1384_v1, 2  ;;  %v1391_v5 = vmax.f32 %v1389_v53, %v1390_v38  ;;  %v1986_v37 = vsel %vm7129_vm5, %v1353_v4, %v1346_v52  ;;  %v2431_v15 = vrot.slane %v2103_v0, 2  ;;  %v63_v0 = vld [vmem:[%s7118_s0 + $0x128] sm:$0xff] }
  0xc7   :  { %v1367_v17 = vmax.f32 %v1365_v56, %v1366_v41  ;;  %v1374_v20 = vmax.f32 %v1372_v57, %v1373_v43  ;;  %v1380_v3 = vrot.slane %v1379_v45, 1  ;;  %v1987_v21 = vsel %vm1925_vm6, %v1360_v2, %v1986_v37 }
  0xc8   :  { %v1386_v25 = vmax.f32 %v1384_v1, %v1385_v39  ;;  %v1392_v14 = vrot.slane %v1391_v5, 2  ;;  %v2619_v26 = vsel %vm90_vm3, %v4524_v10, %v2189_v32  ;;  %v5136_v30 = vsel %vm7127_vm1, %v2430_v46, %v2431_v15 }
  0xc9   :  { %v1381_v27 = vmax.f32 %v1379_v45, %v1380_v3  ;;  %v1988_v29 = vsel %vm7130_vm7, %v1367_v17, %v1987_v21  ;;  %v145_v9 = vsel %vm90_vm3, %v62_v16, -inf  ;;  %v5139_v51 = vpop.permute.xlu1 %2281  ;;  %v146_v36 = vsel %vm90_vm3, %v64_v62, -inf }
  0xca   :  { %v1387_v6 = vrot.slane %v1386_v25, 1  ;;  %v1393_v32 = vmax.f32 %v1391_v5, %v1392_v14  ;;  %v1989_v33 = vsel %vm7126_vm8, %v1374_v20, %v1988_v29  ;;  %2584 = vrot.lane.b32.xlu0 %v5039_v55, %s4463_s14  ;;  %v147_v47 = vmax.f32 %v145_v9, %v146_v36 }
  0xcb   :  { %v1990_v42 = vsel %vm1931_vm9, %v1381_v27, %v1989_v33  ;;  %v148_v12 = vsel %vm90_vm3, %v63_v0, -inf  ;;  %v149_v50 = vsel %vm90_vm3, %v65_v28, -inf  ;;  %v5159_v1 = vsel %vm2634_vm12, %v2619_v26, %v5066_v7 }
  0xcc   :  { %v1388_v52 = vmax.f32 %v1386_v25, %v1387_v6  ;;  %v1394_v31 = vrot.slane %v1393_v32, 1  ;;  %v150_v19 = vmax.f32 %v148_v12, %v149_v50  ;;  %v525_v53 = vcombine.high %v147_v47, %v147_v47 }
  0xcd   :  { %v532_v8 = vrot.slane %v147_v47, %v4559_v34  ;;  %vm2684_vm15 = vcmask 162816  }
  0xce   :  { %v1395_v56 = vmax.f32 %v1393_v32, %v1394_v31  ;;  %v1991_v55 = vsel %vm1933_vm10, %v1388_v52, %v1990_v42  ;;  %2450 = vrot.lane.b32.xlu0 %v5136_v30, %s4460_s30  ;;  %v542_v57 = vcombine.high %v150_v19, %v150_v19  ;;  %v549_v60 = vrot.slane %v150_v19, %v4559_v34  ;;  %v5155_v4 = vpop.permute.xlu1 %2192 }
  0xcf   :  { %v539_v38 = vrot.slane %v525_v53, %v4559_v34  ;;  %v540_v46 = vcombine.high %v532_v8, %v532_v8  ;;  %v1396_v2 = vsel %vm7128_vm4, %v532_v8, -inf }
  0xd0   :  { %v1992_v41 = vsel %vm1935_vm11, %v1395_v56, %v1991_v55  ;;  %v556_v43 = vrot.slane %v542_v57, %v4559_v34  ;;  %v557_v45 = vcombine.high %v549_v60, %v549_v60  ;;  %v1397_v39 = vrot.slane %v1396_v2, 4 }
  0xd1   :  { %v2052_v5 = vrot.slane %v1992_v41, 7  ;;  %v5165_v37 = vpop.permute.xlu0 %2332  ;;  %v541_v15 = vcombine.high %v539_v38, %v539_v38  ;;  %v1403_v16 = vsel %vm7128_vm4, %v540_v46, -inf  ;;  %v1410_v7 = vsel %vm7128_vm4, %v539_v38, -inf }
  0xd2   :  { %v558_v17 = vcombine.high %v556_v43, %v556_v43  ;;  %v1398_v20 = vmax.f32 %v1396_v2, %v1397_v39  ;;  %v1404_v3 = vrot.slane %v1403_v16, 4  ;;  %v1411_v21 = vrot.slane %v1410_v7, 4  ;;  %v5169_v62 = vpop.permute.xlu1 %2436 }
  0xd3   :  { %v5172_v25 = vsel %vm2077_vm0, 0.0, %v2052_v5  ;;  %v2104_v14 = vsel %vm2077_vm0, %v2052_v5, 0.0  ;;  %v1417_v26 = vsel %vm7128_vm4, %v541_v15, -inf  ;;  %v1424_v0 = vsel %vm7128_vm4, %v549_v60, -inf }
  0xd4   :  { %v2167_v28 = vrot.slane %v5172_v25, 1  ;;  %v2168_v27 = vrot.slane %v2104_v14, 1  ;;  %v2258_v29 = vrot.slane %v5172_v25, 2  ;;  %v2259_v9 = vrot.slane %v2104_v14, 2 }
  0xd5   :  { %v1399_v6 = vrot.slane %v1398_v20, 2  ;;  %v1405_v32 = vmax.f32 %v1403_v16, %v1404_v3  ;;  %v1412_v33 = vmax.f32 %v1410_v7, %v1411_v21  ;;  %v1418_v36 = vrot.slane %v1417_v26, 4  ;;  %v2191_v42 = vpop.permute.xlu0 %2190 }
  0xd6   :  { %v5180_v47 = vsel %vm7134_vm2, %v2167_v28, %v2168_v27  ;;  %v5183_v12 = vsel %vm7127_vm1, %v2258_v29, %v2259_v9  ;;  %v1425_v50 = vrot.slane %v1424_v0, 4  ;;  %v1431_v52 = vsel %vm7128_vm4, %v557_v45, -inf  ;;  %v5186_v31 = vpop.permute.xlu1 %2283 }
  0xd7   :  { %2204 = vrot.lane.b32.xlu1 %v5180_v47, %s4457_s18  ;;  %2295 = vrot.lane.b32.xlu0 %v5183_v12, %s4456_s17  ;;  %v1400_v19 = vmax.f32 %v1398_v20, %v1399_v6  ;;  %v1406_v53 = vrot.slane %v1405_v32, 2  ;;  %v1413_v8 = vrot.slane %v1412_v33, 2  ;;  %v1419_v56 = vmax.f32 %v1417_v26, %v1418_v36 }
  0xd8   :  { %v1426_v55 = vmax.f32 %v1424_v0, %v1425_v50  ;;  %v1432_v57 = vrot.slane %v1431_v52, 4  ;;  %v1438_v60 = vsel %vm7128_vm4, %v556_v43, -inf  ;;  %v1445_v38 = vsel %vm7128_vm4, %v558_v17, -inf }
  0xd9   :  { %v1401_v46 = vrot.slane %v1400_v19, 1  ;;  %v1407_v2 = vmax.f32 %v1405_v32, %v1406_v53  ;;  %v1414_v41 = vmax.f32 %v1412_v33, %v1413_v8  ;;  %v1420_v45 = vrot.slane %v1419_v56, 2  ;;  %v2383_v39 = vpop.permute.xlu0 %2382 }
  0xda   :  { %v1427_v5 = vrot.slane %v1426_v55, 2  ;;  %v1433_v15 = vmax.f32 %v1431_v52, %v1432_v57  ;;  %v1439_v16 = vrot.slane %v1438_v60, 4  ;;  %v1446_v7 = vrot.slane %v1445_v38, 4  ;;  %v5194_v3 = vpop.permute.xlu1 %2529  ;;  %v66_v52 = vld [vmem:[%s7118_s0 + $0x140] sm:$0xff] }
  0xdb   :  { %2496 = vrot.lane.b32.xlu1 %v5095_v22, %s4459_s28  ;;  %2498 = vrot.lane.b32.xlu0 %v4524_v10, %s4459_s28  ;;  %v1402_v43 = vmax.f32 %v1400_v19, %v1401_v46  ;;  %v1408_v20 = vrot.slane %v1407_v2, 1  ;;  %v1415_v17 = vrot.slane %v1414_v41, 1  ;;  %v1421_v21 = vmax.f32 %v1419_v56, %v1420_v45 }
  0xdc   :  { %v1428_v14 = vmax.f32 %v1426_v55, %v1427_v5  ;;  %v1434_v26 = vrot.slane %v1433_v15, 2  ;;  %v1440_v0 = vmax.f32 %v1438_v60, %v1439_v16  ;;  %v1447_v28 = vmax.f32 %v1445_v38, %v1446_v7  ;;  %v68_v38 = vld [vmem:[%s7118_s0 + $0x150] sm:$0xff]  ;;  %v67_v16 = vld [vmem:[%s7118_s0 + $0x148] sm:$0xff]  ;;  %v69_v7 = vld [vmem:[%s7118_s0 + $0x158] sm:$0xff] }
  0xdd   :  { %v2651_v27 = vsel %vm7132_vm13, %v5159_v1, %v5114_v48  ;;  %v1409_v29 = vmax.f32 %v1407_v2, %v1408_v20  ;;  %v1416_v9 = vmax.f32 %v1414_v41, %v1415_v17  ;;  %v1422_v6 = vrot.slane %v1421_v21, 1  ;;  %v2385_v32 = vpop.permute.xlu0 %2384 }
  0xde   :  { %v1429_v22 = vrot.slane %v1428_v14, 1  ;;  %v1435_v33 = vmax.f32 %v1433_v15, %v1434_v26  ;;  %v1441_v36 = vrot.slane %v1440_v0, 2  ;;  %v1448_v50 = vrot.slane %v1447_v28, 2  ;;  %v5206_v19 = vpop.permute.xlu1 %2386 }
  0xdf   :  { %2342 = vrot.lane.b32.xlu1 %v5172_v25, %s4458_s23  ;;  %v1423_v53 = vmax.f32 %v1421_v21, %v1422_v6  ;;  %v1993_v48 = vsel %vm7129_vm5, %v1409_v29, %v1402_v43  ;;  %v2620_v8 = vsel %vm90_vm3, %v4685_v59, %v2191_v42  ;;  %v2621_v2 = vsel %vm90_vm3, %v4632_v49, %v5155_v4 }
  0xe0   :  { %v1430_v56 = vmax.f32 %v1428_v14, %v1429_v22  ;;  %v1436_v55 = vrot.slane %v1435_v33, 1  ;;  %v1442_v57 = vmax.f32 %v1440_v0, %v1441_v36  ;;  %v1449_v60 = vmax.f32 %v1447_v28, %v1448_v50 }
  0xe1   :  { %v1994_v46 = vsel %vm1925_vm6, %v1416_v9, %v1993_v48  ;;  %v5220_v41 = vpop.permute.xlu0 %2194  ;;  %v151_v59 = vsel %vm90_vm3, %v66_v52, -inf  ;;  %v2636_v4 = vsel %vm2634_vm12, %v2620_v8, %v5139_v51  ;;  %v2668_v20 = vsel %vm7131_vm14, %v2651_v27, %v2383_v39 }
  0xe2   :  { %v1437_v42 = vmax.f32 %v1435_v33, %v1436_v55  ;;  %v1443_v45 = vrot.slane %v1442_v57, 1  ;;  %v1450_v5 = vrot.slane %v1449_v60, 1  ;;  %v1995_v15 = vsel %vm7130_vm7, %v1423_v53, %v1994_v46  ;;  %v5230_v43 = vpop.permute.xlu1 %2574 }
  0xe3   :  { %2541 = vrot.lane.b32.xlu1 %v5105_v40, %s4462_s11  ;;  %v1996_v49 = vsel %vm7126_vm8, %v1430_v56, %v1995_v15  ;;  %v152_v17 = vsel %vm90_vm3, %v68_v38, -inf  ;;  %v2685_v28 = vsel %vm2684_vm15, %v2668_v20, %v5169_v62  ;;  %v154_v29 = vsel %vm90_vm3, %v67_v16, -inf }
  0xe4   :  { %v1444_v21 = vmax.f32 %v1442_v57, %v1443_v45  ;;  %v1451_v14 = vmax.f32 %v1449_v60, %v1450_v5  ;;  %v1997_v26 = vsel %vm1931_vm9, %v1437_v42, %v1996_v49  ;;  %v153_v0 = vmax.f32 %v151_v59, %v152_v17 }
  0xe5   :  { %v155_v40 = vsel %vm90_vm3, %v69_v7, -inf  ;;  %vm2701_vm8 = vcmask 195584   ;;  %v5244_v9 = vpop.permute.xlu0 %2438  ;;  %v2652_v33 = vsel %vm7132_vm13, %v2636_v4, %v5081_v58  ;;  %v5257_v36 = vsel %vm2634_vm12, %v2621_v2, %v5186_v31 }
  0xe6   :  { %v1998_v51 = vsel %vm1933_vm10, %v1444_v21, %v1997_v26  ;;  %v156_v39 = vmax.f32 %v154_v29, %v155_v40  ;;  %v559_v27 = vcombine.high %v153_v0, %v153_v0  ;;  %v566_v6 = vrot.slane %v153_v0, %v4559_v34  ;;  %v5248_v22 = vpop.permute.xlu1 %2388 }
  0xe7   :  { %2398 = vrot.lane.b32.xlu1 %v5180_v47, %s4461_s10  ;;  %v1999_v62 = vsel %vm1935_vm11, %v1451_v14, %v1998_v51  ;;  %v5261_v8 = vsel %vm7131_vm14, %v2652_v33, %v2385_v32  ;;  %v5267_v55 = vsel %vm2701_vm8, %v2685_v28, %v5099_v18 }
  0xe8   :  { %v2053_v50 = vrot.slane %v1999_v62, 7  ;;  %v573_v52 = vrot.slane %v559_v27, %v4559_v34  ;;  %v574_v53 = vcombine.high %v566_v6, %v566_v6  ;;  %v576_v48 = vcombine.high %v156_v39, %v156_v39 }
  0xe9   :  { %v583_v56 = vrot.slane %v156_v39, %v4559_v34  ;;  %v1452_v47 = vsel %vm7128_vm4, %v566_v6, -inf  ;;  %v5269_v58 = vpop.permute.xlu0 %2285 }
  0xea   :  { %v5272_v31 = vsel %vm2077_vm0, 0.0, %v2053_v50  ;;  %v2105_v57 = vsel %vm2077_vm0, %v2053_v50, 0.0  ;;  %v575_v60 = vcombine.high %v573_v52, %v573_v52  ;;  %v590_v38 = vrot.slane %v576_v48, %v4559_v34  ;;  %v5276_v32 = vpop.permute.xlu1 %2576 }
  0xeb   :  { %2344 = vrot.lane.b32.xlu0 %v5272_v31, %s4458_s23  ;;  %2586 = vrot.lane.b32.xlu1 %v5136_v30, %s4463_s14  ;;  %v2170_v18 = vrot.slane %v5272_v31, 1  ;;  %v2171_v46 = vrot.slane %v2105_v57, 1  ;;  %v2261_v2 = vrot.slane %v5272_v31, 2  ;;  %v2262_v59 = vrot.slane %v2105_v57, 2 }
  0xec   :  { %v591_v42 = vcombine.high %v583_v56, %v583_v56  ;;  %v592_v45 = vcombine.high %v590_v38, %v590_v38  ;;  %v1453_v5 = vrot.slane %v1452_v47, 4  ;;  %v1459_v15 = vsel %vm7128_vm4, %v574_v53, -inf }
  0xed   :  { %v5286_v16 = vsel %vm7134_vm2, %v2170_v18, %v2171_v46  ;;  %v5289_v7 = vsel %vm7127_vm1, %v2261_v2, %v2262_v59  ;;  %v1460_v49 = vrot.slane %v1459_v15, 4  ;;  %v1466_v30 = vsel %vm7128_vm4, %v573_v52, -inf  ;;  %v5292_v4 = vpop.permute.xlu0 %2531 }
  0xee   :  { %v1454_v20 = vmax.f32 %v1452_v47, %v1453_v5  ;;  %v1467_v17 = vrot.slane %v1466_v30, 4  ;;  %v1473_v21 = vsel %vm7128_vm4, %v575_v60, -inf  ;;  %v1480_v14 = vsel %vm7128_vm4, %v583_v56, -inf  ;;  %v5301_v40 = vpop.permute.xlu1 %2287 }
  0xef   :  { %2543 = vrot.lane.b32.xlu0 %v4537_v24, %s4462_s11  ;;  %2400 = vrot.lane.b32.xlu1 %v5286_v16, %s4461_s10  ;;  %v1461_v26 = vmax.f32 %v1459_v15, %v1460_v49  ;;  %v1474_v0 = vrot.slane %v1473_v21, 4  ;;  %v1481_v28 = vrot.slane %v1480_v14, 4  ;;  %v1487_v29 = vsel %vm7128_vm4, %v591_v42, -inf }
  0xf0   :  { %v1455_v51 = vrot.slane %v1454_v20, 2  ;;  %v1468_v39 = vmax.f32 %v1466_v30, %v1467_v17  ;;  %v1488_v27 = vrot.slane %v1487_v29, 4  ;;  %v1494_v6 = vsel %vm7128_vm4, %v590_v38, -inf }
  0xf1   :  { %vm2718_vm1 = vcmask 228352   ;;  %v1462_v62 = vrot.slane %v1461_v26, 2  ;;  %v1475_v33 = vmax.f32 %v1473_v21, %v1474_v0  ;;  %v1482_v50 = vmax.f32 %v1480_v14, %v1481_v28  ;;  %v5304_v53 = vpop.permute.xlu0 %2196 }
  0xf2   :  { %v1495_v52 = vrot.slane %v1494_v6, 4  ;;  %v1456_v48 = vmax.f32 %v1454_v20, %v1455_v51  ;;  %v1469_v56 = vrot.slane %v1468_v39, 2  ;;  %v1489_v47 = vmax.f32 %v1487_v29, %v1488_v27 }
  0xf3   :  { %v1501_v57 = vsel %vm7128_vm4, %v592_v45, -inf  ;;  %2206 = vrot.lane.b32.xlu0 %v5286_v16, %s4457_s18  ;;  %2588 = vrot.lane.b32.xlu1 %v4534_v23, %s4463_s14  ;;  %v1463_v60 = vmax.f32 %v1461_v26, %v1462_v62  ;;  %v1476_v38 = vrot.slane %v1475_v33, 2  ;;  %v1483_v18 = vrot.slane %v1482_v50, 2  ;;  %v5313_v45 = vpop.permute.xlu1 %2488 }
  0xf4   :  { %v1496_v46 = vmax.f32 %v1494_v6, %v1495_v52  ;;  %v1457_v2 = vrot.slane %v1456_v48, 1  ;;  %v1470_v59 = vmax.f32 %v1468_v39, %v1469_v56  ;;  %v1490_v42 = vrot.slane %v1489_v47, 2 }
  0xf5   :  { %v1502_v5 = vrot.slane %v1501_v57, 4  ;;  %v1464_v15 = vrot.slane %v1463_v60, 1  ;;  %v1477_v49 = vmax.f32 %v1475_v33, %v1476_v38  ;;  %v1484_v30 = vmax.f32 %v1482_v50, %v1483_v18  ;;  %v5311_v17 = vpop.permute.xlu0 %2440  ;;  %v1792_v50 = vld [vmem:[%s7119_s1 + $0x20] sm:$0xf] }
  0xf6   :  { %v1497_v20 = vrot.slane %v1496_v46, 2  ;;  %v1458_v21 = vmax.f32 %v1456_v48, %v1457_v2  ;;  %v1471_v14 = vrot.slane %v1470_v59, 1  ;;  %v1491_v0 = vmax.f32 %v1489_v47, %v1490_v42  ;;  %v70_v2 = vld [vmem:[%s7118_s0 + $0x160] sm:$0xff] }
  0xf7   :  { %v1503_v28 = vmax.f32 %v1501_v57, %v1502_v5  ;;  %2452 = vrot.lane.b32.xlu0 %v5183_v12, %s4460_s30  ;;  %2297 = vrot.lane.b32.xlu1 %v5289_v7, %s4456_s17  ;;  %v1465_v26 = vmax.f32 %v1463_v60, %v1464_v15  ;;  %v1478_v29 = vrot.slane %v1477_v49, 1  ;;  %v1485_v51 = vrot.slane %v1484_v30, 1  ;;  %v5344_v42 = vpop.permute.xlu1 %2334 }
  0xf8   :  { %v1498_v39 = vmax.f32 %v1496_v46, %v1497_v20  ;;  %v1472_v27 = vmax.f32 %v1470_v59, %v1471_v14  ;;  %v1492_v6 = vrot.slane %v1491_v0, 1  ;;  %v2686_v33 = vsel %vm2684_vm15, %v5261_v8, %v5244_v9  ;;  %v1791_v9 = vld [vmem:[%s7119_s1 + $0x18] sm:$0xff]  ;;  %v72_v59 = vld [vmem:[%s7118_s0 + $0x170] sm:$0xff] }
  0xf9   :  { %v1504_v62 = vrot.slane %v1503_v28, 2  ;;  %v1479_v52 = vmax.f32 %v1477_v49, %v1478_v29  ;;  %v1486_v12 = vmax.f32 %v1484_v30, %v1485_v51  ;;  %v2000_v56 = vsel %vm7129_vm5, %v1465_v26, %v1458_v21  ;;  %v5326_v47 = vpop.permute.xlu0 %2198  ;;  %v1790_v49 = vld [vmem:[%s7119_s1 + $0x10] sm:$0xff]  ;;  %v71_v30 = vld [vmem:[%s7118_s0 + $0x168] sm:$0xff]  ;;  %v73_v20 = vld [vmem:[%s7118_s0 + $0x178] sm:$0xff] }
  0xfa   :  { %v1499_v48 = vrot.slane %v1498_v39, 1  ;;  %v1493_v57 = vmax.f32 %v1491_v0, %v1492_v6  ;;  %v2001_v38 = vsel %vm1925_vm6, %v1472_v27, %v2000_v56  ;;  %vm2801_vm4 = vcmask 1043456  }
  0xfb   :  { %v1505_v60 = vmax.f32 %v1503_v28, %v1504_v62  ;;  %v2002_v18 = vsel %vm7130_vm7, %v1479_v52, %v2001_v38  ;;  %v2719_v46 = vsel %vm2718_vm1, %v5267_v55, %v5194_v3  ;;  %2500 = vrot.lane.b32.xlu1 %v5272_v31, %s4459_s28  ;;  %4342 = vmatprep.subr.msk.mxu0 %vm2801_vm4, %v1792_v50  ;;  %vm7133_vm5 = vcmask 261120   ;;  %v1788_v62 = vld [vmem:[%s7119_s1] sm:$0xff] }
  0xfc   :  { %v1500_v8 = vmax.f32 %v1498_v39, %v1499_v48  ;;  %vm7139_vm7 = vcmask 1044484   ;;  %v2653_v3 = vsel %vm7132_vm13, %v5257_v36, %v5111_v61  ;;  %4343 = vmatpush3.msk.msra.mxu0 %vm2801_vm4, %v1792_v50  ;;  %v2736_v55 = vsel %vm7133_vm5, %v2719_v46, %v5230_v43 }
  0xfd   :  { %v1506_v5 = vrot.slane %v1505_v60, 1  ;;  %v2003_v15 = vsel %vm7139_vm7, %v1486_v12, %v2002_v18  ;;  %v2622_v61 = vsel %vm90_vm3, %v4727_v11, %v5220_v41  ;;  %v2670_v43 = vsel %vm7131_vm14, %v2653_v3, %v5206_v19  ;;  %4344 = vmatprep.subr.mxu0 %v1791_v9  ;;  %v5367_v21 = vpop.permute.xlu0 %2442  ;;  %v1789_v11 = vld [vmem:[%s7119_s1 + $0x8] sm:$0xff]  ;;  %v5399_v12 = vpop.permute.xlu1 %2533 }
  0xfe   :  { %v2004_v36 = vsel %vm1931_vm9, %v1493_v57, %v2003_v15  ;;  %vm2752_vm4 = vcmask 293888   ;;  %v2638_v28 = vsel %vm2634_vm12, %v2622_v61, %v5269_v58  ;;  %4345 = vmatpush3.msra.mxu0 %v1791_v9  ;;  %v157_v41 = vsel %vm90_vm3, %v70_v2, -inf }
  0xff   :  { %v1507_v14 = vmax.f32 %v1505_v60, %v1506_v5  ;;  %v2005_v0 = vsel %vm1933_vm10, %v1500_v8, %v2004_v36  ;;  %4352 = vmatprep.mubr.msk.f32.mxu0 %vm2752_vm4, %v2736_v55  ;;  %v2703_v19 = vsel %vm2701_vm8, %v2686_v33, %v5146_v44  ;;  %4346 = vmatprep.subr.mxu0 %v1790_v49  ;;  %v158_v26 = vsel %vm90_vm3, %v72_v59, -inf }
 0x100   :  { %v160_v29 = vsel %vm90_vm3, %v71_v30, -inf  ;;  %v161_v51 = vsel %vm90_vm3, %v73_v20, -inf  ;;  %v2720_v39 = vsel %vm2718_vm1, %v2703_v19, %v5292_v4  ;;  %4347 = vmatpush3.msra.mxu0 %v1790_v49  ;;  %v159_v27 = vmax.f32 %v157_v41, %v158_v26 }
 0x101   :  { %v2006_v58 = vsel %vm1935_vm11, %v1507_v14, %v2005_v0  ;;  %v162_v6 = vmax.f32 %v160_v29, %v161_v51  ;;  %v2654_v33 = vsel %vm7132_vm13, %v2638_v28, %v5165_v37  ;;  %v5393_v50 = vsel %vm90_vm3, %v4790_v13, %v5304_v53  ;;  %4348 = vmatprep.subr.mxu0 %v1789_v11  ;;  %v5397_v52 = vpop.permute.xlu0 %2289  ;;  %v5435_v36 = vpop.permute.xlu1 %2390 }
 0x102   :  { %v2054_v44 = vrot.slane %v2006_v58, 7  ;;  %v2737_v4 = vsel %vm7133_vm5, %v2720_v39, %v5276_v32  ;;  %v593_v48 = vcombine.high %v159_v27, %v159_v27  ;;  %v600_v56 = vrot.slane %v159_v27, %v4559_v34  ;;  %4349 = vmatpush3.msra.mxu0 %v1789_v11 }
 0x103   :  { %v610_v57 = vcombine.high %v162_v6, %v162_v6  ;;  %v617_v60 = vrot.slane %v162_v6, %v4559_v34  ;;  %v5409_v53 = vsel %vm7131_vm14, %v2654_v33, %v5248_v22  ;;  %4350 = vmatprep.subr.mxu0 %v1788_v62  ;;  %v5413_v32 = vsel %vm2684_vm15, %v2670_v43, %v5311_v17 }
 0x104   :  { %v5404_v37 = vsel %vm2077_vm0, 0.0, %v2054_v44  ;;  %v2106_v13 = vsel %vm2077_vm0, %v2054_v44, 0.0  ;;  %4351 = vmatpush3.msra.mxu0 %v1788_v62  ;;  %v607_v46 = vrot.slane %v593_v48, %v4559_v34  ;;  %v608_v2 = vcombine.high %v600_v56, %v600_v56 }
 0x105   :  { %v2173_v38 = vrot.slane %v5404_v37, 1  ;;  %v2174_v9 = vrot.slane %v2106_v13, 1  ;;  %2346 = vrot.lane.b32.xlu1 %v5404_v37, %s4458_s23  ;;  %v2264_v8 = vrot.slane %v5404_v37, 2  ;;  %v2265_v18 = vrot.slane %v2106_v13, 2  ;;  %4353 = vmatmul.mubr.msk.f32.vlgmr.msra.gmra.mxu0 %vm2752_vm4, %v2737_v4  ;;  %v5422_v17 = vpop.permute.xlu0 %2490 }
 0x106   :  { %v624_v22 = vrot.slane %v610_v57, %v4559_v34  ;;  %v625_v59 = vcombine.high %v617_v60, %v617_v60  ;;  %vm7140_vm7 = vcmask 1045504   ;;  %vm7141_vm14 = vcmask 25600  }
 0x107   :  { %v5425_v5 = vsel %vm7134_vm2, %v2173_v38, %v2174_v9  ;;  %v5428_v15 = vsel %vm7140_vm7, %v2264_v8, %v2265_v18  ;;  %v1508_v3 = vsel %vm7141_vm14, %v600_v56, -inf  ;;  %vm7142_vm13 = vmmov %vm7141_vm14  ;;  %v609_v49 = vcombine.high %v607_v46, %v607_v46  ;;  %v5450_v9 = vpop.permute.xlu1 %2578 }
 0x108   :  { %v1536_v55 = vsel %vm7142_vm13, %v617_v60, -inf  ;;  %2208 = vrot.lane.b32.xlu0 %v5425_v5, %s4457_s18  ;;  %v626_v30 = vcombine.high %v624_v22, %v624_v22  ;;  %v1509_v20 = vrot.slane %v1508_v3, 4  ;;  %vm7143_vm5 = vmmov %vm7142_vm13 }
 0x109   :  { %v1515_v61 = vsel %vm7143_vm5, %v608_v2, -inf  ;;  %2545 = vrot.lane.b32.xlu1 %v5286_v16, %s4462_s11  ;;  %vm7144_vm7 = vmmov %vm7143_vm5  ;;  %v1537_v0 = vrot.slane %v1536_v55, 4  ;;  %v5442_v29 = vpop.permute.xlu0 %2336  ;;  %v1550_v27 = vsel %vm7143_vm5, %v624_v22, -inf }
 0x10a   :  { %v1516_v43 = vrot.slane %v1515_v61, 4  ;;  %v1522_v14 = vsel %vm7144_vm7, %v607_v46, -inf  ;;  %vm7145_vm14 = vmmov %vm7143_vm5  ;;  %v1510_v11 = vmax.f32 %v1508_v3, %v1509_v20  ;;  %v1551_v44 = vrot.slane %v1550_v27, 4 }
 0x10b   :  { %v1543_v28 = vsel %vm7145_vm14, %v625_v59, -inf  ;;  %v1523_v41 = vrot.slane %v1522_v14, 4  ;;  %vm7146_vm13 = vmmov %vm7143_vm5  ;;  %v1538_v39 = vmax.f32 %v1536_v55, %v1537_v0  ;;  %vm7148_vm14 = vcmask 1041409  }
 0x10c   :  { %v1529_v19 = vsel %vm7146_vm13, %v609_v49, -inf  ;;  %v1544_v26 = vrot.slane %v1543_v28, 4  ;;  %v1517_v51 = vmax.f32 %v1515_v61, %v1516_v43  ;;  %2454 = vrot.lane.b32.xlu0 %v5289_v7, %s4460_s30  ;;  %v1511_v16 = vrot.slane %v1510_v11, 2  ;;  %vm7147_vm7 = vmmov %vm7143_vm5 }
 0x10d   :  { %v1530_v58 = vrot.slane %v1529_v19, 4  ;;  %v1524_v6 = vmax.f32 %v1522_v14, %v1523_v41  ;;  %2402 = vrot.lane.b32.xlu1 %v5425_v5, %s4461_s10  ;;  %v1539_v48 = vrot.slane %v1538_v39, 2  ;;  %v1557_v56 = vsel %vm7147_vm7, %v626_v30, -inf  ;;  %v5452_v8 = vpop.permute.xlu0 %2535  ;;  %v74_v41 = vld [vmem:[%s7118_s0 + $0x180] sm:$0xff] }
 0x10e   :  { %v1545_v62 = vmax.f32 %v1543_v28, %v1544_v26  ;;  %v1518_v33 = vrot.slane %v1517_v51, 2  ;;  %v1512_v57 = vmax.f32 %v1510_v11, %v1511_v16  ;;  %v1552_v38 = vmax.f32 %v1550_v27, %v1551_v44 }
 0x10f   :  { %v1531_v4 = vmax.f32 %v1529_v19, %v1530_v58  ;;  %v1525_v60 = vrot.slane %v1524_v6, 2  ;;  %v1540_v2 = vmax.f32 %v1538_v39, %v1539_v48  ;;  %v1558_v22 = vrot.slane %v1557_v56, 4  ;;  %v76_v39 = vld [vmem:[%s7118_s0 + $0x190] sm:$0xff] }
 0x110   :  { %v1546_v13 = vrot.slane %v1545_v62, 2  ;;  %v1519_v18 = vmax.f32 %v1517_v51, %v1518_v33  ;;  %2299 = vrot.lane.b32.xlu0 %v5428_v15, %s4456_s17  ;;  %v1513_v59 = vrot.slane %v1512_v57, 1  ;;  %v1553_v49 = vrot.slane %v1552_v38, 2 }
 0x111   :  { %v1532_v46 = vrot.slane %v1531_v4, 2  ;;  %v1526_v3 = vmax.f32 %v1524_v6, %v1525_v60  ;;  %v1541_v61 = vrot.slane %v1540_v2, 1  ;;  %v1559_v43 = vmax.f32 %v1557_v56, %v1558_v22  ;;  %2590 = vrot.lane.b32.xlu1 %v5289_v7, %s4463_s14  ;;  %v75_v7 = vld [vmem:[%s7118_s0 + $0x188] sm:$0xff]  ;;  %v5479_v44 = vpop.permute.xlu0 %2200 }
 0x112   :  { %v1547_v55 = vmax.f32 %v1545_v62, %v1546_v13  ;;  %v1520_v30 = vrot.slane %v1519_v18, 1  ;;  %v1514_v14 = vmax.f32 %v1512_v57, %v1513_v59  ;;  %v1554_v11 = vmax.f32 %v1552_v38, %v1553_v49 }
 0x113   :  { %v1533_v20 = vmax.f32 %v1531_v4, %v1532_v46  ;;  %v1527_v0 = vrot.slane %v1526_v3, 1  ;;  %v1560_v51 = vrot.slane %v1559_v43, 2  ;;  %v5464_v58 = vsel %vm2634_vm12, %v5393_v50, %v5301_v40  ;;  %v77_v40 = vld [vmem:[%s7118_s0 + $0x198] sm:$0xff]  ;;  %v5477_v50 = vpop.permute.xlu1 %2392 }
 0x114   :  { %v1548_v28 = vrot.slane %v1547_v55, 1  ;;  %v1521_v19 = vmax.f32 %v1519_v18, %v1520_v30  ;;  %2502 = vrot.lane.b32.xlu0 %v5404_v37, %s4459_s28  ;;  %v1542_v16 = vmax.f32 %v1540_v2, %v1541_v61  ;;  %v1555_v62 = vrot.slane %v1554_v11, 1 }
 0x115   :  { %v1534_v26 = vrot.slane %v1533_v20, 1  ;;  %v1528_v27 = vmax.f32 %v1526_v3, %v1527_v0  ;;  %v1561_v4 = vmax.f32 %v1559_v43, %v1560_v51  ;;  %v163_v56 = vsel %vm90_vm3, %v74_v41, -inf }
 0x116   :  { %v1549_v6 = vmax.f32 %v1547_v55, %v1548_v28  ;;  %v2007_v48 = vsel %vm7148_vm14, %v1521_v19, %v1514_v14  ;;  %v1556_v57 = vmax.f32 %v1554_v11, %v1555_v62  ;;  %v164_v13 = vsel %vm90_vm3, %v76_v39, -inf  ;;  %vm7151_vm14 = vmmov %vm7147_vm7 }
 0x117   :  { %v1535_v33 = vmax.f32 %v1533_v20, %v1534_v26  ;;  %v2008_v60 = vsel %vm1925_vm6, %v1528_v27, %v2007_v48  ;;  %v166_v38 = vsel %vm90_vm3, %v75_v7, -inf  ;;  %v1562_v18 = vrot.slane %v1561_v4, 1  ;;  %v5506_v28 = vpop.permute.xlu1 %2580 }
 0x118   :  { %vm7149_vm13 = vcmask 1043459   ;;  %v165_v2 = vmax.f32 %v163_v56, %v164_v13  ;;  %v167_v22 = vsel %vm90_vm3, %v77_v40, -inf  ;;  %vm7150_vm5 = vcmask 1044484  }
 0x119   :  { %v2009_v46 = vsel %vm7149_vm13, %v1535_v33, %v2008_v60  ;;  %v5492_v3 = vsel %vm90_vm3, %v4885_v63, %v5326_v47  ;;  %v2704_v55 = vsel %vm2701_vm8, %v5413_v32, %v5313_v45  ;;  %v168_v49 = vmax.f32 %v166_v38, %v167_v22  ;;  %v5508_v45 = vpop.permute.xlu0 %2444  ;;  %vm7152_vm13 = vmmov %vm7147_vm7 }
 0x11a   :  { %v2010_v59 = vsel %vm7150_vm5, %v1542_v16, %v2009_v46  ;;  %v1563_v30 = vmax.f32 %v1561_v4, %v1562_v18  ;;  %v627_v61 = vcombine.high %v165_v2, %v165_v2  ;;  %v634_v43 = vrot.slane %v165_v2, %v4559_v34  ;;  %vm7153_vm5 = vmmov %vm7147_vm7 }
 0x11b   :  { %v2011_v20 = vsel %vm1931_vm9, %v1549_v6, %v2010_v59  ;;  %v5503_v0 = vsel %vm2684_vm15, %v5409_v53, %v5367_v21  ;;  %v644_v63 = vcombine.high %v168_v49, %v168_v49  ;;  %v651_v47 = vrot.slane %v168_v49, %v4559_v34  ;;  %v5530_v18 = vpop.permute.xlu1 %2291 }
 0x11c   :  { %v2012_v14 = vsel %vm1933_vm10, %v1556_v57, %v2011_v20  ;;  %v641_v11 = vrot.slane %v627_v61, %v4559_v34  ;;  %v642_v41 = vcombine.high %v634_v43, %v634_v43  ;;  %v1564_v19 = vsel %vm7147_vm7, %v634_v43, -inf  ;;  %vm7154_vm7 = vmmov %vm7153_vm5 }
 0x11d   :  { %v2013_v32 = vsel %vm1935_vm11, %v1563_v30, %v2012_v14  ;;  %v658_v51 = vrot.slane %v644_v63, %v4559_v34  ;;  %v1565_v7 = vrot.slane %v1564_v19, 4  ;;  %v5516_v21 = vsel %vm2718_vm1, %v2704_v55, %v5399_v12 }
 0x11e   :  { %v2055_v26 = vrot.slane %v2013_v32, 7  ;;  %v643_v53 = vcombine.high %v641_v11, %v641_v11  ;;  %v659_v39 = vcombine.high %v651_v47, %v651_v47  ;;  %v1571_v27 = vsel %vm7151_vm14, %v642_v41, -inf  ;;  %v5532_v46 = vpop.permute.xlu0 %2202  ;;  %vm7155_vm14 = vmmov %vm7153_vm5 }
 0x11f   :  { %v1578_v16 = vsel %vm7152_vm13, %v641_v11, -inf  ;;  %v1566_v40 = vmax.f32 %v1564_v19, %v1565_v7  ;;  %v1592_v33 = vsel %vm7153_vm5, %v651_v47, -inf  ;;  %v660_v56 = vcombine.high %v658_v51, %v658_v51  ;;  %vm7156_vm13 = vmmov %vm7153_vm5 }
 0x120   :  { %v5521_v6 = vsel %vm2077_vm0, 0.0, %v2055_v26  ;;  %v2107_v62 = vsel %vm2077_vm0, %v2055_v26, 0.0  ;;  %v1572_v60 = vrot.slane %v1571_v27, 4  ;;  %v1579_v13 = vrot.slane %v1578_v16, 4 }
 0x121   :  { %2348 = vrot.lane.b32.xlu0 %v5521_v6, %s4458_s23  ;;  %v2176_v12 = vrot.slane %v5521_v6, 1  ;;  %v2177_v4 = vrot.slane %v2107_v62, 1  ;;  %v2267_v48 = vrot.slane %v5521_v6, 2  ;;  %v1567_v57 = vrot.slane %v1566_v40, 2 }
 0x122   :  { %v1585_v38 = vsel %vm7154_vm7, %v643_v53, -inf  ;;  %v2268_v22 = vrot.slane %v2107_v62, 2  ;;  %v1593_v55 = vrot.slane %v1592_v33, 4  ;;  %v1573_v30 = vmax.f32 %v1571_v27, %v1572_v60 }
 0x123   :  { %v5535_v2 = vsel %vm7134_vm2, %v2176_v12, %v2177_v4  ;;  %v1586_v59 = vrot.slane %v1585_v38, 4  ;;  %v1568_v49 = vmax.f32 %v1566_v40, %v1567_v57  ;;  %v1580_v20 = vmax.f32 %v1578_v16, %v1579_v13  ;;  %v5549_v40 = vpop.permute.xlu1 %2492 }
 0x124   :  { %2404 = vrot.lane.b32.xlu1 %v5535_v2, %s4461_s10  ;;  %v1599_v61 = vsel %vm7155_vm14, %v659_v39, -inf  ;;  %v1594_v14 = vmax.f32 %v1592_v33, %v1593_v55  ;;  %v1606_v47 = vsel %vm7156_vm13, %v658_v51, -inf  ;;  %v1574_v11 = vrot.slane %v1573_v30, 2  ;;  %v5551_v51 = vpop.permute.xlu0 %2446 }
 0x125   :  { %2547 = vrot.lane.b32.xlu0 %v5425_v5, %s4462_s11  ;;  %v1587_v43 = vmax.f32 %v1585_v38, %v1586_v59  ;;  %v1600_v63 = vrot.slane %v1599_v61, 4  ;;  %v1569_v32 = vrot.slane %v1568_v49, 1  ;;  %v1581_v41 = vrot.slane %v1580_v20, 2 }
 0x126   :  { %v1607_v19 = vrot.slane %v1606_v47, 4  ;;  %v1595_v7 = vrot.slane %v1594_v14, 2  ;;  %v1613_v27 = vsel %vm7153_vm5, %v660_v56, -inf  ;;  %vm7157_vm7 = vcmask 1045504  }
 0x127   :  { %v1588_v26 = vrot.slane %v1587_v43, 2  ;;  %v1601_v53 = vmax.f32 %v1599_v61, %v1600_v63  ;;  %v5547_v39 = vsel %vm7157_vm7, %v2267_v48, %v2268_v22  ;;  %v1575_v5 = vmax.f32 %v1573_v30, %v1574_v11  ;;  %v80_v11 = vld [vmem:[%s7118_s0 + $0x1b0] sm:$0xff] }
 0x128   :  { %2592 = vrot.lane.b32.xlu1 %v5428_v15, %s4463_s14  ;;  %v1582_v16 = vmax.f32 %v1580_v20, %v1581_v41  ;;  %v1608_v62 = vmax.f32 %v1606_v47, %v1607_v19  ;;  %v1596_v12 = vmax.f32 %v1594_v14, %v1595_v7  ;;  %v1614_v56 = vrot.slane %v1613_v27, 4  ;;  %v79_v19 = vld [vmem:[%s7118_s0 + $0x1a8] sm:$0xff]  ;;  %v5581_v7 = vpop.permute.xlu0 %2293 }
 0x129   :  { %2210 = vrot.lane.b32.xlu0 %v5535_v2, %s4457_s18  ;;  %v1589_v33 = vmax.f32 %v1587_v43, %v1588_v26  ;;  %v1602_v4 = vrot.slane %v1601_v53, 2  ;;  %v1570_v57 = vmax.f32 %v1568_v49, %v1569_v32  ;;  %v1576_v60 = vrot.slane %v1575_v5, 1  ;;  %v78_v32 = vld [vmem:[%s7118_s0 + $0x1a0] sm:$0xff]  ;;  %v5579_v26 = vpop.permute.xlu1 %2338 }
 0x12a   :  { %v1583_v13 = vrot.slane %v1582_v16, 1  ;;  %v1609_v38 = vrot.slane %v1608_v62, 2  ;;  %v1597_v22 = vrot.slane %v1596_v12, 1  ;;  %v1615_v55 = vmax.f32 %v1613_v27, %v1614_v56 }
 0x12b   :  { %v1590_v48 = vrot.slane %v1589_v33, 1  ;;  %v1603_v59 = vmax.f32 %v1601_v53, %v1602_v4  ;;  %v1577_v30 = vmax.f32 %v1575_v5, %v1576_v60  ;;  %vm7158_vm14 = vcmask 261120  }
 0x12c   :  { %2301 = vrot.lane.b32.xlu1 %v5547_v39, %s4456_s17  ;;  %v1584_v20 = vmax.f32 %v1582_v16, %v1583_v13  ;;  %v1610_v61 = vmax.f32 %v1608_v62, %v1609_v38  ;;  %v2738_v43 = vsel %vm7158_vm14, %v5516_v21, %v5450_v9  ;;  %v1598_v14 = vmax.f32 %v1596_v12, %v1597_v22 }
 0x12d   :  { %2456 = vrot.lane.b32.xlu0 %v5428_v15, %s4460_s30  ;;  %v1591_v49 = vmax.f32 %v1589_v33, %v1590_v48  ;;  %v1604_v63 = vrot.slane %v1603_v59, 1  ;;  %v1616_v47 = vrot.slane %v1615_v55, 2  ;;  %4355 = vmatprep.mubr.msk.f32.mxu0 %vm2752_vm4, %v2738_v43  ;;  %vm7159_vm13 = vcmask 97280  }
 0x12e   :  { %v2655_v9 = vsel %vm7159_vm13, %v5464_v58, %v5344_v42  ;;  %v1611_v21 = vrot.slane %v1610_v61, 1  ;;  %vm7160_vm5 = vcmask 1041409   ;;  %v2705_v41 = vsel %vm2701_vm8, %v5503_v0, %v5422_v17  ;;  %v81_v58 = vld [vmem:[%s7118_s0 + $0x1b8] sm:$0xff] }
 0x12f   :  { %v2014_v15 = vsel %vm7160_vm5, %v1577_v30, %v1570_v57  ;;  %v1605_v53 = vmax.f32 %v1603_v59, %v1604_v63  ;;  %v1617_v27 = vmax.f32 %v1615_v55, %v1616_v47  ;;  %v2722_v42 = vsel %vm2718_vm1, %v2705_v41, %v5452_v8  ;;  %v5612_v30 = vpop.permute.xlu1 %2537 }
 0x130   :  { %v2015_v5 = vsel %vm1925_vm6, %v1584_v20, %v2014_v15  ;;  %v1612_v17 = vmax.f32 %v1610_v61, %v1611_v21  ;;  %vm7161_vm7 = vcmask 1043459   ;;  %2504 = vrot.lane.b32.xlu1 %v5521_v6, %s4459_s28  ;;  %v169_v16 = vsel %vm90_vm3, %v78_v32, -inf  ;;  %v5614_v20 = vpop.permute.xlu0 %2494 }
 0x131   :  { %v2016_v0 = vsel %vm7161_vm7, %v1591_v49, %v2015_v5  ;;  %v170_v62 = vsel %vm90_vm3, %v80_v11, -inf  ;;  %v1618_v33 = vrot.slane %v1617_v27, 1  ;;  %vm7162_vm14 = vcmask 1044484  }
 0x132   :  { %v2017_v12 = vsel %vm7162_vm14, %v1598_v14, %v2016_v0  ;;  %v171_v4 = vmax.f32 %v169_v16, %v170_v62  ;;  %v172_v8 = vsel %vm90_vm3, %v79_v19, -inf  ;;  %v2640_v56 = vsel %vm2634_vm12, %v5492_v3, %v5397_v52 }
 0x133   :  { %v2018_v57 = vsel %vm1931_vm9, %v1605_v53, %v2017_v12  ;;  %v173_v60 = vsel %vm90_vm3, %v81_v58, -inf  ;;  %vm7163_vm13 = vcmask 261120   ;;  %v1619_v38 = vmax.f32 %v1617_v27, %v1618_v33  ;;  %v5635_v16 = vpop.permute.xlu1 %2394 }
 0x134   :  { %v2739_v13 = vsel %vm7163_vm13, %v2722_v42, %v5506_v28  ;;  %v2019_v48 = vsel %vm1933_vm10, %v1612_v17, %v2018_v57  ;;  %v174_v22 = vmax.f32 %v172_v8, %v173_v60  ;;  %v661_v59 = vcombine.high %v171_v4, %v171_v4  ;;  %v5637_v62 = vpop.permute.xlu0 %2340 }
 0x135   :  { %4356 = vmatmul.mubr.msk.f32.gmra.mxu0 %vm2752_vm4, %v2739_v13  ;;  %vm7164_vm5 = vcmask 130048   ;;  %vm7165_vm7 = vcmask 97280   ;;  %v668_v3 = vrot.slane %v171_v4, %v4559_v34  ;;  %v2020_v28 = vsel %vm1935_vm11, %v1619_v38, %v2019_v48 }
 0x136   :  { %v5607_v55 = vsel %vm7164_vm5, %v2655_v9, %v5435_v36  ;;  %v2656_v52 = vsel %vm7165_vm7, %v2640_v56, %v5442_v29  ;;  %v675_v61 = vrot.slane %v661_v59, %v4559_v34  ;;  %v678_v43 = vcombine.high %v174_v22, %v174_v22  ;;  %vm7166_vm14 = vmmov %vm7164_vm5 }
 0x137   :  { %v685_v49 = vrot.slane %v174_v22, %v4559_v34  ;;  %v2056_v14 = vrot.slane %v2020_v28, 7  ;;  %v5621_v36 = vsel %vm7166_vm14, %v2656_v52, %v5477_v50  ;;  %v676_v63 = vcombine.high %v668_v3, %v668_v3 }
 0x138   :  { %vm7167_vm13 = vcmask 25600   ;;  %v677_v47 = vcombine.high %v675_v61, %v675_v61  ;;  %v692_v32 = vrot.slane %v678_v43, %v4559_v34  ;;  %vm7170_vm14 = vcmask 1045504  }
 0x139   :  { %v1620_v29 = vsel %vm7167_vm13, %v668_v3, -inf  ;;  %v693_v11 = vcombine.high %v685_v49, %v685_v49  ;;  %v5626_v21 = vsel %vm2077_vm0, 0.0, %v2056_v14  ;;  %v2108_v15 = vsel %vm2077_vm0, %v2056_v14, 0.0  ;;  %vm7168_vm5 = vmmov %vm7167_vm13 }
 0x13a   :  { %v1621_v9 = vrot.slane %v1620_v29, 4  ;;  %v1627_v41 = vsel %vm7168_vm5, %v676_v63, -inf  ;;  %vm7169_vm7 = vmmov %vm7168_vm5  ;;  %v2179_v50 = vrot.slane %v5626_v21, 1  ;;  %v2180_v53 = vrot.slane %v2108_v15, 1  ;;  %2350 = vrot.lane.b32.xlu1 %v5626_v21, %s4458_s23 }
 0x13b   :  { %v1634_v19 = vsel %vm7169_vm7, %v675_v61, -inf  ;;  %v2270_v27 = vrot.slane %v5626_v21, 2  ;;  %v2271_v5 = vrot.slane %v2108_v15, 2  ;;  %v694_v42 = vcombine.high %v692_v32, %v692_v32  ;;  %vm7171_vm13 = vmmov %vm7168_vm5 }
 0x13c   :  { %v1622_v58 = vmax.f32 %v1620_v29, %v1621_v9  ;;  %v1628_v17 = vrot.slane %v1627_v41, 4  ;;  %v1635_v0 = vrot.slane %v1634_v19, 4  ;;  %v5640_v33 = vsel %vm7134_vm2, %v2179_v50, %v2180_v53  ;;  %vm7172_vm7 = vmmov %vm7168_vm5 }
 0x13d   :  { %v5643_v12 = vsel %vm7170_vm14, %v2270_v27, %v2271_v5  ;;  %v1641_v4 = vsel %vm7171_vm13, %v677_v47, -inf  ;;  %v1648_v8 = vsel %vm7168_vm5, %v685_v49, -inf  ;;  %2212 = vrot.lane.b32.xlu0 %v5640_v33, %s4457_s18  ;;  %v1655_v48 = vsel %vm7172_vm7, %v693_v11, -inf  ;;  %vm7173_vm2 = vmmov %vm7168_vm5  ;;  %v5656_v11 = vpop.permute.xlu1 %2582 }
 0x13e   :  { %v1623_v56 = vrot.slane %v1622_v58, 2  ;;  %v1629_v57 = vmax.f32 %v1627_v41, %v1628_v17  ;;  %v1636_v60 = vmax.f32 %v1634_v19, %v1635_v0  ;;  %v1642_v13 = vrot.slane %v1641_v4, 4  ;;  %2549 = vrot.lane.b32.xlu1 %v5535_v2, %s4462_s11  ;;  %vm7174_vm14 = vmmov %vm7173_vm2 }
 0x13f   :  { %v1649_v38 = vrot.slane %v1648_v8, 4  ;;  %v1662_v22 = vsel %vm7173_vm2, %v692_v32, -inf  ;;  %v1669_v59 = vsel %vm7174_vm14, %v694_v42, -inf  ;;  %v1656_v49 = vrot.slane %v1655_v48, 4  ;;  %v5658_v32 = vpop.permute.xlu0 %2539 }
 0x140   :  { %v1624_v52 = vmax.f32 %v1622_v58, %v1623_v56  ;;  %v1630_v3 = vrot.slane %v1629_v57, 2  ;;  %v1637_v28 = vrot.slane %v1636_v60, 2  ;;  %v1643_v61 = vmax.f32 %v1641_v4, %v1642_v13 }
 0x141   :  { %v1650_v43 = vmax.f32 %v1648_v8, %v1649_v38  ;;  %v1663_v14 = vrot.slane %v1662_v22, 4  ;;  %v1670_v63 = vrot.slane %v1669_v59, 4  ;;  %2458 = vrot.lane.b32.xlu0 %v5547_v39, %s4460_s30  ;;  %v1657_v41 = vmax.f32 %v1655_v48, %v1656_v49  ;;  %v82_v8 = vld [vmem:[%s7118_s0 + $0x1c0] sm:$0xff] }
 0x142   :  { %v1625_v29 = vrot.slane %v1624_v52, 1  ;;  %v1631_v2 = vmax.f32 %v1629_v57, %v1630_v3  ;;  %v1638_v47 = vmax.f32 %v1636_v60, %v1637_v28  ;;  %v1644_v9 = vrot.slane %v1643_v61, 2  ;;  %2406 = vrot.lane.b32.xlu1 %v5640_v33, %s4461_s10  ;;  %v84_v3 = vld [vmem:[%s7118_s0 + $0x1d0] sm:$0xff] }
 0x143   :  { %v1651_v15 = vrot.slane %v1650_v43, 2  ;;  %v1664_v19 = vmax.f32 %v1662_v22, %v1663_v14  ;;  %v1671_v50 = vmax.f32 %v1669_v59, %v1670_v63  ;;  %v1658_v17 = vrot.slane %v1657_v41, 2  ;;  %v5688_v49 = vpop.permute.xlu0 %2396 }
 0x144   :  { %v1626_v53 = vmax.f32 %v1624_v52, %v1625_v29  ;;  %v1632_v27 = vrot.slane %v1631_v2, 1  ;;  %v1639_v5 = vrot.slane %v1638_v47, 1  ;;  %v1645_v42 = vmax.f32 %v1643_v61, %v1644_v9  ;;  %v83_v52 = vld [vmem:[%s7118_s0 + $0x1c8] sm:$0xff] }
 0x145   :  { %v1652_v58 = vmax.f32 %v1650_v43, %v1651_v15  ;;  %v1665_v0 = vrot.slane %v1664_v19, 2  ;;  %v1672_v4 = vrot.slane %v1671_v50, 2  ;;  %2303 = vrot.lane.b32.xlu0 %v5643_v12, %s4456_s17  ;;  %v2625_v56 = vsel %vm90_vm3, %v4967_v54, %v5479_v44  ;;  %v85_v54 = vld [vmem:[%s7118_s0 + $0x1d8] sm:$0xff]  ;;  %v5686_v43 = vpop.permute.xlu1 %2448 }
 0x146   :  { %v1633_v57 = vmax.f32 %v1631_v2, %v1632_v27  ;;  %v1640_v60 = vmax.f32 %v1638_v47, %v1639_v5  ;;  %v1646_v13 = vrot.slane %v1645_v42, 1  ;;  %v1659_v48 = vmax.f32 %v1657_v41, %v1658_v17  ;;  %2594 = vrot.lane.b32.xlu1 %v5547_v39, %s4463_s14 }
 0x147   :  { %v1653_v38 = vrot.slane %v1652_v58, 1  ;;  %v1666_v22 = vmax.f32 %v1664_v19, %v1665_v0  ;;  %v1673_v59 = vmax.f32 %v1671_v50, %v1672_v4  ;;  %vm7175_vm2 = vcmask 1041409  }
 0x148   :  { %v1647_v44 = vmax.f32 %v1645_v42, %v1646_v13  ;;  %v2021_v28 = vsel %vm7175_vm2, %v1633_v57, %v1626_v53  ;;  %v2689_v61 = vsel %vm2684_vm15, %v5607_v55, %v5508_v45  ;;  %v175_v39 = vsel %vm90_vm3, %v82_v8, -inf  ;;  %vm7179_vm2 = vmmov %vm7174_vm14 }
 0x149   :  { %v1654_v14 = vmax.f32 %v1652_v58, %v1653_v38  ;;  %v1660_v63 = vrot.slane %v1659_v48, 1  ;;  %v1667_v29 = vrot.slane %v1666_v22, 1  ;;  %v1674_v2 = vrot.slane %v1673_v59, 1  ;;  %2506 = vrot.lane.b32.xlu0 %v5626_v21, %s4459_s28  ;;  %v5714_v13 = vpop.permute.xlu1 %2204  ;;  %v5716_v38 = vpop.permute.xlu0 %2584 }
 0x14a   :  { %v2022_v47 = vsel %vm1925_vm6, %v1640_v60, %v2021_v28  ;;  %v176_v9 = vsel %vm90_vm3, %v84_v3, -inf  ;;  %v178_v15 = vsel %vm90_vm3, %v83_v52, -inf  ;;  %v179_v45 = vsel %vm90_vm3, %v85_v54, -inf }
 0x14b   :  { %v1661_v55 = vmax.f32 %v1659_v48, %v1660_v63  ;;  %v1668_v41 = vmax.f32 %v1666_v22, %v1667_v29  ;;  %v1675_v19 = vmax.f32 %v1673_v59, %v1674_v2  ;;  %vm7176_vm13 = vcmask 1043459  }
 0x14c   :  { %v2023_v50 = vsel %vm7176_vm13, %v1647_v44, %v2022_v47  ;;  %vm7177_vm5 = vcmask 1044484   ;;  %v2706_v27 = vsel %vm2701_vm8, %v2689_v61, %v5549_v40  ;;  %v177_v5 = vmax.f32 %v175_v39, %v176_v9  ;;  %vm7180_vm13 = vmmov %vm7179_vm2 }
 0x14d   :  { %v2024_v53 = vsel %vm7177_vm5, %v1654_v14, %v2023_v50  ;;  %v180_v42 = vmax.f32 %v178_v15, %v179_v45  ;;  %v5703_v17 = vsel %vm2634_vm12, %v2625_v56, %v5530_v18  ;;  %v5708_v0 = vsel %vm90_vm3, %v5028_v35, %v5532_v46  ;;  %v5738_v61 = vpop.permute.xlu1 %2496  ;;  %vm7181_vm5 = vmmov %vm7179_vm2  ;;  %v5747_v15 = vpop.permute.xlu0 %2450 }
 0x14e   :  { %v2025_v58 = vsel %vm1931_vm9, %v1661_v55, %v2024_v53  ;;  %v2723_v4 = vsel %vm2718_vm1, %v2706_v27, %v5612_v30  ;;  %v695_v57 = vcombine.high %v177_v5, %v177_v5  ;;  %v702_v40 = vrot.slane %v177_v5, %v4559_v34 }
 0x14f   :  { %v2026_v8 = vsel %vm1933_vm10, %v1668_v41, %v2025_v58  ;;  %v712_v60 = vcombine.high %v180_v42, %v180_v42  ;;  %v2690_v35 = vsel %vm2684_vm15, %v5621_v36, %v5551_v51  ;;  %v719_v46 = vrot.slane %v180_v42, %v4559_v34 }
 0x150   :  { %v2027_v18 = vsel %vm1935_vm11, %v1675_v19, %v2026_v8  ;;  %vm7178_vm7 = vcmask 261120   ;;  %v709_v48 = vrot.slane %v695_v57, %v4559_v34  ;;  %v710_v22 = vcombine.high %v702_v40, %v702_v40 }
 0x151   :  { %v2740_v30 = vsel %vm7178_vm7, %v2723_v4, %v5656_v11  ;;  %v2057_v56 = vrot.slane %v2027_v18, 7  ;;  %v726_v59 = vrot.slane %v712_v60, %v4559_v34  ;;  %v727_v52 = vcombine.high %v719_v46, %v719_v46  ;;  %vm7182_vm7 = vmmov %vm7179_vm2  ;;  %v5758_v42 = vpop.permute.xlu1 %2342 }
 0x152   :  { %4358 = vmatprep.mubr.msk.f32.mxu0 %vm2752_vm4, %v2740_v30  ;;  %v1676_v3 = vsel %vm7174_vm14, %v702_v40, -inf  ;;  %v1704_v54 = vsel %vm7179_vm2, %v719_v46, -inf  ;;  %v5732_v51 = vsel %vm2701_vm8, %v2690_v35, %v5614_v20  ;;  %v711_v44 = vcombine.high %v709_v48, %v709_v48 }
 0x153   :  { %v5735_v36 = vsel %vm2077_vm0, 0.0, %v2057_v56  ;;  %v2109_v11 = vsel %vm2077_vm0, %v2057_v56, 0.0  ;;  %v728_v28 = vcombine.high %v726_v59, %v726_v59  ;;  %v1677_v20 = vrot.slane %v1676_v3, 4 }
 0x154   :  { %2352 = vrot.lane.b32.xlu0 %v5735_v36, %s4458_s23  ;;  %v2182_v39 = vrot.slane %v5735_v36, 1  ;;  %v2183_v14 = vrot.slane %v2109_v11, 1  ;;  %v2273_v63 = vrot.slane %v5735_v36, 2  ;;  %v2274_v29 = vrot.slane %v2109_v11, 2  ;;  %v5766_v11 = vpop.permute.xlu0 %2295 }
 0x155   :  { %v1683_v2 = vsel %vm7180_vm13, %v710_v22, -inf  ;;  %v1690_v47 = vsel %vm7181_vm5, %v709_v48, -inf  ;;  %v1697_v9 = vsel %vm7182_vm7, %v711_v44, -inf  ;;  %vm7183_vm14 = vcmask 1046528   ;;  %vm7185_vm13 = vmmov %vm7181_vm5  ;;  %v5768_v44 = vpop.permute.xlu1 %2541 }
 0x156   :  { %v5750_v45 = vsel %vm7183_vm14, %v2182_v39, %v2183_v14  ;;  %vm7184_vm2 = vcmask 1045504   ;;  %v1684_v41 = vrot.slane %v1683_v2, 4  ;;  %v1691_v19 = vrot.slane %v1690_v47, 4  ;;  %vm7186_vm7 = vmmov %vm7181_vm5 }
 0x157   :  { %v5753_v55 = vsel %vm7184_vm2, %v2273_v63, %v2274_v29  ;;  %2408 = vrot.lane.b32.xlu1 %v5750_v45, %s4461_s10  ;;  %v1678_v50 = vmax.f32 %v1676_v3, %v1677_v20  ;;  %v1698_v53 = vrot.slane %v1697_v9, 4  ;;  %v1705_v27 = vrot.slane %v1704_v54, 4 }
 0x158   :  { %v1711_v5 = vsel %vm7185_vm13, %v727_v52, -inf  ;;  %2551 = vrot.lane.b32.xlu0 %v5640_v33, %s4462_s11  ;;  %v1685_v58 = vmax.f32 %v1683_v2, %v1684_v41  ;;  %v1692_v4 = vmax.f32 %v1690_v47, %v1691_v19  ;;  %v1718_v57 = vsel %vm7181_vm5, %v726_v59, -inf }
 0x159   :  { %v1712_v8 = vrot.slane %v1711_v5, 4  ;;  %v1679_v40 = vrot.slane %v1678_v50, 2  ;;  %v1699_v60 = vmax.f32 %v1697_v9, %v1698_v53  ;;  %v1706_v18 = vmax.f32 %v1704_v54, %v1705_v27 }
 0x15a   :  { %v1719_v35 = vrot.slane %v1718_v57, 4  ;;  %v1686_v46 = vrot.slane %v1685_v58, 2  ;;  %v1693_v30 = vrot.slane %v1692_v4, 2  ;;  %v1725_v48 = vsel %vm7186_vm7, %v728_v28, -inf }
 0x15b   :  { %v1713_v56 = vmax.f32 %v1711_v5, %v1712_v8  ;;  %2596 = vrot.lane.b32.xlu1 %v5643_v12, %s4463_s14  ;;  %v1680_v22 = vmax.f32 %v1678_v50, %v1679_v40  ;;  %v1700_v52 = vrot.slane %v1699_v60, 2  ;;  %v1707_v33 = vrot.slane %v1706_v18, 2  ;;  %v86_v5 = vld [vmem:[%s7118_s0 + $0x1e0] sm:$0xff] }
 0x15c   :  { %v1720_v3 = vmax.f32 %v1718_v57, %v1719_v35  ;;  %2214 = vrot.lane.b32.xlu0 %v5750_v45, %s4457_s18  ;;  %v1687_v59 = vmax.f32 %v1685_v58, %v1686_v46  ;;  %v1694_v54 = vmax.f32 %v1692_v4, %v1693_v30  ;;  %v1726_v14 = vrot.slane %v1725_v48, 4  ;;  %v5777_v58 = vpop.permute.xlu1 %2398 }
 0x15d   :  { %v1714_v39 = vrot.slane %v1713_v56, 2  ;;  %v1681_v63 = vrot.slane %v1680_v22, 1  ;;  %v1701_v28 = vmax.f32 %v1699_v60, %v1700_v52  ;;  %v1708_v29 = vmax.f32 %v1706_v18, %v1707_v33  ;;  %v87_v60 = vld [vmem:[%s7118_s0 + $0x1e8] sm:$0xff]  ;;  %v88_v18 = vld [vmem:[%s7118_s0 + $0x1f0] sm:$0xff] }
 0x15e   :  { %v1721_v20 = vrot.slane %v1720_v3, 2  ;;  %v1688_v2 = vrot.slane %v1687_v59, 1  ;;  %v1695_v47 = vrot.slane %v1694_v54, 1  ;;  %v1727_v41 = vmax.f32 %v1725_v48, %v1726_v14  ;;  %v5793_v48 = vpop.permute.xlu0 %2498 }
 0x15f   :  { %v1715_v9 = vmax.f32 %v1713_v56, %v1714_v39  ;;  %2305 = vrot.lane.b32.xlu1 %v5753_v55, %s4456_s17  ;;  %v1682_v19 = vmax.f32 %v1680_v22, %v1681_v63  ;;  %v1702_v50 = vrot.slane %v1701_v28, 1  ;;  %v1709_v53 = vrot.slane %v1708_v29, 1 }
 0x160   :  { %v1722_v27 = vmax.f32 %v1720_v3, %v1721_v20  ;;  %2460 = vrot.lane.b32.xlu0 %v5643_v12, %s4460_s30  ;;  %v1689_v4 = vmax.f32 %v1687_v59, %v1688_v2  ;;  %v1696_v8 = vmax.f32 %v1694_v54, %v1695_v47  ;;  %v1728_v40 = vrot.slane %v1727_v41, 2  ;;  %v89_v12 = vld [vmem:[%s7118_s0 + $0x1f8] sm:$0xff]  ;;  %v5802_v39 = vpop.permute.xlu1 %2586  ;;  %s4464_s0 = smov 48  }
 0x161   :  { %v1716_v57 = vrot.slane %v1715_v9, 1  ;;  %v1703_v35 = vmax.f32 %v1701_v28, %v1702_v50  ;;  %v1710_v46 = vmax.f32 %v1708_v29, %v1709_v53  ;;  %v2724_v56 = vsel %vm2718_vm1, %v5732_v51, %v5658_v32 }
 0x162   :  { %v1723_v30 = vrot.slane %v1722_v27, 1  ;;  %v1729_v52 = vmax.f32 %v1727_v41, %v1728_v40  ;;  %vm7187_vm14 = vcmask 1041409   ;;  %v181_v3 = vsel %vm90_vm3, %v86_v5, -inf }
 0x163   :  { %v1717_v22 = vmax.f32 %v1715_v9, %v1716_v57  ;;  %v2028_v33 = vsel %vm7187_vm14, %v1689_v4, %v1682_v19  ;;  %2508 = vrot.lane.b32.xlu1 %v5735_v36, %s4459_s28  ;;  %v182_v32 = vsel %vm90_vm3, %v88_v18, -inf  ;;  %v184_v51 = vsel %vm90_vm3, %v87_v60, -inf  ;;  %v5822_v4 = vpop.permute.xlu0 %2344 }
 0x164   :  { %v1724_v59 = vmax.f32 %v1722_v27, %v1723_v30  ;;  %v2029_v54 = vsel %vm1925_vm6, %v1696_v8, %v2028_v33  ;;  %v1730_v14 = vrot.slane %v1729_v52, 1  ;;  %vm7188_vm2 = vcmask 1043459  }
 0x165   :  { %v2030_v63 = vsel %vm7188_vm2, %v1703_v35, %v2029_v54  ;;  %v183_v28 = vmax.f32 %v181_v3, %v182_v32  ;;  %v185_v29 = vsel %vm90_vm3, %v89_v12, -inf  ;;  %vm7189_vm13 = vcmask 97280  }
 0x166   :  { %v2657_v20 = vsel %vm7189_vm13, %v5703_v17, %v5579_v26  ;;  %vm7190_vm5 = vcmask 1044484   ;;  %v186_v47 = vmax.f32 %v184_v51, %v185_v29  ;;  %vm7191_vm7 = vcmask 261120  }
 0x167   :  { %v2031_v2 = vsel %vm7190_vm5, %v1710_v46, %v2030_v63  ;;  %v2741_v9 = vsel %vm7191_vm7, %v2724_v56, %v5716_v38  ;;  %v1731_v41 = vmax.f32 %v1729_v52, %v1730_v14  ;;  %v729_v50 = vcombine.high %v183_v28, %v183_v28  ;;  %v5824_v38 = vpop.permute.xlu1 %2400  ;;  %v5848_v29 = vpop.permute.xlu0 %2543 }
 0x168   :  { %v2032_v19 = vsel %vm1931_vm9, %v1717_v22, %v2031_v2  ;;  %v736_v53 = vrot.slane %v183_v28, %v4559_v34  ;;  %4359 = vmatmul.mubr.msk.f32.gmra.mxu0 %vm2752_vm4, %v2741_v9  ;;  %v5818_v27 = vsel %vm2634_vm12, %v5708_v0, %v5581_v7  ;;  %v746_v17 = vcombine.high %v186_v47, %v186_v47 }
 0x169   :  { %v2033_v26 = vsel %vm1933_vm10, %v1724_v59, %v2032_v19  ;;  %v753_v5 = vrot.slane %v186_v47, %v4559_v34  ;;  %v743_v57 = vrot.slane %v729_v50, %v4559_v34  ;;  %vm7192_vm14 = vcmask 25600  }
 0x16a   :  { %v2034_v8 = vsel %vm1935_vm11, %v1731_v41, %v2033_v26  ;;  %v744_v40 = vcombine.high %v736_v53, %v736_v53  ;;  %v1732_v60 = vsel %vm7192_vm14, %v736_v53, -inf  ;;  %vm7193_vm2 = vcmask 130048   ;;  %vm7194_vm13 = vmmov %vm7192_vm14 }
 0x16b   :  { %v2058_v18 = vrot.slane %v2034_v8, 7  ;;  %v5831_v7 = vsel %vm7193_vm2, %v2657_v20, %v5635_v16  ;;  %v760_v0 = vrot.slane %v746_v17, %v4559_v34  ;;  %v1733_v35 = vrot.slane %v1732_v60, 4  ;;  %vm7195_vm5 = vmmov %vm7194_vm13  ;;  %v5841_v59 = vpop.permute.xlu1 %2588 }
 0x16c   :  { %v745_v46 = vcombine.high %v743_v57, %v743_v57  ;;  %v761_v30 = vcombine.high %v753_v5, %v753_v5  ;;  %v1739_v56 = vsel %vm7194_vm13, %v744_v40, -inf  ;;  %v1746_v12 = vsel %vm7195_vm5, %v743_v57, -inf  ;;  %vm7196_vm7 = vmmov %vm7195_vm5 }
 0x16d   :  { %v5837_v22 = vsel %vm2077_vm0, 0.0, %v2058_v18  ;;  %v2110_v52 = vsel %vm2077_vm0, %v2058_v18, 0.0  ;;  %v1734_v33 = vmax.f32 %v1732_v60, %v1733_v35  ;;  %v1760_v3 = vsel %vm7196_vm7, %v753_v5, -inf  ;;  %vm7197_vm14 = vmmov %vm7195_vm5 }
 0x16e   :  { %v2185_v16 = vrot.slane %v5837_v22, 1  ;;  %v2186_v34 = vrot.slane %v2110_v52, 1  ;;  %2354 = vrot.lane.b32.xlu1 %v5837_v22, %s4458_s23  ;;  %v2276_v54 = vrot.slane %v5837_v22, 2  ;;  %v762_v32 = vcombine.high %v760_v0, %v760_v0  ;;  %vm7199_vm13 = vmmov %vm7195_vm5 }
 0x16f   :  { %v1735_v51 = vrot.slane %v1734_v33, 2  ;;  %v1740_v14 = vrot.slane %v1739_v56, 4  ;;  %v1747_v63 = vrot.slane %v1746_v12, 4  ;;  %v1753_v28 = vsel %vm7197_vm14, %v745_v46, -inf  ;;  %v5859_v57 = vpop.permute.xlu1 %2297  ;;  %vm7200_vm7 = vmmov %vm7195_vm5 }
 0x170   :  { %vm7198_vm2 = vcmask 1046528   ;;  %v2277_v2 = vrot.slane %v2110_v52, 2  ;;  %v1754_v47 = vrot.slane %v1753_v28, 4  ;;  %v1761_v9 = vrot.slane %v1760_v3, 4 }
 0x171   :  { %v5851_v20 = vsel %vm7198_vm2, %v2185_v16, %v2186_v34  ;;  %v1736_v41 = vmax.f32 %v1734_v33, %v1735_v51  ;;  %v1741_v19 = vmax.f32 %v1739_v56, %v1740_v14  ;;  %v1748_v50 = vmax.f32 %v1746_v12, %v1747_v63 }
 0x172   :  { %2216 = vrot.lane.b32.xlu0 %v5851_v20, %s4457_s18  ;;  %v1767_v53 = vsel %vm7199_vm13, %v761_v30, -inf  ;;  %2553 = vrot.lane.b32.xlu1 %v5750_v45, %s4462_s11  ;;  %v1755_v26 = vmax.f32 %v1753_v28, %v1754_v47  ;;  %v1762_v17 = vmax.f32 %v1760_v3, %v1761_v9  ;;  %v1774_v8 = vsel %vm7195_vm5, %v760_v0, -inf  ;;  %v5867_v3 = vpop.permute.xlu0 %2206  ;;  %s4465_s18 = smov 56  }
 0x173   :  { %v1768_v5 = vrot.slane %v1767_v53, 4  ;;  %v1737_v40 = vrot.slane %v1736_v41, 1  ;;  %v1742_v60 = vrot.slane %v1741_v19, 2  ;;  %v1749_v18 = vrot.slane %v1748_v50, 2 }
 0x174   :  { %v1775_v35 = vrot.slane %v1774_v8, 4  ;;  %v1756_v46 = vrot.slane %v1755_v26, 2  ;;  %v1763_v52 = vrot.slane %v1762_v17, 2  ;;  %v1781_v12 = vsel %vm7200_vm7, %v762_v32, -inf }
 0x175   :  { %v1769_v56 = vmax.f32 %v1767_v53, %v1768_v5  ;;  %vm7201_vm14 = vcmask 1045504   ;;  %v1743_v30 = vmax.f32 %v1741_v19, %v1742_v60  ;;  %v1750_v33 = vmax.f32 %v1748_v50, %v1749_v18  ;;  %v2501_v19 = vpop.permute.xlu1 %2500 }
 0x176   :  { %2462 = vrot.lane.b32.xlu0 %v5753_v55, %s4460_s30  ;;  %v5865_v45 = vsel %vm7201_vm14, %v2276_v54, %v2277_v2  ;;  %v1776_v0 = vmax.f32 %v1774_v8, %v1775_v35  ;;  %2410 = vrot.lane.b32.xlu1 %v5851_v20, %s4461_s10  ;;  %v1757_v16 = vmax.f32 %v1755_v26, %v1756_v46  ;;  %v1782_v14 = vrot.slane %v1781_v12, 4  ;;  %v2453_v46 = vpop.permute.xlu0 %2452 }
 0x177   :  { %v1764_v34 = vmax.f32 %v1762_v17, %v1763_v52  ;;  %v1770_v51 = vrot.slane %v1769_v56, 2  ;;  %v1738_v63 = vmax.f32 %v1736_v41, %v1737_v40  ;;  %v1744_v32 = vrot.slane %v1743_v30, 1 }
 0x178   :  { %v1751_v28 = vrot.slane %v1750_v33, 1  ;;  %v1777_v47 = vrot.slane %v1776_v0, 2  ;;  %v1758_v9 = vrot.slane %v1757_v16, 1  ;;  %v1783_v2 = vmax.f32 %v1781_v12, %v1782_v14 }
 0x179   :  { %v1765_v53 = vrot.slane %v1764_v34, 1  ;;  %v1771_v54 = vmax.f32 %v1769_v56, %v1770_v51  ;;  %vm7202_vm2 = vcmask 97280   ;;  %v1745_v26 = vmax.f32 %v1743_v30, %v1744_v32 }
 0x17a   :  { %v2658_v50 = vsel %vm7202_vm2, %v5818_v27, %v5637_v62  ;;  %2307 = vrot.lane.b32.xlu0 %v5865_v45, %s4456_s17  ;;  %v1752_v17 = vmax.f32 %v1750_v33, %v1751_v28  ;;  %v1778_v5 = vmax.f32 %v1776_v0, %v1777_v47  ;;  %v1759_v8 = vmax.f32 %v1757_v16, %v1758_v9  ;;  %v5911_v32 = vpop.permute.xlu0 %2208 }
 0x17b   :  { %v1766_v41 = vmax.f32 %v1764_v34, %v1765_v53  ;;  %v1772_v40 = vrot.slane %v1771_v54, 1  ;;  %v1784_v60 = vrot.slane %v1783_v2, 2  ;;  %2598 = vrot.lane.b32.xlu1 %v5753_v55, %s4463_s14  ;;  %v2691_v18 = vsel %vm2684_vm15, %v5831_v7, %v5686_v43  ;;  %v5901_v34 = vpop.permute.xlu1 %2346 }
 0x17c   :  { %vm7203_vm13 = vcmask 130048   ;;  %v1779_v27 = vrot.slane %v1778_v5, 1  ;;  %vm7204_vm5 = vcmask 1041409   ;;  %v2708_v30 = vsel %vm2701_vm8, %v2691_v18, %v5738_v61 }
 0x17d   :  { %v2675_v62 = vsel %vm7203_vm13, %v2658_v50, %v5688_v49  ;;  %v2035_v35 = vsel %vm7204_vm5, %v1745_v26, %v1738_v63  ;;  %v1773_v52 = vmax.f32 %v1771_v54, %v1772_v40  ;;  %v1785_v56 = vmax.f32 %v1783_v2, %v1784_v60 }
 0x17e   :  { %v2036_v12 = vsel %vm1925_vm6, %v1752_v17, %v2035_v35  ;;  %2510 = vrot.lane.b32.xlu0 %v5837_v22, %s4459_s28  ;;  %v1780_v55 = vmax.f32 %v1778_v5, %v1779_v27  ;;  %vm7205_vm7 = vcmask 1043459   ;;  %v2692_v49 = vsel %vm2684_vm15, %v2675_v62, %v5747_v15  ;;  %v2455_v26 = vpop.permute.xlu0 %2454 }
 0x17f   :  { %v2037_v43 = vsel %vm7205_vm7, %v1759_v8, %v2036_v12  ;;  %v2725_v7 = vsel %vm2718_vm1, %v2708_v30, %v5768_v44  ;;  %v1786_v33 = vrot.slane %v1785_v56, 1  ;;  %vm7206_vm14 = vcmask 1044484   ;;  %2464 = vrot.lane.b32.xlu1 %v5865_v45, %s4460_s30  ;;  %v2546_v28 = vpop.permute.xlu1 %2545 }
 0x180   :  { %v2038_v0 = vsel %vm7206_vm14, %v1766_v41, %v2037_v43  ;;  %v2709_v61 = vsel %vm2701_vm8, %v2692_v49, %v5793_v48  ;;  %vm7207_vm6 = vcmask 261120  }
 0x181   :  { %v2742_v16 = vsel %vm7207_vm6, %v2725_v7, %v5802_v39  ;;  %v2039_v51 = vsel %vm1931_vm9, %v1773_v52, %v2038_v0  ;;  %v2726_v15 = vsel %vm2718_vm1, %v2709_v61, %v5848_v29  ;;  %v1787_v44 = vmax.f32 %v1785_v56, %v1786_v33  ;;  %vm7208_vm2 = vmmov %vm7207_vm6 }
 0x182   :  { %4361 = vmatprep.mubr.msk.f32.mxu0 %vm2752_vm4, %v2742_v16  ;;  %v2040_v14 = vsel %vm1933_vm10, %v1780_v55, %v2039_v51  ;;  %v2743_v63 = vsel %vm7208_vm2, %v2726_v15, %v5841_v59  ;;  %vm7209_vm9 = vcmask 97280   ;;  %vm7210_vm10 = vmmov %vm7203_vm13  ;;  %vm7212_vm13 = vcmask 1046528   ;;  %v2300_v35 = vpop.permute.xlu0 %2299 }
 0x183   :  { %4362 = vmatmul.mubr.msk.f32.gmra.mxu0 %vm2752_vm4, %v2743_v63  ;;  %v2041_v39 = vsel %vm1935_vm11, %v1787_v44, %v2040_v14  ;;  %v2659_v2 = vsel %vm7209_vm9, %v5159_v1, %v5758_v42  ;;  %v2403_v17 = vpop.permute.xlu1 %2402  ;;  %vm7211_vm11 = vcmask 1045504   ;;  %vm7213_vm5 = vmmov %vm7208_vm2 }
 0x184   :  { %v2059_v47 = vrot.slane %v2041_v39, 7  ;;  %v2676_v41 = vsel %vm7210_vm10, %v2659_v2, %v5777_v58  ;;  %vm7214_vm7 = vmmov %vm7209_vm9 }
 0x185   :  { %v2693_v60 = vsel %vm2684_vm15, %v2676_v41, %v2453_v46  ;;  %vm7215_vm14 = vmmov %vm7210_vm10 }
 0x186   :  { %v2094_v9 = vsel %vm2077_vm0, 0.0, %v2059_v47  ;;  %v2111_v53 = vsel %vm2077_vm0, %v2059_v47, 0.0  ;;  %v2710_v18 = vsel %vm2701_vm8, %v2693_v60, %v2501_v19  ;;  %v2503_v58 = vpop.permute.xlu0 %2502  ;;  %v2627_v19 = vsel %vm90_vm3, %v5172_v25, %v5714_v13  ;;  %vm7216_vm6 = vmmov %vm7208_vm2 }
 0x187   :  { %v2433_v54 = vrot.slane %v2094_v9, 2  ;;  %2356 = vrot.lane.b32.xlu0 %v2094_v9, %s4458_s23  ;;  %v2434_v50 = vrot.slane %v2111_v53, 2  ;;  %v2379_v5 = vrot.slane %v2094_v9, 1  ;;  %v2380_v8 = vrot.slane %v2111_v53, 1  ;;  %v2591_v42 = vpop.permute.xlu1 %2590  ;;  %vm7217_vm2 = vmmov %vm7214_vm7  ;;  %s4466_s23 = smov 64  }
 0x188   :  { %v2727_v1 = vsel %vm2718_vm1, %v2710_v18, %v2546_v28  ;;  %v2643_v46 = vsel %vm2634_vm12, %v2627_v19, %v5766_v11  ;;  %vm7218_vm9 = vmmov %vm7210_vm10 }
 0x189   :  { %v2435_v40 = vsel %vm7211_vm11, %v2433_v54, %v2434_v50  ;;  %v2381_v62 = vsel %vm7212_vm13, %v2379_v5, %v2380_v8  ;;  %v2744_v27 = vsel %vm7213_vm5, %v2727_v1, %v2591_v42  ;;  %v2660_v52 = vsel %vm7214_vm7, %v2643_v46, %v5822_v4  ;;  %vm7219_vm10 = vmmov %vm7213_vm5 }
 0x18a   :  { %2466 = vrot.lane.b32.xlu1 %v2435_v40, %s4460_s30  ;;  %4364 = vmatprep.mubr.msk.f32.mxu0 %vm2752_vm4, %v2744_v27  ;;  %v2677_v56 = vsel %vm7215_vm14, %v2660_v52, %v5824_v38  ;;  %v2628_v38 = vsel %vm90_vm3, %v5272_v31, %v5867_v3  ;;  %vm7220_vm11 = vmmov %vm7217_vm2 }
 0x18b   :  { %2555 = vrot.lane.b32.xlu0 %v5851_v20, %s4462_s11  ;;  %v2694_v30 = vsel %vm2684_vm15, %v2677_v56, %v2455_v26  ;;  %v2644_v16 = vsel %vm2634_vm12, %v2628_v38, %v5859_v57  ;;  %vm7221_vm13 = vmmov %vm7218_vm9 }
 0x18c   :  { %v2711_v55 = vsel %vm2701_vm8, %v2694_v30, %v2503_v58  ;;  %v2661_v15 = vsel %vm7217_vm2, %v2644_v16, %v5901_v34  ;;  %v2629_v34 = vsel %vm90_vm3, %v5404_v37, %v5911_v32  ;;  %vm7222_vm7 = vmmov %vm7217_vm2 }
 0x18d   :  { %v2678_v14 = vsel %vm7218_vm9, %v2661_v15, %v2403_v17  ;;  %v2645_v53 = vsel %vm2634_vm12, %v2629_v34, %v2300_v35  ;;  %vm7223_vm14 = vmmov %vm7218_vm9 }
 0x18e   :  { %2557 = vrot.lane.b32.xlu1 %v2381_v62, %s4462_s11 }
 0x18f   :  { %2412 = vrot.lane.b32.xlu0 %v2381_v62, %s4461_s10 }
 0x192   :  { %3300 = vrot.lane.b32.xlu1 %v4537_v24, %s4456_s17 }
 0x193   :  { %2600 = vrot.lane.b32.xlu0 %v5865_v45, %s4463_s14  ;;  %v2349_v20 = vpop.permute.xlu0 %2348 }
 0x194   :  { %v2662_v54 = vsel %vm7220_vm11, %v2645_v53, %v2349_v20  ;;  %vm7226_vm11 = vmmov %vm7218_vm9 }
 0x196   :  { %3387 = vrot.lane.b32.xlu1 %v4534_v23, %s4461_s10  ;;  %v2405_v45 = vpop.permute.xlu1 %2404 }
 0x197   :  { %2512 = vrot.lane.b32.xlu0 %v2094_v9, %s4459_s28  ;;  %v2548_v12 = vpop.permute.xlu0 %2547  ;;  %v2679_v50 = vsel %vm7221_vm13, %v2662_v54, %v2405_v45  ;;  %vm7227_vm13 = vmmov %vm7213_vm5 }
 0x198   :  { %v2728_v43 = vsel %vm2718_vm1, %v2711_v55, %v2548_v12 }
 0x19a   :  { %v2593_v25 = vpop.permute.xlu1 %2592  ;;  %3606 = vrot.lane.b32.xlu1 %v4524_v10, %s4464_s0 }
 0x19b   :  { %2602 = vrot.lane.b32.xlu0 %v2435_v40, %s4463_s14  ;;  %v2745_v13 = vsel %vm7216_vm6, %v2728_v43, %v2593_v25  ;;  %v2211_v49 = vpop.permute.xlu0 %2210  ;;  %vm7224_vm6 = vmmov %vm7213_vm5 }
 0x19c   :  { %4365 = vmatmul.mubr.msk.f32.gmra.mxu0 %vm2752_vm4, %v2745_v13  ;;  %v2630_v27 = vsel %vm90_vm3, %v5521_v6, %v2211_v49 }
 0x19e   :  { %v2302_v11 = vpop.permute.xlu1 %2301  ;;  %3651 = vrot.lane.b32.xlu1 %v4537_v24, %s4465_s18 }
 0x19f   :  { %v2457_v4 = vpop.permute.xlu0 %2456  ;;  %v2646_v35 = vsel %vm2634_vm12, %v2630_v27, %v2302_v11  ;;  %3696 = vrot.lane.b32.xlu0 %v4534_v23, %s4466_s23 }
 0x1a0   :  { %v2695_v63 = vsel %vm2684_vm15, %v2678_v14, %v2457_v4 }
 0x1a2   :  { %v2505_v7 = vpop.permute.xlu1 %2504 }
 0x1a3   :  { %v2712_v39 = vsel %vm2701_vm8, %v2695_v63, %v2505_v7 }
 0x1ac   :  { %v2351_v33 = vpop.permute.xlu1 %2350 }
 0x1ad   :  { %v2663_v20 = vsel %vm7222_vm7, %v2646_v35, %v2351_v33  ;;  %vm7229_vm7 = vmmov %vm7218_vm9 }
 0x1af   :  { %v2213_v0 = vpop.permute.xlu0 %2212 }
 0x1b0   :  { %v2550_v61 = vpop.permute.xlu1 %2549  ;;  %v2631_v11 = vsel %vm90_vm3, %v5626_v21, %v2213_v0 }
 0x1b1   :  { %v2729_v47 = vsel %vm2718_vm1, %v2712_v39, %v2550_v61 }
 0x1b3   :  { %v2459_v51 = vpop.permute.xlu0 %2458 }
 0x1b4   :  { %v2407_v44 = vpop.permute.xlu1 %2406  ;;  %v2696_v17 = vsel %vm2684_vm15, %v2679_v50, %v2459_v51 }
 0x1b5   :  { %v2680_v46 = vsel %vm7223_vm14, %v2663_v20, %v2407_v44 }
 0x1b7   :  { %v2304_v28 = vpop.permute.xlu0 %2303 }
 0x1b8   :  { %v2595_v9 = vpop.permute.xlu1 %2594  ;;  %v2647_v49 = vsel %vm2634_vm12, %v2631_v11, %v2304_v28 }
 0x1b9   :  { %v2746_v31 = vsel %vm7219_vm10, %v2729_v47, %v2595_v9  ;;  %vm7225_vm10 = vmmov %vm7217_vm2 }
 0x1ba   :  { %4367 = vmatprep.mubr.msk.f32.mxu0 %vm2752_vm4, %v2746_v31 }
 0x1bb   :  { %v2507_v57 = vpop.permute.xlu0 %2506 }
 0x1bc   :  { %v2713_v5 = vsel %vm2701_vm8, %v2696_v17, %v2507_v57 }
 0x1c6   :  { %v2353_v3 = vpop.permute.xlu0 %2352 }
 0x1c7   :  { %v2664_v7 = vsel %vm7217_vm2, %v2647_v49, %v2353_v3 }
 0x1c9   :  { %v2409_v2 = vpop.permute.xlu1 %2408 }
 0x1ca   :  { %v2552_v26 = vpop.permute.xlu0 %2551  ;;  %v2681_v33 = vsel %vm7218_vm9, %v2664_v7, %v2409_v2 }
 0x1cb   :  { %v2730_v8 = vsel %vm2718_vm1, %v2713_v5, %v2552_v26 }
 0x1cd   :  { %v2597_v41 = vpop.permute.xlu1 %2596 }
 0x1ce   :  { %v2747_v40 = vsel %vm7213_vm5, %v2730_v8, %v2597_v41  ;;  %v2215_v32 = vpop.permute.xlu0 %2214  ;;  %vm7228_vm5 = vmmov %vm7217_vm2 }
 0x1cf   :  { %4368 = vmatmul.mubr.msk.f32.gmra.mxu0 %vm2752_vm4, %v2747_v40  ;;  %v2632_v21 = vsel %vm90_vm3, %v5735_v36, %v2215_v32 }
 0x1d1   :  { %v2306_v37 = vpop.permute.xlu1 %2305 }
 0x1d2   :  { %v2461_v18 = vpop.permute.xlu0 %2460  ;;  %v2648_v39 = vsel %vm2634_vm12, %v2632_v21, %v2306_v37 }
 0x1d3   :  { %v2697_v52 = vsel %vm2684_vm15, %v2680_v46, %v2461_v18 }
 0x1d5   :  { %v2509_v60 = vpop.permute.xlu1 %2508 }
 0x1d6   :  { %v2714_v45 = vsel %vm2701_vm8, %v2697_v52, %v2509_v60 }
 0x1e0   :  { %v2355_v1 = vpop.permute.xlu1 %2354 }
 0x1e1   :  { %v2665_v47 = vsel %vm7228_vm5, %v2648_v39, %v2355_v1 }
 0x1e4   :  { %v2217_v42 = vpop.permute.xlu0 %2216  ;;  %v2554_v62 = vpop.permute.xlu1 %2553 }
 0x1e5   :  { %v2731_v12 = vsel %vm2718_vm1, %v2714_v45, %v2554_v62  ;;  %v2633_v61 = vsel %vm90_vm3, %v5837_v22, %v2217_v42  ;;  %vm7230_vm3 = vmmov %vm7224_vm6 }
 0x1e6   :  { %vm7231_vm14 = vmmov %vm7230_vm3 }
 0x1e8   :  { %v2463_v58 = vpop.permute.xlu0 %2462  ;;  %v2411_v19 = vpop.permute.xlu1 %2410 }
 0x1e9   :  { %v2698_v38 = vsel %vm2684_vm15, %v2681_v33, %v2463_v58  ;;  %v2682_v9 = vsel %vm7229_vm7, %v2665_v47, %v2411_v19 }
 0x1ec   :  { %v2308_v56 = vpop.permute.xlu0 %2307 }
 0x1ed   :  { %v2599_v30 = vpop.permute.xlu1 %2598  ;;  %v2649_v16 = vsel %vm2634_vm12, %v2633_v61, %v2308_v56 }
 0x1ee   :  { %v2748_v55 = vsel %vm7224_vm6, %v2731_v12, %v2599_v30 }
 0x1ef   :  { %4370 = vmatprep.mubr.msk.f32.mxu0 %vm2752_vm4, %v2748_v55 }
 0x1f0   :  { %v2511_v6 = vpop.permute.xlu0 %2510 }
 0x1f1   :  { %v2465_v13 = vpop.permute.xlu1 %2464  ;;  %v2715_v15 = vsel %vm2701_vm8, %v2698_v38, %v2511_v6 }
 0x1f2   :  { %v2699_v31 = vsel %vm2684_vm15, %v2682_v9, %v2465_v13 }
 0x1f9   :  { %v2357_v43 = vpop.permute.xlu0 %2356 }
 0x1fa   :  { %v2666_v44 = vsel %vm7225_vm10, %v2649_v16, %v2357_v43 }
 0x1fc   :  { %v2467_v51 = vpop.permute.xlu1 %2466 }
 0x1fd   :  { %v2556_v25 = vpop.permute.xlu0 %2555 }
 0x1fe   :  { %v2732_v0 = vsel %vm2718_vm1, %v2715_v15, %v2556_v25 }
 0x200   :  { %v2558_v34 = vpop.permute.xlu1 %2557 }
 0x201   :  { %v2413_v4 = vpop.permute.xlu0 %2412 }
 0x202   :  { %v2683_v14 = vsel %vm7226_vm11, %v2666_v44, %v2413_v4 }
 0x203   :  { %v2700_v22 = vsel %vm2684_vm15, %v2683_v14, %v2467_v51  ;;  %vm7233_vm15 = vcmask 1045504  }
 0x204   :  { %v2717_v36 = vsel %vm2701_vm8, %v2700_v22, %v5793_v48  ;;  %v6029_v48 = vpop.f32.mrf.mxu0 }
 0x205   :  { %v2601_v63 = vpop.permute.xlu0 %2600  ;;  %v2734_v53 = vsel %vm2718_vm1, %v2717_v36, %v5848_v29  ;;  %v2990_v24 = vmul.f32 %v6029_v48, %v6029_v48  ;;  %v2951_v40 = vsel %vm2634_vm12, %v6029_v48, 0.0 }
 0x206   :  { %v2749_v28 = vsel %vm7227_vm13, %v2732_v0, %v2601_v63  ;;  %v2751_v26 = vsel %vm7231_vm14, %v2734_v53, %v5841_v59  ;;  %v6031_v29 = vpop.f32.mrf.mxu0 }
 0x207   :  { %4371 = vmatmul.mubr.msk.f32.gmra.mxu0 %vm2752_vm4, %v2749_v28  ;;  %v2989_v5 = vmul.f32 %v6031_v29, %v6031_v29  ;;  %v2950_v41 = vsel %vm2634_vm12, %v6031_v29, 0.0  ;;  %v3006_v1 = vsel %vm2634_vm12, %v2990_v24, 0.0 }
 0x208   :  { %v6033_v17 = vpop.f32.mrf.mxu0  ;;  %v2952_v60 = vadd.f32 %v2951_v40, %v2950_v41 }
 0x209   :  { %v2513_v57 = vpop.permute.xlu0 %2512  ;;  %v3005_v37 = vsel %vm2634_vm12, %v2989_v5, 0.0  ;;  %v2992_v58 = vmul.f32 %v6033_v17, %v6033_v17  ;;  %v2955_v46 = vsel %vm2634_vm12, %v6033_v17, 0.0 }
 0x20a   :  { %v2716_v3 = vsel %vm2701_vm8, %v2699_v31, %v2513_v57  ;;  %v6035_v59 = vpop.f32.mrf.mxu0  ;;  %v3007_v62 = vadd.f32 %v3006_v1, %v3005_v37 }
 0x20b   :  { %v2733_v54 = vsel %vm2718_vm1, %v2716_v3, %v2558_v34  ;;  %v2991_v23 = vmul.f32 %v6035_v59, %v6035_v59  ;;  %v2953_v32 = vsel %vm2634_vm12, %v6035_v59, 0.0  ;;  %v3010_v12 = vsel %vm2634_vm12, %v2992_v58, 0.0 }
 0x20c   :  { %v2954_v27 = vadd.f32 %v2953_v32, %v2952_v60  ;;  %vm7232_vm1 = vcmask 1046528  }
 0x20d   :  { %v2603_v2 = vpop.permute.xlu0 %2602  ;;  %v3008_v42 = vsel %vm2634_vm12, %v2991_v23, 0.0  ;;  %vm7239_vm6 = vmmov %vm7232_vm1 }
 0x20e   :  { %v2750_v50 = vsel %vm7230_vm3, %v2733_v54, %v2603_v2  ;;  %v3009_v19 = vadd.f32 %v3008_v42, %v3007_v62  ;;  %v2956_v45 = vadd.f32 %v2955_v46, %v2954_v27  ;;  %vm7240_vm2 = vmmov %vm7232_vm1 }
 0x20f   :  { %4373 = vmatprep.mubr.msk.f32.mxu0 %vm2752_vm4, %v2750_v50  ;;  %vm7242_vm10 = vmmov %vm7232_vm1 }
 0x210   :  { %4374 = vmatmul.mubr.msk.f32.gmra.mxu0 %vm2752_vm4, %v2751_v26  ;;  %v3011_v6 = vadd.f32 %v3010_v12, %v3009_v19  ;;  %vm7238_vm4 = vmmov %vm7233_vm15 }
 0x211   :  { %vm7241_vm9 = vmmov %vm7238_vm4 }
 0x212   :  { %vm7243_vm11 = vmmov %vm7238_vm4 }
 0x213   :  { %vm7244_vm13 = vmmov %vm7232_vm1 }
 0x214   :  { %vm7245_vm5 = vmmov %vm7238_vm4 }
 0x215   :  { %vm7246_vm7 = vmmov %vm7232_vm1 }
 0x216   :  { %vm7247_vm3 = vmmov %vm7238_vm4 }
 0x217   :  { %vm7248_vm14 = vmmov %vm7232_vm1 }
 0x228   :  { %v6039_v8 = vpop.f32.mrf.mxu0 }
 0x229   :  { %v2994_v25 = vmul.f32 %v6039_v8, %v6039_v8  ;;  %v2959_v49 = vsel %vm2634_vm12, %v6039_v8, 0.0 }
 0x22a   :  { %v6052_v18 = vpop.f32.mrf.mxu0 }
 0x22b   :  { %v2993_v20 = vmul.f32 %v6052_v18, %v6052_v18  ;;  %v2957_v52 = vsel %vm2634_vm12, %v6052_v18, 0.0  ;;  %v3014_v61 = vsel %vm2634_vm12, %v2994_v25, 0.0 }
 0x22c   :  { %v2958_v55 = vadd.f32 %v2957_v52, %v2956_v45 }
 0x22d   :  { %v3012_v30 = vsel %vm2634_vm12, %v2993_v20, 0.0 }
 0x22e   :  { %v3013_v11 = vadd.f32 %v3012_v30, %v3011_v6  ;;  %v2960_v4 = vadd.f32 %v2959_v49, %v2958_v55 }
 0x230   :  { %v3015_v51 = vadd.f32 %v3014_v61, %v3013_v11 }
 0x243   :  { %v6056_v35 = vpop.f32.mrf.mxu0 }
 0x244   :  { %v2996_v44 = vmul.f32 %v6056_v35, %v6056_v35  ;;  %v2963_v14 = vsel %vm2634_vm12, %v6056_v35, 0.0 }
 0x245   :  { %v6066_v56 = vpop.f32.mrf.mxu0 }
 0x246   :  { %v2995_v13 = vmul.f32 %v6066_v56, %v6066_v56  ;;  %v2961_v7 = vsel %vm2634_vm12, %v6066_v56, 0.0  ;;  %v3018_v28 = vsel %vm2634_vm12, %v2996_v44, 0.0 }
 0x247   :  { %v2962_v16 = vadd.f32 %v2961_v7, %v2960_v4 }
 0x248   :  { %v3016_v38 = vsel %vm2634_vm12, %v2995_v13, 0.0 }
 0x249   :  { %v3017_v0 = vadd.f32 %v3016_v38, %v3015_v51  ;;  %v2964_v39 = vadd.f32 %v2963_v14, %v2962_v16 }
 0x24b   :  { %v3019_v31 = vadd.f32 %v3018_v28, %v3017_v0 }
 0x25c   :  { %v6070_v43 = vpop.f32.mrf.mxu0 }
 0x25d   :  { %v2998_v36 = vmul.f32 %v6070_v43, %v6070_v43  ;;  %v2967_v34 = vsel %vm2634_vm12, %v6070_v43, 0.0 }
 0x25e   :  { %v6080_v33 = vpop.f32.mrf.mxu0 }
 0x25f   :  { %v2997_v21 = vmul.f32 %v6080_v33, %v6080_v33  ;;  %v2965_v63 = vsel %vm2634_vm12, %v6080_v33, 0.0  ;;  %v3022_v2 = vsel %vm2634_vm12, %v2998_v36, 0.0 }
 0x260   :  { %v2966_v9 = vadd.f32 %v2965_v63, %v2964_v39 }
 0x261   :  { %v3020_v47 = vsel %vm2634_vm12, %v2997_v21, 0.0 }
 0x262   :  { %v3021_v3 = vadd.f32 %v3020_v47, %v3019_v31  ;;  %v2968_v54 = vadd.f32 %v2967_v34, %v2966_v9 }
 0x264   :  { %v3023_v24 = vadd.f32 %v3022_v2, %v3021_v3 }
 0x28f   :  { %v6084_v15 = vpop.f32.mrf.mxu0 }
 0x290   :  { %v3000_v41 = vmul.f32 %v6084_v15, %v6084_v15  ;;  %v2971_v32 = vsel %vm2634_vm12, %v6084_v15, 0.0 }
 0x291   :  { %v6094_v22 = vpop.f32.mrf.mxu0 }
 0x292   :  { %v2999_v57 = vmul.f32 %v6094_v22, %v6094_v22  ;;  %v2969_v53 = vsel %vm2634_vm12, %v6094_v22, 0.0  ;;  %v3026_v42 = vsel %vm2634_vm12, %v3000_v41, 0.0 }
 0x293   :  { %v2970_v5 = vadd.f32 %v2969_v53, %v2968_v54 }
 0x294   :  { %v3024_v50 = vsel %vm2634_vm12, %v2999_v57, 0.0 }
 0x295   :  { %v3025_v40 = vadd.f32 %v3024_v50, %v3023_v24  ;;  %v2972_v1 = vadd.f32 %v2971_v32, %v2970_v5 }
 0x297   :  { %v3027_v58 = vadd.f32 %v3026_v42, %v3025_v40  ;;  %v6167_v42 = vld [vmem:[%s7121_s3] ss:$0 sm:$0xff] }
 0x2c7   :  { %v6108_v26 = vpop.f32.mrf.mxu0 }
 0x2c8   :  { %v3002_v20 = vmul.f32 %v6108_v26, %v6108_v26  ;;  %v2975_v52 = vsel %vm2634_vm12, %v6108_v26, 0.0 }
 0x2c9   :  { %v6112_v23 = vpop.f32.mrf.mxu0 }
 0x2ca   :  { %v3001_v37 = vmul.f32 %v6112_v23, %v6112_v23  ;;  %v2973_v60 = vsel %vm2634_vm12, %v6112_v23, 0.0  ;;  %v3030_v30 = vsel %vm2634_vm12, %v3002_v20, 0.0 }
 0x2cb   :  { %v2974_v27 = vadd.f32 %v2973_v60, %v2972_v1 }
 0x2cc   :  { %v3028_v62 = vsel %vm2634_vm12, %v3001_v37, 0.0  ;;  %v6154_v37 = vld [vmem:[%s7120_s2] ss:$0 sm:$0xff]  ;;  %s4467_s2 = smov 40  }
 0x2cd   :  { %v3029_v19 = vadd.f32 %v3028_v62, %v3027_v58  ;;  %v2976_v12 = vadd.f32 %v2975_v52, %v2974_v27 }
 0x2cf   :  { %v3031_v11 = vadd.f32 %v3030_v30, %v3029_v19 }
 0x2d0   :  { %v6124_v46 = vpop.f32.mrf.mxu0 }
 0x2d1   :  { %v3004_v55 = vmul.f32 %v6124_v46, %v6124_v46  ;;  %v2979_v49 = vsel %vm2634_vm12, %v6124_v46, 0.0 }
 0x2d2   :  { %v2941_v45 = vpop.f32.mrf.mxu0 }
 0x2d3   :  { %v2977_v6 = vsel %vm2634_vm12, %v2941_v45, 0.0  ;;  %v3003_v25 = vmul.f32 %v2941_v45, %v2941_v45  ;;  %v3034_v38 = vsel %vm2634_vm12, %v3004_v55, 0.0 }
 0x2d4   :  { %v2978_v13 = vadd.f32 %v2977_v6, %v2976_v12 }
 0x2d5   :  { %v3032_v7 = vsel %vm2634_vm12, %v3003_v25, 0.0 }
 0x2d6   :  { %v2980_v4 = vadd.f32 %v2979_v49, %v2978_v13  ;;  %v3033_v61 = vadd.f32 %v3032_v7, %v3031_v11 }
 0x2d8   :  { %v2981_v16 = vrot.slane %v2980_v4, 4  ;;  %v3035_v51 = vadd.f32 %v3034_v38, %v3033_v61 }
 0x2da   :  { %v2982_v44 = vadd.f32 %v2981_v16, %v2980_v4  ;;  %v3036_v21 = vrot.slane %v3035_v51, 4 }
 0x2dc   :  { %v2983_v0 = vrot.slane %v2982_v44, 2  ;;  %v3037_v14 = vadd.f32 %v3036_v21, %v3035_v51 }
 0x2de   :  { %v2984_v63 = vadd.f32 %v2983_v0, %v2982_v44  ;;  %v3038_v39 = vrot.slane %v3037_v14, 2 }
 0x2e0   :  { %v2985_v28 = vrot.slane %v2984_v63, 1  ;;  %v3039_v47 = vadd.f32 %v3038_v39, %v3037_v14 }
 0x2e2   :  { %v2986_v9 = vadd.f32 %v2985_v28, %v2984_v63  ;;  %v3040_v31 = vrot.slane %v3039_v47, 1 }
 0x2e4   :  { %v6136_v36 = vmul.f32 0.0078125, %v2986_v9  ;;  %v3041_v57 = vadd.f32 %v3040_v31, %v3039_v47 }
 0x2e6   :  { %v3042_v3 = vmul.f32 0.0078125, %v3041_v57  ;;  %v3043_v34 = vmul.f32 %v6136_v36, %v6136_v36  ;;  %v3060_v2 = vsub.f32 %v6124_v46, %v6136_v36  ;;  %v3059_v50 = vsub.f32 %v2941_v45, %v6136_v36 }
 0x2e7   :  { %v3046_v5 = vsub.f32 %v6029_v48, %v6136_v36  ;;  %v3045_v24 = vsub.f32 %v6031_v29, %v6136_v36  ;;  %v3048_v41 = vsub.f32 %v6033_v17, %v6136_v36  ;;  %v3047_v32 = vsub.f32 %v6035_v59, %v6136_v36 }
 0x2e8   :  { %v3044_v53 = vsub.f32 %v3042_v3, %v3043_v34  ;;  %v3049_v60 = vsub.f32 %v6052_v18, %v6136_v36  ;;  %v3050_v52 = vsub.f32 %v6039_v8, %v6136_v36  ;;  %v3051_v8 = vsub.f32 %v6066_v56, %v6136_v36 }
 0x2e9   :  { %v3052_v21 = vsub.f32 %v6056_v35, %v6136_v36  ;;  %v3054_v3 = vsub.f32 %v6070_v43, %v6136_v36  ;;  %v3053_v43 = vsub.f32 %v6080_v33, %v6136_v36  ;;  %v3056_v33 = vsub.f32 %v6084_v15, %v6136_v36 }
 0x2ea   :  { %v3061_v54 = vadd.f32 1e-05, %v3044_v53  ;;  %v3057_v15 = vsub.f32 %v6112_v23, %v6136_v36  ;;  %v3058_v23 = vsub.f32 %v6108_v26, %v6136_v36 }
 0x2ec   :  { %4450 = vrsqrt.f32 %v3061_v54 }
 0x2f9   :  { %v6149_v40 = vpop.eup %4450 }
 0x2fa   :  { %v3077_v48 = vmul.f32 %v6149_v40, %v3059_v50  ;;  %v3064_v29 = vmul.f32 %v6149_v40, %v3046_v5  ;;  %v3063_v1 = vmul.f32 %v6149_v40, %v3045_v24  ;;  %v3066_v17 = vmul.f32 %v6149_v40, %v3048_v41 }
 0x2fb   :  { %v3065_v62 = vmul.f32 %v6149_v40, %v3047_v32  ;;  %v3067_v59 = vmul.f32 %v6149_v40, %v3049_v60  ;;  %v3068_v13 = vmul.f32 %v6149_v40, %v3050_v52  ;;  %v3069_v44 = vmul.f32 %v6149_v40, %v3051_v8 }
 0x2fc   :  { %v3099_v27 = vmul.f32 %v6154_v37, %v3077_v48  ;;  %v3086_v18 = vmul.f32 %v6154_v37, %v3064_v29  ;;  %v3085_v58 = vmul.f32 %v6154_v37, %v3063_v1  ;;  %v3088_v20 = vmul.f32 %v6154_v37, %v3066_v17 }
 0x2fd   :  { %v3087_v19 = vmul.f32 %v6154_v37, %v3065_v62  ;;  %v3089_v25 = vmul.f32 %v6154_v37, %v3067_v59  ;;  %v3090_v51 = vmul.f32 %v6154_v37, %v3068_v13  ;;  %v3070_v35 = vmul.f32 %v6149_v40, %v3052_v21 }
 0x2fe   :  { %v6179_v45 = vadd.f32 %v6167_v42, %v3099_v27  ;;  %v3108_v12 = vadd.f32 %v6167_v42, %v3086_v18  ;;  %v3107_v30 = vadd.f32 %v6167_v42, %v3085_v58  ;;  %v3110_v55 = vadd.f32 %v6167_v42, %v3088_v20 }
 0x2ff   :  { %v3109_v6 = vadd.f32 %v6167_v42, %v3087_v19  ;;  %v3111_v16 = vadd.f32 %v6167_v42, %v3089_v25  ;;  %v3112_v28 = vadd.f32 %v6167_v42, %v3090_v51  ;;  %v3091_v47 = vmul.f32 %v6154_v37, %v3069_v44 }
 0x300   :  { %v3124_v11 = vmax.f32 %v3108_v12, 0.0  ;;  %v3123_v49 = vmax.f32 %v3107_v30, 0.0  ;;  %v3126_v7 = vmax.f32 %v3110_v55, 0.0  ;;  %v3092_v57 = vmul.f32 %v6154_v37, %v3070_v35 }
 0x301   :  { %v3125_v4 = vmax.f32 %v3109_v6, 0.0  ;;  %v3127_v39 = vmax.f32 %v3111_v16, 0.0  ;;  %v3128_v53 = vmax.f32 %v3112_v28, 0.0  ;;  %v3113_v54 = vadd.f32 %v6167_v42, %v3091_v47 }
 0x302   :  { %v6189_v61 = vrot.slane %v3124_v11, 7  ;;  %v6191_v38 = vrot.slane %v3123_v49, 7  ;;  %v6206_v14 = vrot.slane %v3126_v7, 7  ;;  %v3114_v50 = vadd.f32 %v6167_v42, %v3092_v57 }
 0x303   :  { %v6208_v63 = vrot.slane %v3125_v4, 7  ;;  %v6232_v34 = vrot.slane %v3127_v39, 7  ;;  %v3072_v5 = vmul.f32 %v6149_v40, %v3054_v3  ;;  %v3055_v24 = vsub.f32 %v6094_v22, %v6136_v36 }
 0x304   :  { %v6200_v0 = vsel %vm2077_vm0, 0.0, %v6189_v61  ;;  %v6204_v56 = vsel %vm2077_vm0, 0.0, %v6191_v38  ;;  %v6219_v9 = vsel %vm2077_vm0, 0.0, %v6206_v14  ;;  %v6249_v32 = vrot.slane %v3128_v53, 7 }
 0x305   :  { %3436 = vrot.lane.b32.xlu1 %v6200_v0, %s4459_s28  ;;  %3434 = vrot.lane.b32.xlu0 %v6204_v56, %s4459_s28  ;;  %v6223_v31 = vsel %vm2077_vm0, 0.0, %v6208_v63  ;;  %v6247_v41 = vsel %vm2077_vm0, 0.0, %v6232_v34  ;;  %v3129_v60 = vmax.f32 %v3113_v54, 0.0  ;;  %v3130_v48 = vmax.f32 %v3114_v50, 0.0 }
 0x306   :  { %v3094_v29 = vmul.f32 %v6154_v37, %v3072_v5  ;;  %v3073_v1 = vmul.f32 %v6149_v40, %v3055_v24  ;;  %v3071_v17 = vmul.f32 %v6149_v40, %v3053_v43  ;;  %v6262_v22 = vsel %vm2077_vm0, 0.0, %v6249_v32 }
 0x307   :  { %v6264_v62 = vrot.slane %v3129_v60, 7  ;;  %v3074_v59 = vmul.f32 %v6149_v40, %v3056_v33  ;;  %v3173_v27 = vrot.slane %v3130_v48, 7  ;;  %v3075_v12 = vmul.f32 %v6149_v40, %v3057_v15 }
 0x308   :  { %v3116_v18 = vadd.f32 %v6167_v42, %v3094_v29  ;;  %v3095_v58 = vmul.f32 %v6154_v37, %v3073_v1  ;;  %v3093_v20 = vmul.f32 %v6154_v37, %v3071_v17  ;;  %v3076_v4 = vmul.f32 %v6149_v40, %v3058_v23 }
 0x309   :  { %3440 = vrot.lane.b32.xlu1 %v6219_v9, %s4459_s28  ;;  %3438 = vrot.lane.b32.xlu0 %v6223_v31, %s4459_s28  ;;  %v6278_v19 = vsel %vm2077_vm0, 0.0, %v6264_v62  ;;  %v3096_v52 = vmul.f32 %v6154_v37, %v3074_v59  ;;  %v3205_v30 = vsel %vm2077_vm0, 0.0, %v3173_v27  ;;  %v3221_v13 = vsel %vm2077_vm0, %v3173_v27, 0.0 }
 0x30a   :  { %v3132_v55 = vmax.f32 %v3116_v18, 0.0  ;;  %v3117_v6 = vadd.f32 %v6167_v42, %v3095_v58  ;;  %v3115_v25 = vadd.f32 %v6167_v42, %v3093_v20  ;;  %v3484_v11 = vrot.slane %v3205_v30, 1 }
 0x30b   :  { %v3538_v49 = vrot.slane %v3205_v30, 2  ;;  %v3097_v7 = vmul.f32 %v6154_v37, %v3075_v12  ;;  %v3118_v44 = vadd.f32 %v6167_v42, %v3096_v52  ;;  %v3485_v26 = vrot.slane %v3221_v13, 1 }
 0x30c   :  { %v6294_v8 = vrot.slane %v3132_v55, 7  ;;  %v3133_v16 = vmax.f32 %v3117_v6, 0.0  ;;  %v3131_v51 = vmax.f32 %v3115_v25, 0.0  ;;  %v3539_v21 = vrot.slane %v3221_v13, 2 }
 0x30d   :  { %3596 = vrot.lane.b32.xlu1 %v6219_v9, %s4464_s0  ;;  %3592 = vrot.lane.b32.xlu0 %v6200_v0, %s4464_s0  ;;  %v3119_v35 = vadd.f32 %v6167_v42, %v3097_v7  ;;  %v3098_v39 = vmul.f32 %v6154_v37, %v3076_v4  ;;  %v6303_v28 = vsel %vm7232_vm1, %v3484_v11, %v3485_v26  ;;  %v3134_v54 = vmax.f32 %v3118_v44, 0.0  ;;  %v3145_v26 = vld [vmem:[%s7122_s4 + $0x30] sm:$0xff] }
 0x30e   :  { %v6306_v47 = vsel %vm7233_vm15, %v3538_v49, %v3539_v21  ;;  %v6310_v57 = vsel %vm2077_vm0, 0.0, %v6294_v8  ;;  %v6312_v3 = vrot.slane %v3133_v16, 7  ;;  %v6314_v53 = vrot.slane %v3131_v51, 7  ;;  %v3147_v51 = vld [vmem:[%s7122_s4 + $0x40] sm:$0xff]  ;;  %v3144_v21 = vld [vmem:[%s7122_s4 + $0x28] sm:$0xff]  ;;  %vm7249_vm15 = vmmov %vm7247_vm3 }
 0x30f   :  { %7234 = vst [vmem:[#allocation2_spill] sm:$0xff] %v6310_v57  ;;  %v3120_v50 = vadd.f32 %v6167_v42, %v3098_v39  ;;  %v6328_v43 = vrot.slane %v3134_v54, 7  ;;  %v3135_v60 = vmax.f32 %v3119_v35, 0.0  ;;  %v3078_v17 = vmul.f32 %v6149_v40, %v3060_v2  ;;  %4376 = vmatprep.subr.mxu0 %v3147_v51  ;;  %4418 = vmatprep.subr.mxu1 %v3147_v51  ;;  %v3143_v39 = vld [vmem:[%s7122_s4 + $0x20] sm:$0xff] }
 0x310   :  { %v6322_v5 = vsel %vm2077_vm0, 0.0, %v6312_v3  ;;  %v6326_v24 = vsel %vm2077_vm0, 0.0, %v6314_v53  ;;  %v3214_v18 = vsel %vm2077_vm0, %v6191_v38, 0.0  ;;  %v3345_v36 = vrot.slane %v6204_v56, 2  ;;  %4377 = vmatpush3.msra.mxu0 %v3147_v51  ;;  %4427 = vmatpush3.msra.mxu1 %v3147_v51 }
 0x311   :  { %3442 = vrot.lane.b32.xlu1 %v6247_v41, %s4459_s28  ;;  %3594 = vrot.lane.b32.xlu0 %v6223_v31, %s4464_s0  ;;  %7235 = vst [vmem:[#allocation3_spill] sm:$0xff] %v6322_v5  ;;  %v6336_v48 = vsel %vm2077_vm0, 0.0, %v6328_v43  ;;  %v6338_v29 = vrot.slane %v3135_v60, 7  ;;  %v3136_v1 = vmax.f32 %v3120_v50, 0.0  ;;  %v3100_v27 = vmul.f32 %v6154_v37, %v3078_v17 }
 0x312   :  { %7236 = vst [vmem:[#allocation4_spill] sm:$0xff] %v6336_v48  ;;  %v3346_v40 = vrot.slane %v3214_v18, 2  ;;  %v3216_v37 = vsel %vm2077_vm0, %v6208_v63, 0.0  ;;  %v3264_v38 = vrot.slane %v6223_v31, 1  ;;  %v3258_v58 = vrot.slane %v6204_v56, 1 }
 0x313   :  { %v6350_v33 = vsel %vm2077_vm0, 0.0, %v6338_v29  ;;  %v6352_v59 = vrot.slane %v3136_v1, 7  ;;  %v6362_v46 = vadd.f32 %v6167_v42, %v3100_v27  ;;  %v3265_v42 = vrot.slane %v3216_v37, 1 }
 0x314   :  { %7237 = vst [vmem:[#allocation5_spill] sm:$0xff] %v6350_v33  ;;  %v3347_v20 = vsel %vm7238_vm4, %v3345_v36, %v3346_v40  ;;  %v3259_v15 = vrot.slane %v3214_v18, 1  ;;  %v3215_v63 = vsel %vm2077_vm0, %v6189_v61, 0.0  ;;  %v3351_v12 = vrot.slane %v6223_v31, 2  ;;  %v3141_v18 = vld [vmem:[%s7122_s4 + $0x10] sm:$0xff]  ;;  %v3140_v36 = vld [vmem:[%s7122_s4 + $0x8] sm:$0xff]  ;;  %vm7250_vm4 = vmmov %vm7247_vm3 }
 0x315   :  { %3444 = vrot.lane.b32.xlu1 %v6262_v22, %s4459_s28  ;;  %3598 = vrot.lane.b32.xlu0 %v6247_v41, %s4464_s0  ;;  %v6367_v2 = vsel %vm2077_vm0, 0.0, %v6352_v59  ;;  %v6384_v52 = vsel %vm7239_vm6, %v3264_v38, %v3265_v42  ;;  %v3352_v55 = vrot.slane %v3216_v37, 2  ;;  %v3261_v6 = vrot.slane %v6200_v0, 1  ;;  %v3139_v40 = vld [vmem:[%s7122_s4] sm:$0xff]  ;;  %vm7251_vm6 = vmmov %vm7247_vm3 }
 0x316   :  { %v3262_v25 = vrot.slane %v3215_v63, 1  ;;  %v3348_v13 = vrot.slane %v6200_v0, 2  ;;  %v3349_v11 = vrot.slane %v3215_v63, 2  ;;  %v3217_v7 = vsel %vm2077_vm0, %v6206_v14, 0.0  ;;  %v3146_v14 = vld [vmem:[%s7122_s4 + $0x38] sm:$0xff] }
 0x317   :  { %v6393_v23 = vsel %vm7241_vm9, %v3351_v12, %v3352_v55  ;;  %v3267_v4 = vrot.slane %v6219_v9, 1  ;;  %v3268_v16 = vrot.slane %v3217_v7, 1  ;;  %4378 = vmatprep.subr.mxu0 %v3146_v14  ;;  %4419 = vmatprep.subr.mxu1 %v3146_v14  ;;  %v3218_v35 = vsel %vm2077_vm0, %v6232_v34, 0.0  ;;  %v3142_v34 = vld [vmem:[%s7122_s4 + $0x18] sm:$0xff]  ;;  %vm7253_vm9 = vmmov %vm7232_vm1 }
 0x318   :  { %v3263_v61 = vsel %vm7242_vm10, %v3261_v6, %v3262_v25  ;;  %v3350_v49 = vsel %vm7243_vm11, %v3348_v13, %v3349_v11  ;;  %4379 = vmatpush3.msra.mxu0 %v3146_v14  ;;  %4428 = vmatpush3.msra.mxu1 %v3146_v14  ;;  %v3354_v54 = vrot.slane %v6219_v9, 2  ;;  %v3355_v50 = vrot.slane %v3217_v7, 2  ;;  %v6489_v7 = vpop.permute.xlu0 %3696  ;;  %vm7254_vm10 = vmmov %vm7232_vm1 }
 0x319   :  { %3602 = vrot.lane.b32.xlu1 %v6278_v19, %s4464_s0  ;;  %3600 = vrot.lane.b32.xlu0 %v6262_v22, %s4464_s0  ;;  %v3269_v44 = vsel %vm7244_vm13, %v3267_v4, %v3268_v16  ;;  %v3270_v60 = vrot.slane %v6247_v41, 1  ;;  %v3271_v1 = vrot.slane %v3218_v35, 1  ;;  %v3357_v37 = vrot.slane %v6247_v41, 2  ;;  %vm7255_vm11 = vmmov %vm7247_vm3 }
 0x31a   :  { %4380 = vmatprep.subr.mxu0 %v3145_v26  ;;  %4420 = vmatprep.subr.mxu1 %v3145_v26  ;;  %v3356_v17 = vsel %vm7245_vm5, %v3354_v54, %v3355_v50  ;;  %v3358_v38 = vrot.slane %v3218_v35, 2  ;;  %v3219_v42 = vsel %vm2077_vm0, %v6249_v32, 0.0  ;;  %v3222_v35 = vsel %vm2077_vm0, %v6314_v53, 0.0  ;;  %vm7257_vm13 = vmmov %vm7247_vm3 }
 0x31b   :  { %4381 = vmatpush3.msra.mxu0 %v3145_v26  ;;  %4429 = vmatpush3.msra.mxu1 %v3145_v26  ;;  %v3272_v27 = vsel %vm7246_vm7, %v3270_v60, %v3271_v1  ;;  %v3274_v63 = vrot.slane %v3219_v42, 1  ;;  %v3361_v13 = vrot.slane %v3219_v42, 2  ;;  %v3366_v50 = vrot.slane %v6326_v24, 2  ;;  %vm7262_vm5 = vmmov %vm7232_vm1 }
 0x31c   :  { %4382 = vmatprep.subr.mxu0 %v3144_v21  ;;  %4421 = vmatprep.subr.mxu1 %v3144_v21  ;;  %v3367_v60 = vrot.slane %v3222_v35, 2  ;;  %v3223_v1 = vsel %vm2077_vm0, %v6294_v8, 0.0  ;;  %v3279_v53 = vrot.slane %v6326_v24, 1  ;;  %vm7264_vm7 = vmmov %vm7232_vm1 }
 0x31d   :  { %3448 = vrot.lane.b32.xlu1 %v3205_v30, %s4459_s28  ;;  %3446 = vrot.lane.b32.xlu0 %v6278_v19, %s4459_s28 }
 0x31e   :  { %4383 = vmatpush3.msra.mxu0 %v3144_v21  ;;  %4430 = vmatpush3.msra.mxu1 %v3144_v21 }
 0x31f   :  { %4384 = vmatprep.subr.mxu0 %v3143_v39  ;;  %4422 = vmatprep.subr.mxu1 %v3143_v39 }
 0x320   :  { %4385 = vmatpush3.msra.mxu0 %v3143_v39  ;;  %4431 = vmatpush3.msra.mxu1 %v3143_v39 }
 0x321   :  { %3452 = vrot.lane.b32.xlu1 %v6310_v57, %s4459_s28  ;;  %3604 = vrot.lane.b32.xlu0 %v3205_v30, %s4464_s0  ;;  %v3260_v30 = vsel %vm7240_vm2, %v3258_v58, %v3259_v15  ;;  %v6460_v58 = vpop.permute.xlu1 %3300  ;;  %v3273_v15 = vrot.slane %v6262_v22, 1  ;;  %vm7252_vm2 = vmmov %vm7232_vm1 }
 0x322   :  { %4386 = vmatprep.subr.mxu0 %v3142_v34  ;;  %4423 = vmatprep.subr.mxu1 %v3142_v34 }
 0x323   :  { %4387 = vmatpush3.msra.mxu0 %v3142_v34  ;;  %4432 = vmatpush3.msra.mxu1 %v3142_v34  ;;  %v3275_v12 = vsel %vm7248_vm14, %v3273_v15, %v3274_v63  ;;  %vm7265_vm14 = vmmov %vm7247_vm3 }
 0x324   :  { %4388 = vmatprep.subr.mxu0 %v3141_v18  ;;  %4424 = vmatprep.subr.mxu1 %v3141_v18 }
 0x325   :  { %3610 = vrot.lane.b32.xlu1 %v6322_v5, %s4464_s0  ;;  %3450 = vrot.lane.b32.xlu0 %v6326_v24, %s4459_s28  ;;  %v6470_v32 = vpop.permute.xlu1 %3387 }
 0x326   :  { %4389 = vmatpush3.msra.mxu0 %v3141_v18  ;;  %4433 = vmatpush3.msra.mxu1 %v3141_v18  ;;  %v3282_v18 = vrot.slane %v6310_v57, 1 }
 0x327   :  { %4390 = vmatprep.subr.mxu0 %v3140_v36  ;;  %4425 = vmatprep.subr.mxu1 %v3140_v36 }
 0x328   :  { %4391 = vmatpush3.msra.mxu0 %v3140_v36  ;;  %4434 = vmatpush3.msra.mxu1 %v3140_v36  ;;  %v3283_v36 = vrot.slane %v3223_v1, 1 }
 0x329   :  { %3456 = vrot.lane.b32.xlu1 %v6336_v48, %s4459_s28  ;;  %3608 = vrot.lane.b32.xlu0 %v6310_v57, %s4464_s0  ;;  %v6477_v6 = vpop.permute.xlu1 %3606 }
 0x32a   :  { %4392 = vmatprep.subr.mxu0 %v3139_v40  ;;  %4426 = vmatprep.subr.mxu1 %v3139_v40  ;;  %v3284_v8 = vsel %vm7252_vm2, %v3282_v18, %v3283_v36  ;;  %vm7268_vm2 = vcmask 261120  }
 0x32b   :  { %4393 = vmatpush3.msra.mxu0 %v3139_v40  ;;  %4435 = vmatpush3.msra.mxu1 %v3139_v40  ;;  %v3280_v40 = vrot.slane %v3222_v35, 1 }
 0x32d   :  { %3614 = vrot.lane.b32.xlu1 %v6350_v33, %s4464_s0  ;;  %3454 = vrot.lane.b32.xlu0 %v6322_v5, %s4459_s28  ;;  %v3281_v42 = vsel %vm7253_vm9, %v3279_v53, %v3280_v40  ;;  %vm3823_vm9 = vcmask 457728  }
 0x331   :  { %3460 = vrot.lane.b32.xlu1 %v6367_v2, %s4459_s28  ;;  %3612 = vrot.lane.b32.xlu0 %v6336_v48, %s4464_s0 }
 0x335   :  { %3458 = vrot.lane.b32.xlu0 %v6350_v33, %s4459_s28  ;;  %3389 = vrot.lane.b32.xlu1 %v3347_v20, %s4461_s10 }
 0x339   :  { %3306 = vrot.lane.b32.xlu1 %v6384_v52, %s4456_s17  ;;  %3302 = vrot.lane.b32.xlu0 %v3260_v30, %s4456_s17 }
 0x33d   :  { %3393 = vrot.lane.b32.xlu1 %v6393_v23, %s4461_s10  ;;  %3304 = vrot.lane.b32.xlu0 %v3263_v61, %s4456_s17 }
 0x341   :  { %3492 = vrot.lane.b32.xlu1 %v3263_v61, %s4463_s14  ;;  %3391 = vrot.lane.b32.xlu0 %v3350_v49, %s4461_s10 }
 0x345   :  { %3546 = vrot.lane.b32.xlu1 %v3350_v49, %s4467_s2  ;;  %3490 = vrot.lane.b32.xlu0 %v3260_v30, %s4463_s14  ;;  %v3276_v30 = vrot.slane %v6278_v19, 1 }
 0x349   :  { %3308 = vrot.lane.b32.xlu1 %v3269_v44, %s4456_s17  ;;  %3544 = vrot.lane.b32.xlu0 %v3347_v20, %s4467_s2  ;;  %v3359_v20 = vsel %vm7247_vm3, %v3357_v37, %v3358_v38 }
 0x34d   :  { %3548 = vrot.lane.b32.xlu1 %v6393_v23, %s4467_s2  ;;  %3494 = vrot.lane.b32.xlu0 %v6384_v52, %s4463_s14 }
 0x351   :  { %3637 = vrot.lane.b32.xlu1 %v3263_v61, %s4465_s18  ;;  %3496 = vrot.lane.b32.xlu0 %v3269_v44, %s4463_s14  ;;  %v3360_v61 = vrot.slane %v6262_v22, 2 }
 0x355   :  { %3395 = vrot.lane.b32.xlu1 %v3356_v17, %s4461_s10  ;;  %3310 = vrot.lane.b32.xlu0 %v3272_v27, %s4456_s17 }
 0x359   :  { %3682 = vrot.lane.b32.xlu1 %v3350_v49, %s4466_s23  ;;  %3550 = vrot.lane.b32.xlu0 %v3356_v17, %s4467_s2  ;;  %v6487_v49 = vpop.permute.xlu1 %3651 }
 0x35d   :  { %3641 = vrot.lane.b32.xlu1 %v3269_v44, %s4465_s18  ;;  %3639 = vrot.lane.b32.xlu0 %v6384_v52, %s4465_s18  ;;  %v3220_v52 = vsel %vm2077_vm0, %v6264_v62, 0.0  ;;  %v3362_v62 = vsel %vm7249_vm15, %v3360_v61, %v3361_v13  ;;  %v3370_v61 = vrot.slane %v3223_v1, 2  ;;  %vm7266_vm15 = vcmask 130048  }
 0x35e   :  { %v3277_v55 = vrot.slane %v3220_v52, 1  ;;  %v3364_v11 = vrot.slane %v3220_v52, 2 }
 0x360   :  { %v3278_v25 = vsel %vm7232_vm1, %v3276_v30, %v3277_v55 }
 0x361   :  { %3643 = vrot.lane.b32.xlu1 %v3272_v27, %s4465_s18  ;;  %3397 = vrot.lane.b32.xlu0 %v3359_v20, %s4461_s10 }
 0x365   :  { %3312 = vrot.lane.b32.xlu1 %v3275_v12, %s4456_s17  ;;  %3684 = vrot.lane.b32.xlu0 %v6393_v23, %s4466_s23  ;;  %v3363_v23 = vrot.slane %v6278_v19, 2 }
 0x367   :  { %v3365_v4 = vsel %vm7250_vm4, %v3363_v23, %v3364_v11  ;;  %vm7267_vm4 = vmmov %vm7232_vm1 }
 0x369   :  { %3552 = vrot.lane.b32.xlu1 %v3359_v20, %s4467_s2  ;;  %3498 = vrot.lane.b32.xlu0 %v3272_v27, %s4463_s14  ;;  %v3368_v27 = vsel %vm7251_vm6, %v3366_v50, %v3367_v60  ;;  %v3225_v60 = vsel %vm2077_vm0, %v6328_v43, 0.0  ;;  %v3226_v43 = vsel %vm2077_vm0, %v6338_v29, 0.0  ;;  %vm3789_vm6 = vcmask 326656  }
 0x36a   :  { %v3376_v29 = vrot.slane %v3225_v60, 2 }
 0x36d   :  { %3314 = vrot.lane.b32.xlu1 %v3278_v25, %s4456_s17  ;;  %3686 = vrot.lane.b32.xlu0 %v3356_v17, %s4466_s23 }
 0x371   :  { %3554 = vrot.lane.b32.xlu1 %v3362_v62, %s4467_s2  ;;  %3500 = vrot.lane.b32.xlu0 %v3275_v12, %s4463_s14 }
 0x375   :  { %3401 = vrot.lane.b32.xlu1 %v3365_v4, %s4461_s10  ;;  %3688 = vrot.lane.b32.xlu0 %v3359_v20, %s4466_s23  ;;  %v3224_v20 = vsel %vm2077_vm0, %v6312_v3, 0.0  ;;  %v3369_v3 = vrot.slane %v6310_v57, 2 }
 0x376   :  { %v3286_v52 = vrot.slane %v3224_v20, 1  ;;  %v3373_v11 = vrot.slane %v3224_v20, 2 }
 0x377   :  { %v6494_v16 = vpop.permute.xlu1 %3436  ;;  %v6496_v51 = vpop.permute.xlu0 %3434  ;;  %v3371_v23 = vsel %vm7255_vm11, %v3369_v3, %v3370_v61  ;;  %vm3806_vm11 = vcmask 392192  }
 0x379   :  { %3647 = vrot.lane.b32.xlu1 %v3278_v25, %s4465_s18  ;;  %3399 = vrot.lane.b32.xlu0 %v3362_v62, %s4461_s10 }
 0x37b   :  { %v6500_v44 = vpop.permute.xlu1 %3440  ;;  %v6502_v14 = vpop.permute.xlu0 %3438 }
 0x37d   :  { %3504 = vrot.lane.b32.xlu1 %v6303_v28, %s4463_s14  ;;  %3645 = vrot.lane.b32.xlu0 %v3275_v12, %s4465_s18  ;;  %v3285_v12 = vrot.slane %v6322_v5, 1 }
 0x37f   :  { %v6507_v26 = vpop.permute.xlu1 %3596  ;;  %v6509_v21 = vpop.permute.xlu0 %3592 }
 0x381   :  { %3692 = vrot.lane.b32.xlu1 %v3365_v4, %s4466_s23  ;;  %3502 = vrot.lane.b32.xlu0 %v3278_v25, %s4463_s14  ;;  %v3287_v25 = vsel %vm7254_vm10, %v3285_v12, %v3286_v52  ;;  %v3291_v12 = vrot.slane %v6350_v33, 1  ;;  %v3292_v52 = vrot.slane %v3226_v43, 1  ;;  %vm7269_vm10 = vmmov %vm7247_vm3 }
 0x383   :  { %v6515_v39 = vpop.permute.xlu1 %3442  ;;  %v6517_v54 = vpop.permute.xlu0 %3594 }
 0x385   :  { %3558 = vrot.lane.b32.xlu1 %v6306_v47, %s4467_s2  ;;  %3690 = vrot.lane.b32.xlu0 %v3362_v62, %s4466_s23 }
 0x387   :  { %v6526_v34 = vpop.permute.xlu1 %3444  ;;  %v6528_v17 = vpop.permute.xlu0 %3598 }
 0x389   :  { %3403 = vrot.lane.b32.xlu1 %v3368_v27, %s4461_s10  ;;  %3556 = vrot.lane.b32.xlu0 %v3365_v4, %s4467_s2 }
 0x38b   :  { %v6534_v37 = vpop.permute.xlu1 %3602  ;;  %v6536_v38 = vpop.permute.xlu0 %3600 }
 0x38d   :  { %3318 = vrot.lane.b32.xlu1 %v3284_v8, %s4456_s17  ;;  %3316 = vrot.lane.b32.xlu0 %v3281_v42, %s4456_s17 }
 0x38f   :  { %v6544_v15 = vpop.permute.xlu1 %3448  ;;  %v6546_v63 = vpop.permute.xlu0 %3446 }
 0x391   :  { %3560 = vrot.lane.b32.xlu1 %v3368_v27, %s4467_s2  ;;  %3649 = vrot.lane.b32.xlu0 %v6303_v28, %s4465_s18  ;;  %v3372_v28 = vrot.slane %v6322_v5, 2  ;;  %v3288_v27 = vrot.slane %v6336_v48, 1 }
 0x393   :  { %v6552_v30 = vpop.permute.xlu1 %3452  ;;  %v6554_v55 = vpop.permute.xlu0 %3604  ;;  %v3374_v50 = vsel %vm7257_vm13, %v3372_v28, %v3373_v11  ;;  %v3375_v28 = vrot.slane %v6336_v48, 2  ;;  %vm3840_vm13 = vcmask 523264  }
 0x395   :  { %3320 = vrot.lane.b32.xlu1 %v3287_v25, %s4456_s17  ;;  %3506 = vrot.lane.b32.xlu0 %v3281_v42, %s4463_s14 }
 0x397   :  { %v6560_v13 = vpop.permute.xlu1 %3610  ;;  %v6562_v62 = vpop.permute.xlu0 %3450 }
 0x399   :  { %3562 = vrot.lane.b32.xlu1 %v3371_v23, %s4467_s2  ;;  %3694 = vrot.lane.b32.xlu0 %v6306_v47, %s4466_s23  ;;  %v3289_v47 = vrot.slane %v3225_v60, 1 }
 0x39b   :  { %v6569_v4 = vpop.permute.xlu1 %3456  ;;  %v6571_v35 = vpop.permute.xlu0 %3608  ;;  %v3290_v40 = vsel %vm7262_vm5, %v3288_v27, %v3289_v47  ;;  %v3377_v47 = vsel %vm7247_vm3, %v3375_v28, %v3376_v29  ;;  %v3227_v28 = vsel %vm2077_vm0, %v6352_v59, 0.0  ;;  %vm3857_vm5 = vcmask 588800  }
 0x39c   :  { %7256 = vst [vmem:[#allocation6_spill] sm:$0xff] %v6569_v4  ;;  %v3382_v57 = vrot.slane %v3227_v28, 2 }
 0x39d   :  { %3407 = vrot.lane.b32.xlu1 %v3374_v50, %s4461_s10  ;;  %3508 = vrot.lane.b32.xlu0 %v3284_v8, %s4463_s14 }
 0x39f   :  { %v6578_v1 = vpop.permute.xlu1 %3614  ;;  %v6580_v53 = vpop.permute.xlu0 %3454 }
 0x3a0   :  { %7258 = vst [vmem:[#allocation7_spill] sm:$0xff] %v6578_v1  ;;  %7259 = vst [vmem:[#allocation8_spill] sm:$0xff] %v6580_v53  ;;  %v3381_v53 = vrot.slane %v6367_v2, 2 }
 0x3a1   :  { %3655 = vrot.lane.b32.xlu1 %v3287_v25, %s4465_s18  ;;  %3405 = vrot.lane.b32.xlu0 %v3371_v23, %s4461_s10 }
 0x3a3   :  { %v6585_v18 = vpop.permute.xlu1 %3460  ;;  %v6587_v36 = vpop.permute.xlu0 %3612 }
 0x3a4   :  { %7260 = vst [vmem:[#allocation9_spill] sm:$0xff] %v6585_v18  ;;  %7261 = vst [vmem:[#allocation10_spill] sm:$0xff] %v6587_v36  ;;  %v3379_v18 = vrot.slane %v3226_v43, 2 }
 0x3a5   :  { %3322 = vrot.lane.b32.xlu1 %v3290_v40, %s4456_s17  ;;  %3653 = vrot.lane.b32.xlu0 %v3284_v8, %s4465_s18  ;;  %v3293_v8 = vsel %vm7264_vm7, %v3291_v12, %v3292_v52  ;;  %vm7270_vm7 = vmmov %vm7247_vm3 }
 0x3a6   :  { %vm7271_vm3 = vmmov %vm7266_vm15 }
 0x3a7   :  { %v6594_v42 = vpop.permute.xlu1 %3389  ;;  %v6596_v20 = vpop.permute.xlu0 %3458 }
 0x3a8   :  { %7263 = vst [vmem:[#allocation11_spill] sm:$0xff] %v6596_v20  ;;  %v3294_v20 = vrot.slane %v6367_v2, 1 }
 0x3a9   :  { %3564 = vrot.lane.b32.xlu1 %v3374_v50, %s4467_s2  ;;  %3510 = vrot.lane.b32.xlu0 %v3287_v25, %s4463_s14  ;;  %v3378_v25 = vrot.slane %v6350_v33, 2  ;;  %v3295_v33 = vrot.slane %v3227_v28, 1 }
 0x3ab   :  { %v6601_v3 = vpop.permute.xlu1 %3306  ;;  %v6603_v61 = vpop.permute.xlu0 %3302  ;;  %v3380_v52 = vsel %vm7265_vm14, %v3378_v25, %v3379_v18  ;;  %v6635_v25 = vsel %vm7232_vm1, %v3294_v20, %v3295_v33  ;;  %v3727_v33 = vsel %vm2634_vm12, %v4524_v10, %v6460_v58  ;;  %vm7272_vm14 = vmmov %vm7268_vm2 }
 0x3ac   :  { %vm7273_vm1 = vmmov %vm7271_vm3 }
 0x3ad   :  { %3324 = vrot.lane.b32.xlu1 %v3293_v8, %s4456_s17  ;;  %3698 = vrot.lane.b32.xlu0 %v3371_v23, %s4466_s23  ;;  %v3137_v23 = vmax.f32 %v6179_v45, 0.0 }
 0x3af   :  { %v6609_v11 = vpop.permute.xlu1 %3393  ;;  %v6611_v27 = vpop.permute.xlu0 %3304  ;;  %v3180_v48 = vrot.slane %v3137_v23, 7 }
 0x3b1   :  { %3566 = vrot.lane.b32.xlu1 %v3377_v47, %s4467_s2  ;;  %3512 = vrot.lane.b32.xlu0 %v3290_v40, %s4463_s14  ;;  %v3228_v59 = vsel %vm2077_vm0, %v3180_v48, 0.0 }
 0x3b2   :  { %v3298_v36 = vrot.slane %v3228_v59, 1  ;;  %v3385_v28 = vrot.slane %v3228_v59, 2 }
 0x3b3   :  { %v6617_v12 = vpop.permute.xlu1 %3492  ;;  %v6619_v60 = vpop.permute.xlu0 %3391 }
 0x3b5   :  { %3411 = vrot.lane.b32.xlu1 %v3380_v52, %s4461_s10  ;;  %3700 = vrot.lane.b32.xlu0 %v3374_v50, %s4466_s23  ;;  %v6638_v50 = vsel %vm2077_vm0, 0.0, %v3180_v48  ;;  %v6658_v48 = vsel %vm7266_vm15, %v3727_v33, %v6470_v32  ;;  %vm7274_vm15 = vmmov %vm7268_vm2 }
 0x3b6   :  { %v3297_v4 = vrot.slane %v6638_v50, 1  ;;  %v3757_v10 = vsel %vm2701_vm8, %v6658_v48, %v6496_v51  ;;  %v3384_v51 = vrot.slane %v6638_v50, 2 }
 0x3b7   :  { %v6627_v43 = vpop.permute.xlu1 %3546  ;;  %v3491_v29 = vpop.permute.xlu0 %3490 }
 0x3b8   :  { %v3773_v58 = vsel %vm7268_vm2, %v3757_v10, %v3491_v29  ;;  %v3728_v29 = vsel %vm2634_vm12, %v6204_v56, %v6603_v61  ;;  %v6692_v33 = vsel %vm7270_vm7, %v3384_v51, %v3385_v28  ;;  %v3138_v10 = vmax.f32 %v6362_v46, 0.0 }
 0x3b9   :  { %3659 = vrot.lane.b32.xlu1 %v3293_v8, %s4465_s18  ;;  %3409 = vrot.lane.b32.xlu0 %v3377_v47, %s4461_s10  ;;  %v3743_v56 = vsel %vm7271_vm3, %v3728_v29, %v6594_v42  ;;  %v3729_v42 = vsel %vm2634_vm12, %v6200_v0, %v6611_v27  ;;  %vm7279_vm3 = vmmov %vm7273_vm1 }
 0x3bb   :  { %v6632_v18 = vpop.permute.xlu1 %3308  ;;  %v3545_v45 = vpop.permute.xlu0 %3544 }
 0x3bc   :  { %v3790_v32 = vsel %vm3789_vm6, %v3773_v58, %v3545_v45  ;;  %v3758_v58 = vsel %vm2701_vm8, %v3743_v56, %v6494_v16  ;;  %v3744_v16 = vsel %vm7273_vm1, %v3729_v42, %v6619_v60 }
 0x3bd   :  { %3326 = vrot.lane.b32.xlu1 %v6635_v25, %s4456_s17  ;;  %3657 = vrot.lane.b32.xlu0 %v3290_v40, %s4465_s18  ;;  %v6661_v40 = vsel %vm7267_vm4, %v3297_v4, %v3298_v36  ;;  %v6677_v36 = vsel %vm7269_vm10, %v3381_v53, %v3382_v57  ;;  %v3774_v46 = vsel %vm7272_vm14, %v3758_v58, %v6617_v12  ;;  %vm7277_vm10 = vmmov %vm7270_vm7 }
 0x3be   :  { %v3759_v27 = vsel %vm2701_vm8, %v3744_v16, %v6502_v14  ;;  %vm7278_vm7 = vmmov %vm7273_vm1 }
 0x3bf   :  { %v6644_v23 = vpop.permute.xlu1 %3548  ;;  %v6646_v1 = vpop.permute.xlu0 %3494  ;;  %vm7280_vm14 = vmmov %vm7268_vm2 }
 0x3c0   :  { %v3775_v29 = vsel %vm7274_vm15, %v3759_v27, %v6646_v1  ;;  %v3730_v1 = vsel %vm2634_vm12, %v6223_v31, %v6601_v3  ;;  %vm7282_vm15 = vmmov %vm7279_vm3 }
 0x3c1   :  { %3568 = vrot.lane.b32.xlu1 %v3380_v52, %s4467_s2  ;;  %3514 = vrot.lane.b32.xlu0 %v3293_v8, %s4463_s14  ;;  %v3792_v14 = vsel %vm3789_vm6, %v3775_v29, %v6644_v23 }
 0x3c3   :  { %v3638_v20 = vpop.permute.xlu1 %3637  ;;  %v6654_v5 = vpop.permute.xlu0 %3496 }
 0x3c5   :  { %3328 = vrot.lane.b32.xlu1 %v6661_v40, %s4456_s17  ;;  %3702 = vrot.lane.b32.xlu0 %v3377_v47, %s4466_s23  ;;  %v3807_v47 = vsel %vm3806_vm11, %v3790_v32, %v6509_v21 }
 0x3c6   :  { %v3824_v57 = vsel %vm3823_vm9, %v3807_v47, %v3638_v20  ;;  %v3181_v20 = vrot.slane %v3138_v10, 7 }
 0x3c7   :  { %v6672_v8 = vpop.permute.xlu1 %3395  ;;  %v6674_v4 = vpop.permute.xlu0 %3310 }
 0x3c8   :  { %v3213_v28 = vsel %vm2077_vm0, 0.0, %v3181_v20  ;;  %v3229_v47 = vsel %vm2077_vm0, %v3181_v20, 0.0  ;;  %vm7275_vm0 = vmmov %vm7267_vm4  ;;  %v3809_v20 = vsel %vm3806_vm11, %v3792_v14, %v6507_v26 }
 0x3c9   :  { %3570 = vrot.lane.b32.xlu1 %v6677_v36, %s4467_s2  ;;  %3516 = vrot.lane.b32.xlu0 %v6635_v25, %s4463_s14  ;;  %vm7276_vm4 = vmmov %vm7273_vm1 }
 0x3ca   :  { %vm7281_vm1 = vmmov %vm7268_vm2 }
 0x3cb   :  { %v3683_v53 = vpop.permute.xlu1 %3682  ;;  %v3551_v45 = vpop.permute.xlu0 %3550 }
 0x3cc   :  { %v3841_v59 = vsel %vm3840_vm13, %v3824_v57, %v3683_v53  ;;  %v3487_v57 = vrot.slane %v3213_v28, 1 }
 0x3cd   :  { %3415 = vrot.lane.b32.xlu1 %v6692_v33, %s4461_s10  ;;  %3704 = vrot.lane.b32.xlu0 %v3380_v52, %s4466_s23  ;;  %v3791_v52 = vsel %vm3789_vm6, %v3774_v46, %v6627_v43 }
 0x3ce   :  { %4394 = vmatprep.mubr.msk.f32.mxu0 %vm3857_vm5, %v3841_v59  ;;  %v3808_v0 = vsel %vm3806_vm11, %v3791_v52, %v6517_v54  ;;  %v3488_v59 = vrot.slane %v3229_v47, 1  ;;  %v3542_v52 = vrot.slane %v3229_v47, 2  ;;  %v3732_v47 = vsel %vm2634_vm12, %v6247_v41, %v6674_v4 }
 0x3cf   :  { %v3642_v21 = vpop.permute.xlu1 %3641  ;;  %v3640_v61 = vpop.permute.xlu0 %3639 }
 0x3d0   :  { %v3825_v12 = vsel %vm3823_vm9, %v3808_v0, %v3640_v61  ;;  %v3489_v56 = vsel %vm7275_vm0, %v3487_v57, %v3488_v59  ;;  %v3745_v61 = vsel %vm7276_vm4, %v3730_v1, %v6609_v11  ;;  %v3826_v23 = vsel %vm3823_vm9, %v3809_v20, %v3642_v21  ;;  %vm7283_vm0 = vmmov %vm7279_vm3 }
 0x3d1   :  { %3618 = vrot.lane.b32.xlu1 %v6638_v50, %s4464_s0  ;;  %3413 = vrot.lane.b32.xlu0 %v6677_v36, %s4461_s10  ;;  %v3760_v31 = vsel %vm2701_vm8, %v3745_v61, %v6500_v44  ;;  %v3541_v21 = vrot.slane %v3213_v28, 2  ;;  %vm7284_vm4 = vmmov %vm7281_vm1 }
 0x3d2   :  { %v3776_v3 = vsel %vm7268_vm2, %v3760_v31, %v6654_v5  ;;  %vm7285_vm2 = vmmov %vm7281_vm1 }
 0x3d3   :  { %v3644_v32 = vpop.permute.xlu1 %3643  ;;  %v3398_v51 = vpop.permute.xlu0 %3397  ;;  %v3793_v26 = vsel %vm3789_vm6, %v3776_v3, %v3551_v45  ;;  %v3543_v45 = vsel %vm7277_vm10, %v3541_v21, %v3542_v52  ;;  %vm7286_vm10 = vmmov %vm7281_vm1 }
 0x3d4   :  { %v3810_v44 = vsel %vm3806_vm11, %v3793_v26, %v6528_v17  ;;  %v3747_v27 = vsel %vm7279_vm3, %v3732_v47, %v3398_v51  ;;  %vm7288_vm3 = vmmov %vm7281_vm1 }
 0x3d5   :  { %3464 = vrot.lane.b32.xlu1 %v3213_v28, %s4459_s28  ;;  %3616 = vrot.lane.b32.xlu0 %v6367_v2, %s4464_s0 }
 0x3d7   :  { %v6726_v43 = vpop.permute.xlu1 %3312  ;;  %v3685_v60 = vpop.permute.xlu0 %3684 }
 0x3d8   :  { %v3842_v53 = vsel %vm3840_vm13, %v3825_v12, %v3685_v60 }
 0x3d9   :  { %3663 = vrot.lane.b32.xlu1 %v6661_v40, %s4465_s18  ;;  %3462 = vrot.lane.b32.xlu0 %v6638_v50, %s4459_s28 }
 0x3da   :  { %4395 = vmatmul.mubr.msk.f32.vlgmr.msra.gmra.mxu0 %vm3857_vm5, %v3842_v53 }
 0x3db   :  { %v3553_v54 = vpop.permute.xlu1 %3552  ;;  %v3499_v10 = vpop.permute.xlu0 %3498 }
 0x3dd   :  { %3520 = vrot.lane.b32.xlu1 %v3489_v56, %s4463_s14  ;;  %3661 = vrot.lane.b32.xlu0 %v6635_v25, %s4465_s18 }
 0x3df   :  { %v3315_v58 = vpop.permute.xlu1 %3314  ;;  %v3687_v46 = vpop.permute.xlu0 %3686 }
 0x3e0   :  { %v3843_v42 = vsel %vm3840_vm13, %v3826_v23, %v3687_v46  ;;  %v3733_v23 = vsel %vm2634_vm12, %v6262_v22, %v6726_v43 }
 0x3e1   :  { %3708 = vrot.lane.b32.xlu1 %v6692_v33, %s4466_s23  ;;  %3518 = vrot.lane.b32.xlu0 %v6661_v40, %s4463_s14  ;;  %v3827_v40 = vsel %vm3823_vm9, %v3810_v44, %v3644_v32 }
 0x3e2   :  { %4397 = vmatprep.mubr.msk.f32.mxu1 %vm3857_vm5, %v3843_v42 }
 0x3e3   :  { %v3555_v11 = vpop.permute.xlu1 %3554  ;;  %v3501_v25 = vpop.permute.xlu0 %3500 }
 0x3e5   :  { %3620 = vrot.lane.b32.xlu1 %v3213_v28, %s4464_s0  ;;  %3706 = vrot.lane.b32.xlu0 %v6677_v36, %s4466_s23  ;;  %v3731_v36 = vsel %vm2634_vm12, %v6219_v9, %v6632_v18  ;;  %v3762_v18 = vsel %vm2701_vm8, %v3747_v27, %v6526_v34 }
 0x3e6   :  { %v3746_v32 = vsel %vm7278_vm7, %v3731_v36, %v6672_v8  ;;  %v3778_v8 = vsel %vm7281_vm1, %v3762_v18, %v3501_v25  ;;  %vm7287_vm7 = vmmov %vm7283_vm0 }
 0x3e7   :  { %v3402_v16 = vpop.permute.xlu1 %3401  ;;  %v3689_v5 = vpop.permute.xlu0 %3688  ;;  %v3795_v29 = vsel %vm3789_vm6, %v3778_v8, %v3555_v11 }
 0x3e8   :  { %v3844_v0 = vsel %vm3840_vm13, %v3827_v40, %v3689_v5  ;;  %v3812_v57 = vsel %vm3806_vm11, %v3795_v29, %v6534_v37 }
 0x3e9   :  { %3710 = vrot.lane.b32.xlu1 %v3543_v45, %s4466_s23  ;;  %3572 = vrot.lane.b32.xlu0 %v6692_v33, %s4467_s2  ;;  %v3761_v33 = vsel %vm2701_vm8, %v3746_v32, %v6515_v39 }
 0x3ea   :  { %4398 = vmatmul.mubr.msk.f32.vlgmr.msra.gmra.mxu1 %vm3857_vm5, %v3844_v0  ;;  %v3777_v9 = vsel %vm7280_vm14, %v3761_v33, %v3499_v10  ;;  %vm7290_vm14 = vmmov %vm7283_vm0 }
 0x3eb   :  { %v3648_v17 = vpop.permute.xlu1 %3647  ;;  %v3400_v28 = vpop.permute.xlu0 %3399  ;;  %v3794_v41 = vsel %vm3789_vm6, %v3777_v9, %v3553_v54 }
 0x3ec   :  { %v3811_v39 = vsel %vm3806_vm11, %v3794_v41, %v6536_v38  ;;  %v3829_v14 = vsel %vm3823_vm9, %v3812_v57, %v3648_v17  ;;  %v3734_v38 = vsel %vm2634_vm12, %v6278_v19, %v3315_v58  ;;  %v3748_v46 = vsel %vm7283_vm0, %v3733_v23, %v3400_v28  ;;  %v7292_v23 = vld [vmem:[#allocation3_spill] sm:$0xff] }
 0x3ed   :  { %3574 = vrot.lane.b32.xlu0 %v3543_v45, %s4467_s2  ;;  %v3749_v37 = vsel %vm7282_vm15, %v3734_v38, %v3402_v16  ;;  %v3763_v19 = vsel %vm2701_vm8, %v3748_v46, %v6546_v63  ;;  %v3765_v17 = vsel %vm2701_vm8, %v6658_v48, %v6562_v62  ;;  %vm7293_vm15 = vmmov %vm7283_vm0 }
 0x3ee   :  { %v3764_v42 = vsel %vm2701_vm8, %v3749_v37, %v6544_v15  ;;  %vm7296_vm0 = vmmov %vm7281_vm1 }
 0x3ef   :  { %v3505_v12 = vpop.permute.xlu1 %3504  ;;  %v3646_v60 = vpop.permute.xlu0 %3645 }
 0x3f0   :  { %v3828_v53 = vsel %vm3823_vm9, %v3811_v39, %v3646_v60  ;;  %v3780_v31 = vsel %vm7284_vm4, %v3764_v42, %v3505_v12  ;;  %vm7300_vm4 = vmmov %vm7287_vm7 }
 0x3f1   :  { %3665 = vrot.lane.b32.xlu0 %v3489_v56, %s4465_s18 }
 0x3f3   :  { %v3693_v4 = vpop.permute.xlu1 %3692  ;;  %v3503_v51 = vpop.permute.xlu0 %3502 }
 0x3f4   :  { %v3846_v54 = vsel %vm3840_vm13, %v3829_v14, %v3693_v4  ;;  %v3779_v58 = vsel %vm7285_vm2, %v3763_v19, %v3503_v51  ;;  %v7295_v19 = vld [vmem:[#allocation6_spill] sm:$0xff]  ;;  %vm7301_vm2 = vmmov %vm7300_vm4 }
 0x3f7   :  { %v3559_v59 = vpop.permute.xlu1 %3558  ;;  %v3691_v34 = vpop.permute.xlu0 %3690 }
 0x3f8   :  { %v3845_v10 = vsel %vm3840_vm13, %v3828_v53, %v3691_v34  ;;  %v3797_v11 = vsel %vm3789_vm6, %v3780_v31, %v3559_v59  ;;  %v7289_v34 = vld [vmem:[#allocation2_spill] sm:$0xff] }
 0x3f9   :  { %4400 = vmatprep.mubr.msk.f32.mxu1 %vm3857_vm5, %v3845_v10  ;;  %v3814_v25 = vsel %vm3806_vm11, %v3797_v11, %v6477_v6 }
 0x3fa   :  { %4401 = vmatmul.mubr.msk.f32.gmra.mxu1 %vm3857_vm5, %v3846_v54  ;;  %v3831_v52 = vsel %vm3823_vm9, %v3814_v25, %v6487_v49 }
 0x3fb   :  { %v3404_v56 = vpop.permute.xlu1 %3403  ;;  %v3557_v1 = vpop.permute.xlu0 %3556  ;;  %v3848_v5 = vsel %vm3840_vm13, %v3831_v52, %v6489_v7 }
 0x3fc   :  { %v3796_v22 = vsel %vm3789_vm6, %v3779_v58, %v3557_v1  ;;  %v7291_v1 = vld [vmem:[#allocation8_spill] sm:$0xff] }
 0x3fd   :  { %v3813_v15 = vsel %vm3806_vm11, %v3796_v22, %v6554_v55 }
 0x3ff   :  { %v3319_v61 = vpop.permute.xlu1 %3318  ;;  %v3317_v20 = vpop.permute.xlu0 %3316 }
 0x400   :  { %v3735_v28 = vsel %vm2634_vm12, %v6326_v24, %v3317_v20  ;;  %v3736_v14 = vsel %vm2634_vm12, %v7289_v34, %v3319_v61 }
 0x401   :  { %v3750_v33 = vsel %vm7287_vm7, %v3735_v28, %v3404_v56  ;;  %vm7305_vm7 = vmmov %vm7296_vm0 }
 0x402   :  { %v3766_v18 = vsel %vm2701_vm8, %v3750_v33, %v6552_v30 }
 0x403   :  { %v3561_v3 = vpop.permute.xlu1 %3560  ;;  %v3650_v26 = vpop.permute.xlu0 %3649 }
 0x404   :  { %v3830_v44 = vsel %vm3823_vm9, %v3813_v15, %v3650_v26  ;;  %v7294_v26 = vld [vmem:[#allocation10_spill] sm:$0xff] }
 0x407   :  { %v3321_v43 = vpop.permute.xlu1 %3320  ;;  %v3507_v21 = vpop.permute.xlu0 %3506 }
 0x408   :  { %v3781_v27 = vsel %vm7286_vm10, %v3765_v17, %v3507_v21  ;;  %v3737_v46 = vsel %vm2634_vm12, %v7292_v23, %v3321_v43  ;;  %vm7303_vm10 = vmmov %vm7296_vm0 }
 0x409   :  { %v3798_v12 = vsel %vm3789_vm6, %v3781_v27, %v3561_v3 }
 0x40a   :  { %v3815_v62 = vsel %vm3806_vm11, %v3798_v12, %v6571_v35  ;;  %v7298_v12 = vld [vmem:[#allocation4_spill] sm:$0xff] }
 0x40b   :  { %v3563_v40 = vpop.permute.xlu1 %3562  ;;  %v3695_v16 = vpop.permute.xlu0 %3694 }
 0x40c   :  { %v3847_v63 = vsel %vm3840_vm13, %v3830_v44, %v3695_v16  ;;  %v7297_v16 = vld [vmem:[#allocation7_spill] sm:$0xff] }
 0x40d   :  { %4403 = vmatprep.mubr.msk.f32.mxu1 %vm3857_vm5, %v3847_v63 }
 0x40e   :  { %4404 = vmatmul.mubr.msk.f32.gmra.mxu1 %vm3857_vm5, %v3848_v5 }
 0x40f   :  { %v3408_v0 = vpop.permute.xlu1 %3407  ;;  %v3509_v45 = vpop.permute.xlu0 %3508 }
 0x410   :  { %v3782_v8 = vsel %vm7288_vm3, %v3766_v18, %v3509_v45  ;;  %v3752_v61 = vsel %vm7293_vm15, %v3737_v46, %v3408_v0  ;;  %vm7306_vm3 = vmmov %vm7301_vm2 }
 0x411   :  { %v3799_v51 = vsel %vm3789_vm6, %v3782_v8, %v3563_v40  ;;  %v3768_v58 = vsel %vm2701_vm8, %v3752_v61, %v7295_v19  ;;  %vm7309_vm15 = vmmov %vm7296_vm0 }
 0x412   :  { %v3816_v30 = vsel %vm3806_vm11, %v3799_v51, %v6560_v13 }
 0x413   :  { %v3656_v36 = vpop.permute.xlu1 %3655  ;;  %v3406_v55 = vpop.permute.xlu0 %3405 }
 0x414   :  { %v3833_v57 = vsel %vm3823_vm9, %v3816_v30, %v3656_v36  ;;  %v3751_v56 = vsel %vm7290_vm14, %v3736_v14, %v3406_v55  ;;  %vm7307_vm14 = vmmov %vm7301_vm2 }
 0x415   :  { %v3767_v38 = vsel %vm2701_vm8, %v3751_v56, %v7291_v1 }
 0x417   :  { %v3323_v32 = vpop.permute.xlu1 %3322  ;;  %v3654_v47 = vpop.permute.xlu0 %3653 }
 0x418   :  { %v3832_v24 = vsel %vm3823_vm9, %v3815_v62, %v3654_v47 }
 0x41b   :  { %v3565_v60 = vpop.permute.xlu1 %3564  ;;  %v3511_v9 = vpop.permute.xlu0 %3510 }
 0x41c   :  { %v3783_v20 = vsel %vm7281_vm1, %v3767_v38, %v3511_v9  ;;  %v7299_v9 = vld [vmem:[#allocation5_spill] sm:$0xff]  ;;  %vm7308_vm1 = vmmov %vm7296_vm0 }
 0x41d   :  { %v3800_v42 = vsel %vm3789_vm6, %v3783_v20, %v3565_v60  ;;  %v3738_v60 = vsel %vm2634_vm12, %v7298_v12, %v3323_v32 }
 0x41e   :  { %v3817_v11 = vsel %vm3806_vm11, %v3800_v42, %v7294_v26 }
 0x41f   :  { %v3325_v48 = vpop.permute.xlu1 %3324  ;;  %v3699_v41 = vpop.permute.xlu0 %3698 }
 0x420   :  { %v3849_v4 = vsel %vm3840_vm13, %v3832_v24, %v3699_v41  ;;  %v3739_v18 = vsel %vm2634_vm12, %v7299_v9, %v3325_v48 }
 0x421   :  { %4406 = vmatprep.mubr.msk.f32.mxu1 %vm3857_vm5, %v3849_v4  ;;  %v7302_v4 = vld [vmem:[#allocation11_spill] sm:$0xff] }
 0x423   :  { %v3567_v29 = vpop.permute.xlu1 %3566  ;;  %v3513_v39 = vpop.permute.xlu0 %3512 }
 0x424   :  { %v3784_v15 = vsel %vm7296_vm0, %v3768_v58, %v3513_v39  ;;  %v7304_v39 = vld [vmem:[#allocation9_spill] sm:$0xff] }
 0x425   :  { %v3801_v52 = vsel %vm3789_vm6, %v3784_v15, %v3567_v29 }
 0x426   :  { %v3818_v63 = vsel %vm3806_vm11, %v3801_v52, %v7297_v16 }
 0x427   :  { %v3412_v53 = vpop.permute.xlu1 %3411  ;;  %v3701_v59 = vpop.permute.xlu0 %3700 }
 0x428   :  { %v3850_v35 = vsel %vm3840_vm13, %v3833_v57, %v3701_v59  ;;  %v3754_v62 = vsel %vm7301_vm2, %v3739_v18, %v3412_v53 }
 0x429   :  { %4407 = vmatmul.mubr.msk.f32.gmra.mxu1 %vm3857_vm5, %v3850_v35  ;;  %v3770_v30 = vsel %vm2701_vm8, %v3754_v62, %v7304_v39 }
 0x42b   :  { %v3660_v10 = vpop.permute.xlu1 %3659  ;;  %v3410_v54 = vpop.permute.xlu0 %3409 }
 0x42c   :  { %v3835_v5 = vsel %vm3823_vm9, %v3818_v63, %v3660_v10  ;;  %v3753_v8 = vsel %vm7300_vm4, %v3738_v60, %v3410_v54 }
 0x42d   :  { %v3769_v51 = vsel %vm2701_vm8, %v3753_v8, %v7302_v4 }
 0x42f   :  { %v3327_v37 = vpop.permute.xlu1 %3326  ;;  %v3658_v13 = vpop.permute.xlu0 %3657 }
 0x430   :  { %v3834_v25 = vsel %vm3823_vm9, %v3817_v11, %v3658_v13  ;;  %v3740_v13 = vsel %vm2634_vm12, %v6367_v2, %v3327_v37 }
 0x433   :  { %v3569_v31 = vpop.permute.xlu1 %3568  ;;  %v3515_v3 = vpop.permute.xlu0 %3514 }
 0x434   :  { %v3785_v29 = vsel %vm7303_vm10, %v3769_v51, %v3515_v3 }
 0x435   :  { %v3802_v59 = vsel %vm3789_vm6, %v3785_v29, %v3569_v31 }
 0x437   :  { %v3329_v22 = vpop.permute.xlu1 %3328  ;;  %v3703_v21 = vpop.permute.xlu0 %3702 }
 0x438   :  { %v3851_v43 = vsel %vm3840_vm13, %v3834_v25, %v3703_v21  ;;  %v3741_v20 = vsel %vm2634_vm12, %v6638_v50, %v3329_v22 }
 0x439   :  { %4409 = vmatprep.mubr.msk.f32.mxu1 %vm3857_vm5, %v3851_v43 }
 0x43b   :  { %v3571_v44 = vpop.permute.xlu1 %3570  ;;  %v3517_v40 = vpop.permute.xlu0 %3516 }
 0x43c   :  { %v3786_v57 = vsel %vm7305_vm7, %v3770_v30, %v3517_v40 }
 0x43d   :  { %v3803_v48 = vsel %vm3789_vm6, %v3786_v57, %v3571_v44 }
 0x43f   :  { %v3416_v0 = vpop.permute.xlu1 %3415  ;;  %v3705_v45 = vpop.permute.xlu0 %3704 }
 0x440   :  { %v3852_v36 = vsel %vm3840_vm13, %v3835_v5, %v3705_v45  ;;  %v3756_v23 = vsel %vm7306_vm3, %v3741_v20, %v3416_v0 }
 0x441   :  { %4410 = vmatmul.mubr.msk.f32.gmra.mxu1 %vm3857_vm5, %v3852_v36 }
 0x443   :  { %v3619_v55 = vpop.permute.xlu1 %3618  ;;  %v3414_v17 = vpop.permute.xlu0 %3413 }
 0x444   :  { %v3820_v34 = vsel %vm3806_vm11, %v3803_v48, %v3619_v55  ;;  %v3755_v46 = vsel %vm7307_vm14, %v3740_v13, %v3414_v17 }
 0x447   :  { %v3465_v28 = vpop.permute.xlu1 %3464  ;;  %v3617_v47 = vpop.permute.xlu0 %3616 }
 0x448   :  { %v3819_v35 = vsel %vm3806_vm11, %v3802_v59, %v3617_v47  ;;  %v3772_v42 = vsel %vm2701_vm8, %v3756_v23, %v3465_v28 }
 0x44b   :  { %v3664_v27 = vpop.permute.xlu1 %3663  ;;  %v3463_v33 = vpop.permute.xlu0 %3462 }
 0x44c   :  { %v3837_v54 = vsel %vm3823_vm9, %v3820_v34, %v3664_v27  ;;  %v3771_v31 = vsel %vm2701_vm8, %v3755_v46, %v3463_v33 }
 0x44f   :  { %v3662_v24 = vpop.permute.xlu0 %3661  ;;  %v3521_v41 = vpop.permute.xlu1 %3520 }
 0x450   :  { %v3836_v14 = vsel %vm3823_vm9, %v3819_v35, %v3662_v24  ;;  %v3788_v61 = vsel %vm7308_vm1, %v3772_v42, %v3521_v41 }
 0x453   :  { %v3519_v32 = vpop.permute.xlu0 %3518  ;;  %v3709_v53 = vpop.permute.xlu1 %3708 }
 0x454   :  { %v3854_v1 = vsel %vm3840_vm13, %v3837_v54, %v3709_v53  ;;  %v3787_v26 = vsel %vm7309_vm15, %v3771_v31, %v3519_v32 }
 0x457   :  { %v3707_v10 = vpop.permute.xlu0 %3706  ;;  %v3621_v3 = vpop.permute.xlu1 %3620 }
 0x458   :  { %v3853_v56 = vsel %vm3840_vm13, %v3836_v14, %v3707_v10 }
 0x459   :  { %4412 = vmatprep.mubr.msk.f32.mxu1 %vm3857_vm5, %v3853_v56 }
 0x45a   :  { %4413 = vmatmul.mubr.msk.f32.gmra.mxu1 %vm3857_vm5, %v3854_v1 }
 0x45b   :  { %v3573_v38 = vpop.permute.xlu0 %3572  ;;  %v3711_v22 = vpop.permute.xlu1 %3710 }
 0x45c   :  { %v3804_v19 = vsel %vm3789_vm6, %v3787_v26, %v3573_v38 }
 0x45d   :  { %v3821_v37 = vsel %vm3806_vm11, %v3804_v19, %v3621_v3 }
 0x45f   :  { %v3575_v11 = vpop.permute.xlu0 %3574 }
 0x460   :  { %v3805_v2 = vsel %vm3789_vm6, %v3788_v61, %v3575_v11 }
 0x461   :  { %v3822_v50 = vsel %vm3806_vm11, %v3805_v2, %v6477_v6 }
 0x462   :  { %v3839_v25 = vsel %vm3823_vm9, %v3822_v50, %v6487_v49 }
 0x463   :  { %v3666_v58 = vpop.permute.xlu0 %3665  ;;  %v3856_v43 = vsel %vm3840_vm13, %v3839_v25, %v6489_v7 }
 0x464   :  { %v3838_v21 = vsel %vm3823_vm9, %v3821_v37, %v3666_v58 }
 0x465   :  { %v3855_v15 = vsel %vm3840_vm13, %v3838_v21, %v3711_v22 }
 0x466   :  { %4415 = vmatprep.mubr.msk.f32.mxu1 %vm3857_vm5, %v3855_v15 }
 0x467   :  { %4416 = vmatmul.mubr.msk.f32.gmra.mxu1 %vm3857_vm5, %v3856_v43 }
 0x49a   :  { %v6920_v52 = vpop.f32.mrf.mxu0 }
 0x49b   :  { %v4090_v63 = vmul.f32 %v6920_v52, %v6920_v52  ;;  %v4052_v0 = vsel %vm2634_vm12, %v6920_v52, 0.0 }
 0x49c   :  { %v6924_v44 = vpop.f32.mrf.mxu0 }
 0x49d   :  { %v4089_v49 = vmul.f32 %v6924_v44, %v6924_v44  ;;  %v4051_v7 = vsel %vm2634_vm12, %v6924_v44, 0.0  ;;  %v4106_v28 = vsel %vm2634_vm12, %v4090_v63, 0.0 }
 0x49e   :  { %v4053_v55 = vadd.f32 %v4052_v0, %v4051_v7 }
 0x49f   :  { %v4105_v45 = vsel %vm2634_vm12, %v4089_v49, 0.0 }
 0x4a0   :  { %v4107_v27 = vadd.f32 %v4106_v28, %v4105_v45 }
 0x4aa   :  { %v6922_v6 = vpop.f32.mrf.mxu1 }
 0x4ab   :  { %v4092_v60 = vmul.f32 %v6922_v6, %v6922_v6  ;;  %v4056_v8 = vsel %vm2634_vm12, %v6922_v6, 0.0 }
 0x4ac   :  { %v6926_v40 = vpop.f32.mrf.mxu1 }
 0x4ad   :  { %v4091_v5 = vmul.f32 %v6926_v40, %v6926_v40  ;;  %v4054_v36 = vsel %vm2634_vm12, %v6926_v40, 0.0  ;;  %v4110_v4 = vsel %vm2634_vm12, %v4092_v60, 0.0 }
 0x4ae   :  { %v4055_v33 = vadd.f32 %v4054_v36, %v4053_v55 }
 0x4af   :  { %v4108_v47 = vsel %vm2634_vm12, %v4091_v5, 0.0 }
 0x4b0   :  { %v4109_v18 = vadd.f32 %v4108_v47, %v4107_v27  ;;  %v4057_v24 = vadd.f32 %v4056_v8, %v4055_v33 }
 0x4b2   :  { %v4111_v39 = vadd.f32 %v4110_v4, %v4109_v18 }
 0x4ba   :  { %v6930_v16 = vpop.f32.mrf.mxu1 }
 0x4bb   :  { %v4094_v57 = vmul.f32 %v6930_v16, %v6930_v16  ;;  %v4060_v48 = vsel %vm2634_vm12, %v6930_v16, 0.0 }
 0x4bc   :  { %v6943_v17 = vpop.f32.mrf.mxu1 }
 0x4bd   :  { %v4093_v9 = vmul.f32 %v6943_v17, %v6943_v17  ;;  %v4058_v62 = vsel %vm2634_vm12, %v6943_v17, 0.0  ;;  %v4114_v14 = vsel %vm2634_vm12, %v4094_v57, 0.0 }
 0x4be   :  { %v4059_v29 = vadd.f32 %v4058_v62, %v4057_v24 }
 0x4bf   :  { %v4112_v51 = vsel %vm2634_vm12, %v4093_v9, 0.0 }
 0x4c0   :  { %v4113_v59 = vadd.f32 %v4112_v51, %v4111_v39  ;;  %v4061_v53 = vadd.f32 %v4060_v48, %v4059_v29 }
 0x4c2   :  { %v4115_v56 = vadd.f32 %v4114_v14, %v4113_v59 }
 0x4ce   :  { %v6947_v12 = vpop.f32.mrf.mxu1 }
 0x4cf   :  { %v4096_v38 = vmul.f32 %v6947_v12, %v6947_v12  ;;  %v4064_v23 = vsel %vm2634_vm12, %v6947_v12, 0.0 }
 0x4d0   :  { %v6957_v41 = vpop.f32.mrf.mxu1 }
 0x4d1   :  { %v4095_v32 = vmul.f32 %v6957_v41, %v6957_v41  ;;  %v4062_v35 = vsel %vm2634_vm12, %v6957_v41, 0.0  ;;  %v4118_v3 = vsel %vm2634_vm12, %v4096_v38, 0.0 }
 0x4d2   :  { %v4063_v54 = vadd.f32 %v4062_v35, %v4061_v53 }
 0x4d3   :  { %v4116_v10 = vsel %vm2634_vm12, %v4095_v32, 0.0 }
 0x4d4   :  { %v4117_v20 = vadd.f32 %v4116_v10, %v4115_v56  ;;  %v4065_v42 = vadd.f32 %v4064_v23, %v4063_v54 }
 0x4d6   :  { %v4119_v11 = vadd.f32 %v4118_v3, %v4117_v20 }
 0x4e9   :  { %v6961_v30 = vpop.f32.mrf.mxu1 }
 0x4ea   :  { %v4098_v19 = vmul.f32 %v6961_v30, %v6961_v30  ;;  %v4068_v58 = vsel %vm2634_vm12, %v6961_v30, 0.0 }
 0x4eb   :  { %v6971_v34 = vpop.f32.mrf.mxu1 }
 0x4ec   :  { %v4097_v13 = vmul.f32 %v6971_v34, %v6971_v34  ;;  %v4066_v46 = vsel %vm2634_vm12, %v6971_v34, 0.0  ;;  %v4122_v15 = vsel %vm2634_vm12, %v4098_v19, 0.0 }
 0x4ed   :  { %v4067_v26 = vadd.f32 %v4066_v46, %v4065_v42 }
 0x4ee   :  { %v4120_v61 = vsel %vm2634_vm12, %v4097_v13, 0.0 }
 0x4ef   :  { %v4121_v37 = vadd.f32 %v4120_v61, %v4119_v11  ;;  %v4069_v22 = vadd.f32 %v4068_v58, %v4067_v26 }
 0x4f1   :  { %v4123_v63 = vadd.f32 %v4122_v15, %v4121_v37 }
 0x501   :  { %v6975_v1 = vpop.f32.mrf.mxu1 }
 0x502   :  { %v4100_v7 = vmul.f32 %v6975_v1, %v6975_v1  ;;  %v4072_v45 = vsel %vm2634_vm12, %v6975_v1, 0.0 }
 0x503   :  { %v6985_v31 = vpop.f32.mrf.mxu1 }
 0x504   :  { %v4099_v2 = vmul.f32 %v6985_v31, %v6985_v31  ;;  %v4070_v25 = vsel %vm2634_vm12, %v6985_v31, 0.0  ;;  %v4126_v28 = vsel %vm2634_vm12, %v4100_v7, 0.0 }
 0x505   :  { %v4071_v49 = vadd.f32 %v4070_v25, %v4069_v22 }
 0x506   :  { %v4124_v43 = vsel %vm2634_vm12, %v4099_v2, 0.0 }
 0x507   :  { %v4125_v0 = vadd.f32 %v4124_v43, %v4123_v63  ;;  %v4073_v55 = vadd.f32 %v4072_v45, %v4071_v49 }
 0x509   :  { %v4127_v33 = vadd.f32 %v4126_v28, %v4125_v0 }
 0x51a   :  { %v6993_v50 = vpop.f32.mrf.mxu1 }
 0x51b   :  { %v4102_v60 = vmul.f32 %v6993_v50, %v6993_v50  ;;  %v4076_v8 = vsel %vm2634_vm12, %v6993_v50, 0.0 }
 0x51c   :  { %v6999_v21 = vpop.f32.mrf.mxu1 }
 0x51d   :  { %v4101_v5 = vmul.f32 %v6999_v21, %v6999_v21  ;;  %v4074_v36 = vsel %vm2634_vm12, %v6999_v21, 0.0  ;;  %v4130_v4 = vsel %vm2634_vm12, %v4102_v60, 0.0 }
 0x51e   :  { %v4075_v27 = vadd.f32 %v4074_v36, %v4073_v55 }
 0x51f   :  { %v4128_v47 = vsel %vm2634_vm12, %v4101_v5, 0.0 }
 0x520   :  { %v4129_v9 = vadd.f32 %v4128_v47, %v4127_v33  ;;  %v4077_v24 = vadd.f32 %v4076_v8, %v4075_v27 }
 0x522   :  { %v4131_v32 = vadd.f32 %v4130_v4, %v4129_v9 }
 0x527   :  { %v7015_v18 = vpop.f32.mrf.mxu1 }
 0x528   :  { %v4104_v51 = vmul.f32 %v7015_v18, %v7015_v18  ;;  %v4080_v59 = vsel %vm2634_vm12, %v7015_v18, 0.0 }
 0x529   :  { %v7019_v62 = vpop.f32.mrf.mxu1 }
 0x52a   :  { %v4078_v29 = vsel %vm2634_vm12, %v7019_v62, 0.0  ;;  %v4103_v39 = vmul.f32 %v7019_v62, %v7019_v62  ;;  %v4134_v14 = vsel %vm2634_vm12, %v4104_v51, 0.0 }
 0x52b   :  { %v4079_v57 = vadd.f32 %v4078_v29, %v4077_v24 }
 0x52c   :  { %v4132_v48 = vsel %vm2634_vm12, %v4103_v39, 0.0  ;;  %v4295_v39 = vld [vmem:[%s7124_s6] ss:$0 sm:$0xff] }
 0x52d   :  { %v4081_v35 = vadd.f32 %v4080_v59, %v4079_v57  ;;  %v4133_v53 = vadd.f32 %v4132_v48, %v4131_v32 }
 0x52f   :  { %v4082_v10 = vrot.slane %v4081_v35, 4  ;;  %v4135_v54 = vadd.f32 %v4134_v14, %v4133_v53 }
 0x531   :  { %v4083_v56 = vadd.f32 %v4082_v10, %v4081_v35  ;;  %v4136_v38 = vrot.slane %v4135_v54, 4 }
 0x533   :  { %v4084_v13 = vrot.slane %v4083_v56, 2  ;;  %v4137_v20 = vadd.f32 %v4136_v38, %v4135_v54 }
 0x535   :  { %v4085_v23 = vadd.f32 %v4084_v13, %v4083_v56  ;;  %v4138_v46 = vrot.slane %v4137_v20, 2 }
 0x537   :  { %v4086_v42 = vrot.slane %v4085_v23, 1  ;;  %v4139_v3 = vadd.f32 %v4138_v46, %v4137_v20 }
 0x539   :  { %v4087_v61 = vadd.f32 %v4086_v42, %v4085_v23  ;;  %v4140_v26 = vrot.slane %v4139_v3, 1 }
 0x53b   :  { %v4088_v11 = vmul.f32 0.0078125, %v4087_v61  ;;  %v4141_v19 = vadd.f32 %v4140_v26, %v4139_v3 }
 0x53d   :  { %v4142_v2 = vmul.f32 0.0078125, %v4141_v19  ;;  %v4143_v37 = vmul.f32 %v4088_v11, %v4088_v11  ;;  %v4145_v22 = vsub.f32 %v6924_v44, %v4088_v11  ;;  %v4146_v15 = vsub.f32 %v6920_v52, %v4088_v11 }
 0x53e   :  { %v4147_v43 = vsub.f32 %v6926_v40, %v4088_v11  ;;  %v4148_v49 = vsub.f32 %v6922_v6, %v4088_v11  ;;  %v4149_v63 = vsub.f32 %v6943_v17, %v4088_v11  ;;  %v4150_v7 = vsub.f32 %v6930_v16, %v4088_v11 }
 0x53f   :  { %v4144_v58 = vsub.f32 %v4142_v2, %v4143_v37  ;;  %v4151_v5 = vsub.f32 %v6957_v41, %v4088_v11  ;;  %v4152_v0 = vsub.f32 %v6947_v12, %v4088_v11  ;;  %v4153_v45 = vsub.f32 %v6971_v34, %v4088_v11 }
 0x540   :  { %v4154_v36 = vsub.f32 %v6961_v30, %v4088_v11  ;;  %v4155_v44 = vsub.f32 %v6985_v31, %v4088_v11  ;;  %v4156_v52 = vsub.f32 %v6975_v1, %v4088_v11  ;;  %v4157_v40 = vsub.f32 %v6999_v21, %v4088_v11  ;;  %v4294_v30 = vld [vmem:[%s7123_s5] ss:$0 sm:$0xff] }
 0x541   :  { %v4161_v25 = vadd.f32 1e-05, %v4144_v58  ;;  %v4158_v6 = vsub.f32 %v6993_v50, %v4088_v11  ;;  %v4159_v17 = vsub.f32 %v7019_v62, %v4088_v11  ;;  %v4160_v16 = vsub.f32 %v7015_v18, %v4088_v11 }
 0x543   :  { %4452 = vrsqrt.f32 %v4161_v25 }
 0x550   :  { %v4453_v55 = vpop.eup %4452 }
 0x551   :  { %v4163_v41 = vmul.f32 %v4453_v55, %v4145_v22  ;;  %v4164_v28 = vmul.f32 %v4453_v55, %v4146_v15  ;;  %v4165_v12 = vmul.f32 %v4453_v55, %v4147_v43  ;;  %v4166_v47 = vmul.f32 %v4453_v55, %v4148_v49 }
 0x552   :  { %v4167_v34 = vmul.f32 %v4453_v55, %v4149_v63  ;;  %v4168_v31 = vmul.f32 %v4453_v55, %v4150_v7  ;;  %v4169_v1 = vmul.f32 %v4453_v55, %v4151_v5  ;;  %v4170_v27 = vmul.f32 %v4453_v55, %v4152_v0 }
 0x553   :  { %v4171_v33 = vmul.f32 %v4453_v55, %v4153_v45  ;;  %v4172_v21 = vmul.f32 %v4453_v55, %v4154_v36  ;;  %v4173_v60 = vmul.f32 %v4453_v55, %v4155_v44  ;;  %v4174_v50 = vmul.f32 %v4453_v55, %v4156_v52 }
 0x554   :  { %v4175_v9 = vmul.f32 %v4453_v55, %v4157_v40  ;;  %v4176_v8 = vmul.f32 %v4453_v55, %v4158_v6  ;;  %v4177_v62 = vmul.f32 %v4453_v55, %v4159_v17  ;;  %v4178_v18 = vmul.f32 %v4453_v55, %v4160_v16 }
 0x555   :  { %v4185_v24 = vmul.f32 %v4294_v30, %v4163_v41  ;;  %v4186_v4 = vmul.f32 %v4294_v30, %v4164_v28  ;;  %v4187_v51 = vmul.f32 %v4294_v30, %v4165_v12  ;;  %v4188_v29 = vmul.f32 %v4294_v30, %v4166_v47 }
 0x556   :  { %v4189_v57 = vmul.f32 %v4294_v30, %v4167_v34  ;;  %v4190_v32 = vmul.f32 %v4294_v30, %v4168_v31  ;;  %v4191_v59 = vmul.f32 %v4294_v30, %v4169_v1  ;;  %v4192_v48 = vmul.f32 %v4294_v30, %v4170_v27 }
 0x557   :  { %v4193_v35 = vmul.f32 %v4294_v30, %v4171_v33  ;;  %v4194_v53 = vmul.f32 %v4294_v30, %v4172_v21  ;;  %v4195_v14 = vmul.f32 %v4294_v30, %v4173_v60  ;;  %v4196_v10 = vmul.f32 %v4294_v30, %v4174_v50 }
 0x558   :  { %v4197_v54 = vmul.f32 %v4294_v30, %v4175_v9  ;;  %v4198_v56 = vmul.f32 %v4294_v30, %v4176_v8  ;;  %v4199_v38 = vmul.f32 %v4294_v30, %v4177_v62  ;;  %v4200_v13 = vmul.f32 %v4294_v30, %v4178_v18 }
 0x559   :  { %v4207_v20 = vadd.f32 %v4295_v39, %v4185_v24  ;;  %v4208_v23 = vadd.f32 %v4295_v39, %v4186_v4  ;;  %v4209_v46 = vadd.f32 %v4295_v39, %v4187_v51  ;;  %v4210_v42 = vadd.f32 %v4295_v39, %v4188_v29 }
 0x55a   :  { %v4211_v3 = vadd.f32 %v4295_v39, %v4189_v57  ;;  %v4212_v61 = vadd.f32 %v4295_v39, %v4190_v32  ;;  %v4213_v26 = vadd.f32 %v4295_v39, %v4191_v59  ;;  %v4214_v11 = vadd.f32 %v4295_v39, %v4192_v48 }
 0x55b   :  { %v4215_v19 = vadd.f32 %v4295_v39, %v4193_v35  ;;  %v4216_v2 = vadd.f32 %v4295_v39, %v4194_v53  ;;  %v4217_v37 = vadd.f32 %v4295_v39, %v4195_v14  ;;  %v4218_v58 = vadd.f32 %v4295_v39, %v4196_v10 }
 0x55c   :  { %v4219_v25 = vadd.f32 %v4295_v39, %v4197_v54  ;;  %v4220_v22 = vadd.f32 %v4295_v39, %v4198_v56  ;;  %v4221_v15 = vadd.f32 %v4295_v39, %v4199_v38  ;;  %v4222_v43 = vadd.f32 %v4295_v39, %v4200_v13 }
 0x55d   :  { %v4223_v49 = vmax.f32 %v4207_v20, 0.0  ;;  %v4224_v63 = vmax.f32 %v4208_v23, 0.0  ;;  %v4225_v7 = vmax.f32 %v4209_v46, 0.0  ;;  %v4226_v5 = vmax.f32 %v4210_v42, 0.0 }
 0x55e   :  { %v4227_v0 = vmax.f32 %v4211_v3, 0.0  ;;  %v4228_v45 = vmax.f32 %v4212_v61, 0.0  ;;  %v4229_v36 = vmax.f32 %v4213_v26, 0.0  ;;  %v4230_v44 = vmax.f32 %v4214_v11, 0.0 }
 0x55f   :  { %v4231_v52 = vmax.f32 %v4215_v19, 0.0  ;;  %v4232_v55 = vmax.f32 %v4216_v2, 0.0  ;;  %v4233_v40 = vmax.f32 %v4217_v37, 0.0  ;;  %v4234_v6 = vmax.f32 %v4218_v58, 0.0  ;;  %4239 = vst.msk [vmem:[%s7125_s7] sm:$0xff] %vm2634_vm12, %v4223_v49  ;;  %4240 = vst.msk [vmem:[%s7125_s7 + $0x8] sm:$0xff] %vm2634_vm12, %v4224_v63 }
 0x560   :  { %4241 = vst.msk [vmem:[%s7125_s7 + $0x10] sm:$0xff] %vm2634_vm12, %v4225_v7  ;;  %4242 = vst.msk [vmem:[%s7125_s7 + $0x18] sm:$0xff] %vm2634_vm12, %v4226_v5  ;;  %v4235_v17 = vmax.f32 %v4219_v25, 0.0  ;;  %v4236_v16 = vmax.f32 %v4220_v22, 0.0  ;;  %v4237_v41 = vmax.f32 %v4221_v15, 0.0  ;;  %v4238_v28 = vmax.f32 %v4222_v43, 0.0 }
 0x561   :  { %4243 = vst.msk [vmem:[%s7125_s7 + $0x20] sm:$0xff] %vm2634_vm12, %v4227_v0  ;;  %4244 = vst.msk [vmem:[%s7125_s7 + $0x28] sm:$0xff] %vm2634_vm12, %v4228_v45 }
 0x562   :  { %4245 = vst.msk [vmem:[%s7125_s7 + $0x30] sm:$0xff] %vm2634_vm12, %v4229_v36  ;;  %4246 = vst.msk [vmem:[%s7125_s7 + $0x38] sm:$0xff] %vm2634_vm12, %v4230_v44 }
 0x563   :  { %4247 = vst.msk [vmem:[%s7125_s7 + $0x40] sm:$0xff] %vm2634_vm12, %v4231_v52  ;;  %4248 = vst.msk [vmem:[%s7125_s7 + $0x48] sm:$0xff] %vm2634_vm12, %v4232_v55 }
 0x564   :  { %4249 = vst.msk [vmem:[%s7125_s7 + $0x50] sm:$0xff] %vm2634_vm12, %v4233_v40  ;;  %4250 = vst.msk [vmem:[%s7125_s7 + $0x58] sm:$0xff] %vm2634_vm12, %v4234_v6 }
 0x565   :  { %4251 = vst.msk [vmem:[%s7125_s7 + $0x60] sm:$0xff] %vm2634_vm12, %v4235_v17  ;;  %4252 = vst.msk [vmem:[%s7125_s7 + $0x68] sm:$0xff] %vm2634_vm12, %v4236_v16 }
 0x566   :  { %4253 = vst.msk [vmem:[%s7125_s7 + $0x70] sm:$0xff] %vm2634_vm12, %v4237_v41  ;;  %4254 = vst.msk [vmem:[%s7125_s7 + $0x78] sm:$0xff] %vm2634_vm12, %v4238_v28 }

</bundles_post_ra>
